<compile_context>
chip_gen: v5e
topology: v5e:2x2
jax: 0.10.0
libtpu: 0.0.40
codegen_flags: <defaults>
</compile_context>

<pallas_src>
import functools

import jax
import jax.numpy as jnp
from jax.experimental import pallas as pl
from jax.experimental.pallas import tpu as pltpu

TAU = 2.0
V_TH = 1.0
DECAY = 1.0 - 1.0 / TAU     # leak factor; 1/tau is pre-folded into fc weights
IN_DIM = 28 * 28            # 784
HID = 256
OUT = 10
OUT_PAD = 128               # lane-dense fc2 width (zero-padded, sliced off)
B_TILE = 32                 # batch rows per grid block (multiple of 16 so all
                            # bf16 sublane offsets stay tile-aligned; keeps the
                            # carried LIF state at ~16 vregs)


def _snn_kernel(x_ref, w1_ref, b1_ref, w2_ref, b2_ref, out_ref,
                xs_ref, h_ref, *, num_steps, b_tile, inv_t):
    """One grid point == one batch block; the full time loop runs in-kernel."""
    # ---- fc1 for ALL timesteps as one big MXU matmul (fc1 has no recurrence).
    # Repack the (T, bt, 784) bf16 block into a contiguous (T*bt, 784) slab:
    # T static vreg copies inside VMEM (avoids a packed-dtype 3-D reshape).
    for t in range(num_steps):
        xs_ref[pl.ds(t * b_tile, b_tile), :] = x_ref[t]
    h_ref[...] = (jnp.dot(xs_ref[...], w1_ref[...],
                          preferred_element_type=jnp.float32) + b1_ref[...])

    w2 = w2_ref[...]
    b2 = b2_ref[...]

    # ---- Sequential LIF1 -> fc2 -> LIF2 chain.  Carried state stays in vregs
    # (v1: 8, v2: 4, acc: 4 vregs at b_tile=32); T is small & static so the
    # Python loop fully unrolls with static, tile-aligned slices of h scratch.
    v1 = jnp.zeros((b_tile, HID), jnp.float32)
    v2 = jnp.zeros((b_tile, OUT_PAD), jnp.float32)
    acc = jnp.zeros((b_tile, OUT_PAD), jnp.float32)

    for t in range(num_steps):
        h = h_ref[pl.ds(t * b_tile, b_tile), :]              # (bt, 256) f32

        # LIF1: charge (1/tau already folded into h), fire, hard reset to 0.
        v1 = v1 * DECAY + h
        fire1 = v1 >= V_TH
        v1 = jnp.where(fire1, 0.0, v1)
        s1 = fire1.astype(jnp.float32).astype(jnp.bfloat16)  # 0/1 spikes, MXU dtype

        # fc2: [bt, 256] @ [256, 128(pad)] + [1, 128(pad)]
        o = jnp.dot(s1, w2, preferred_element_type=jnp.float32) + b2

        # LIF2
        v2 = v2 * DECAY + o
        fire2 = v2 >= V_TH
        v2 = jnp.where(fire2, 0.0, v2)
        acc = acc + fire2.astype(jnp.float32)

    # Single lane-dense store of the mean spike rate.
    out_ref[...] = acc * inv_t


def simple_snn_forward(x, w1, b1, w2, b2):
    """x: [T, B, 1, 28, 28] float32.  Returns [B, 10] mean spike rate of sn2."""
    T, B = x.shape[0], x.shape[1]
    x_flat = x.reshape(T, B, IN_DIM).astype(jnp.float32)

    # Pad batch to a multiple of the tile (padded rows are inert & sliced off).
    b_tile = B_TILE
    b_pad = ((B + b_tile - 1) // b_tile) * b_tile
    if b_pad != B:
        x_flat = jnp.pad(x_flat, ((0, 0), (0, b_pad - B), (0, 0)))

    # bf16 MXU inputs; 1/tau folded into weights/biases (exact for tau=2).
    inv_tau = 1.0 / TAU
    x_bf = x_flat.astype(jnp.bfloat16)
    w1_p = (w1 * inv_tau).astype(jnp.bfloat16)
    b1_p = (b1 * inv_tau).astype(jnp.float32).reshape(1, HID)
    # fc2 zero-padded to 128 lanes -> lane-dense recurrent path + output store.
    w2_p = (jnp.zeros((HID, OUT_PAD), jnp.float32)
            .at[:, :OUT].set(w2 * inv_tau).astype(jnp.bfloat16))
    b2_p = jnp.zeros((1, OUT_PAD), jnp.float32).at[0, :OUT].set(b2 * inv_tau)

    kernel = functools.partial(_snn_kernel, num_steps=T, b_tile=b_tile,
                               inv_t=1.0 / T)

    out = pl.pallas_call(
        kernel,
        out_shape=jax.ShapeDtypeStruct((b_pad, OUT_PAD), jnp.float32),
        grid_spec=pltpu.PrefetchScalarGridSpec(
            num_scalar_prefetch=0,
            grid=(b_pad // b_tile,),                                  # batch blocks
            in_specs=[
                pl.BlockSpec((T, b_tile, IN_DIM), lambda b: (0, b, 0)),  # x (all T)
                pl.BlockSpec((IN_DIM, HID), lambda b: (0, 0)),           # w1
                pl.BlockSpec((1, HID), lambda b: (0, 0)),                # b1
                pl.BlockSpec((HID, OUT_PAD), lambda b: (0, 0)),          # w2 (padded)
                pl.BlockSpec((1, OUT_PAD), lambda b: (0, 0)),            # b2 (padded)
            ],
            out_specs=pl.BlockSpec((b_tile, OUT_PAD), lambda b: (b, 0)),
            scratch_shapes=[
                pltpu.VMEM((T * b_tile, IN_DIM), jnp.bfloat16),  # repacked x slab
                pltpu.VMEM((T * b_tile, HID), jnp.float32),      # hoisted fc1 out
            ],
        ),
        compiler_params=pltpu.CompilerParams(
            # Independent batch blocks -> shard across TensorCores on v7x.
            dimension_semantics=("parallel",),
        ),
    )(x_bf, w1_p, b1_p, w2_p, b2_p)

    return out[:B, :OUT]


def _reference(x, w1, b1, w2, b2):
    """Pure-JAX reference with the SAME numerics as the kernel (1/tau folded
    into the fc weights, bf16 MXU inputs, f32 accumulation and LIF state).
    Mathematically identical to the module's  v <- v + (fc(x) - v)/tau ;
    spike = (v >= 1) ; hard reset to 0."""
    T, B = x.shape[0], x.shape[1]
    inv_tau = 1.0 / TAU
    xf = x.reshape(T, B, IN_DIM).astype(jnp.float32)
    w1s = (w1 * inv_tau).astype(jnp.bfloat16)
    b1s = (b1 * inv_tau).astype(jnp.float32)
    w2s = (w2 * inv_tau).astype(jnp.bfloat16)
    b2s = (b2 * inv_tau).astype(jnp.float32)

    h_all = (jnp.dot(xf.astype(jnp.bfloat16).reshape(T * B, IN_DIM), w1s,
                     preferred_element_type=jnp.float32) + b1s
             ).reshape(T, B, HID)

    v1 = jnp.zeros((B, HID), jnp.float32)
    v2 = jnp.zeros((B, OUT), jnp.float32)
    acc = jnp.zeros((B, OUT), jnp.float32)
    for t in range(T):
        v1 = v1 * DECAY + h_all[t]
        f1 = v1 >= V_TH
        v1 = jnp.where(f1, 0.0, v1)
        o = jnp.dot(f1.astype(jnp.bfloat16), w2s,
                    preferred_element_type=jnp.float32) + b2s
        v2 = v2 * DECAY + o
        f2 = v2 >= V_TH
        v2 = jnp.where(f2, 0.0, v2)
        acc = acc + f2.astype(jnp.float32)
    return acc * (1.0 / T)


if __name__ == "__main__":
    key = jax.random.PRNGKey(0)
    k_x, k_w1, k_b1, k_w2, k_b2 = jax.random.split(key, 5)

    T, B = 8, 2
    # Input scaled up so the LIF neurons actually spike at random init
    # (module semantics unchanged; only the demo data is scaled).
    x = jax.random.uniform(k_x, (T, B, 1, 28, 28), jnp.float32) * 4.0

    # fc1: PyTorch nn.Linear-style init U(-1/sqrt(fan_in), +1/sqrt(fan_in)),
    # stored transposed ([in, out]) for x @ W.  fc2 uses a larger range so the
    # output layer spikes too and the smoke test exercises the full LIF chain.
    lim1 = 1.0 / (IN_DIM ** 0.5)
    w1 = jax.random.uniform(k_w1, (IN_DIM, HID), jnp.float32, -lim1, lim1)
    b1 = jax.random.uniform(k_b1, (HID,), jnp.float32, -lim1, lim1)
    w2 = jax.random.uniform(k_w2, (HID, OUT), jnp.float32, -0.5, 0.5)
    b2 = jax.random.uniform(k_b2, (OUT,), jnp.float32, -0.5, 0.5)

    out = simple_snn_forward(x, w1, b1, w2, b2)
    out = jax.block_until_ready(out)

    ref = _reference(x, w1, b1, w2, b2)
    assert out.shape == (B, OUT)
    assert jnp.allclose(out, ref, atol=1e-6), (out, ref)

    print("KERNEL_OK")
</pallas_src>

<mosaic_0001>
module attributes {stable_mosaic.version = 11 : i64} {
  func.func @_snn_kernel(%arg0: i32, %arg1: memref<8x32x784xbf16, #tpu.memory_space<vmem>>, %arg2: memref<784x256xbf16, #tpu.memory_space<vmem>>, %arg3: memref<1x256xf32, #tpu.memory_space<vmem>>, %arg4: memref<256x128xbf16, #tpu.memory_space<vmem>>, %arg5: memref<1x128xf32, #tpu.memory_space<vmem>>, %arg6: memref<32x128xf32, #tpu.memory_space<vmem>>, %arg7: memref<256x784xbf16, #tpu.memory_space<vmem>>, %arg8: memref<256x256xf32, #tpu.memory_space<vmem>>) attributes {dimension_semantics = [#tpu.dimension_semantics<parallel>], iteration_bounds = array<i64: 1>, scalar_prefetch = 0 : i64, scratch_operands = 2 : i64, tpu.core_type = #tpu.core_type<tc>, window_params = [{transform_indices = @transform_0, window_bounds = array<i64: 8, 32, 784>}, {pipeline_mode = #tpu.pipeline_mode<synchronous>, transform_indices = @transform_1, window_bounds = array<i64: 784, 256>}, {pipeline_mode = #tpu.pipeline_mode<synchronous>, transform_indices = @transform_2, window_bounds = array<i64: 1, 256>}, {pipeline_mode = #tpu.pipeline_mode<synchronous>, transform_indices = @transform_3, window_bounds = array<i64: 256, 128>}, {pipeline_mode = #tpu.pipeline_mode<synchronous>, transform_indices = @transform_4, window_bounds = array<i64: 1, 128>}, {transform_indices = @transform_5, window_bounds = array<i64: 32, 128>}]} {
    %c0 = arith.constant 0 : index
    %c0_0 = arith.constant 0 : index
    %c0_1 = arith.constant 0 : index
    %0 = vector.load %arg1[%c0, %c0_0, %c0_1] : memref<8x32x784xbf16, #tpu.memory_space<vmem>>, vector<1x32x784xbf16>
    %1 = vector.shape_cast %0 : vector<1x32x784xbf16> to vector<32x784xbf16>
    %c0_2 = arith.constant 0 : index
    %c0_3 = arith.constant 0 : index
    %2 = vector.load %arg7[%c0_2, %c0_3] : memref<256x784xbf16, #tpu.memory_space<vmem>>, vector<32x784xbf16>
    tpu.vector_store %arg7[%c0_2, %c0_3], %1 {strides = array<i32>} : memref<256x784xbf16, #tpu.memory_space<vmem>>, vector<32x784xbf16>,
    %c1 = arith.constant 1 : index
    %c0_4 = arith.constant 0 : index
    %c0_5 = arith.constant 0 : index
    %3 = vector.load %arg1[%c1, %c0_4, %c0_5] : memref<8x32x784xbf16, #tpu.memory_space<vmem>>, vector<1x32x784xbf16>
    %4 = vector.shape_cast %3 : vector<1x32x784xbf16> to vector<32x784xbf16>
    %c32 = arith.constant 32 : index
    %c0_6 = arith.constant 0 : index
    %5 = vector.load %arg7[%c32, %c0_6] : memref<256x784xbf16, #tpu.memory_space<vmem>>, vector<32x784xbf16>
    tpu.vector_store %arg7[%c32, %c0_6], %4 {strides = array<i32>} : memref<256x784xbf16, #tpu.memory_space<vmem>>, vector<32x784xbf16>,
    %c2 = arith.constant 2 : index
    %c0_7 = arith.constant 0 : index
    %c0_8 = arith.constant 0 : index
    %6 = vector.load %arg1[%c2, %c0_7, %c0_8] : memref<8x32x784xbf16, #tpu.memory_space<vmem>>, vector<1x32x784xbf16>
    %7 = vector.shape_cast %6 : vector<1x32x784xbf16> to vector<32x784xbf16>
    %c64 = arith.constant 64 : index
    %c0_9 = arith.constant 0 : index
    %8 = vector.load %arg7[%c64, %c0_9] : memref<256x784xbf16, #tpu.memory_space<vmem>>, vector<32x784xbf16>
    tpu.vector_store %arg7[%c64, %c0_9], %7 {strides = array<i32>} : memref<256x784xbf16, #tpu.memory_space<vmem>>, vector<32x784xbf16>,
    %c3 = arith.constant 3 : index
    %c0_10 = arith.constant 0 : index
    %c0_11 = arith.constant 0 : index
    %9 = vector.load %arg1[%c3, %c0_10, %c0_11] : memref<8x32x784xbf16, #tpu.memory_space<vmem>>, vector<1x32x784xbf16>
    %10 = vector.shape_cast %9 : vector<1x32x784xbf16> to vector<32x784xbf16>
    %c96 = arith.constant 96 : index
    %c0_12 = arith.constant 0 : index
    %11 = vector.load %arg7[%c96, %c0_12] : memref<256x784xbf16, #tpu.memory_space<vmem>>, vector<32x784xbf16>
    tpu.vector_store %arg7[%c96, %c0_12], %10 {strides = array<i32>} : memref<256x784xbf16, #tpu.memory_space<vmem>>, vector<32x784xbf16>,
    %c4 = arith.constant 4 : index
    %c0_13 = arith.constant 0 : index
    %c0_14 = arith.constant 0 : index
    %12 = vector.load %arg1[%c4, %c0_13, %c0_14] : memref<8x32x784xbf16, #tpu.memory_space<vmem>>, vector<1x32x784xbf16>
    %13 = vector.shape_cast %12 : vector<1x32x784xbf16> to vector<32x784xbf16>
    %c128 = arith.constant 128 : index
    %c0_15 = arith.constant 0 : index
    %14 = vector.load %arg7[%c128, %c0_15] : memref<256x784xbf16, #tpu.memory_space<vmem>>, vector<32x784xbf16>
    tpu.vector_store %arg7[%c128, %c0_15], %13 {strides = array<i32>} : memref<256x784xbf16, #tpu.memory_space<vmem>>, vector<32x784xbf16>,
    %c5 = arith.constant 5 : index
    %c0_16 = arith.constant 0 : index
    %c0_17 = arith.constant 0 : index
    %15 = vector.load %arg1[%c5, %c0_16, %c0_17] : memref<8x32x784xbf16, #tpu.memory_space<vmem>>, vector<1x32x784xbf16>
    %16 = vector.shape_cast %15 : vector<1x32x784xbf16> to vector<32x784xbf16>
    %c160 = arith.constant 160 : index
    %c0_18 = arith.constant 0 : index
    %17 = vector.load %arg7[%c160, %c0_18] : memref<256x784xbf16, #tpu.memory_space<vmem>>, vector<32x784xbf16>
    tpu.vector_store %arg7[%c160, %c0_18], %16 {strides = array<i32>} : memref<256x784xbf16, #tpu.memory_space<vmem>>, vector<32x784xbf16>,
    %c6 = arith.constant 6 : index
    %c0_19 = arith.constant 0 : index
    %c0_20 = arith.constant 0 : index
    %18 = vector.load %arg1[%c6, %c0_19, %c0_20] : memref<8x32x784xbf16, #tpu.memory_space<vmem>>, vector<1x32x784xbf16>
    %19 = vector.shape_cast %18 : vector<1x32x784xbf16> to vector<32x784xbf16>
    %c192 = arith.constant 192 : index
    %c0_21 = arith.constant 0 : index
    %20 = vector.load %arg7[%c192, %c0_21] : memref<256x784xbf16, #tpu.memory_space<vmem>>, vector<32x784xbf16>
    tpu.vector_store %arg7[%c192, %c0_21], %19 {strides = array<i32>} : memref<256x784xbf16, #tpu.memory_space<vmem>>, vector<32x784xbf16>,
    %c7 = arith.constant 7 : index
    %c0_22 = arith.constant 0 : index
    %c0_23 = arith.constant 0 : index
    %21 = vector.load %arg1[%c7, %c0_22, %c0_23] : memref<8x32x784xbf16, #tpu.memory_space<vmem>>, vector<1x32x784xbf16>
    %22 = vector.shape_cast %21 : vector<1x32x784xbf16> to vector<32x784xbf16>
    %c224 = arith.constant 224 : index
    %c0_24 = arith.constant 0 : index
    %23 = vector.load %arg7[%c224, %c0_24] : memref<256x784xbf16, #tpu.memory_space<vmem>>, vector<32x784xbf16>
    tpu.vector_store %arg7[%c224, %c0_24], %22 {strides = array<i32>} : memref<256x784xbf16, #tpu.memory_space<vmem>>, vector<32x784xbf16>,
    %c0_25 = arith.constant 0 : index
    %c0_26 = arith.constant 0 : index
    %24 = vector.load %arg7[%c0_25, %c0_26] : memref<256x784xbf16, #tpu.memory_space<vmem>>, vector<256x784xbf16>
    %c0_27 = arith.constant 0 : index
    %c0_28 = arith.constant 0 : index
    %25 = vector.load %arg2[%c0_27, %c0_28] : memref<784x256xbf16, #tpu.memory_space<vmem>>, vector<784x256xbf16>
    %cst = arith.constant dense<0.000000e+00> : vector<256x256xf32>
    %26 = tpu.matmul %24, %25, %cst {dimension_numbers = #tpu.dot_dimension_numbers<[1], [0], [0], [1], [0, 0, 1, 1], [], []>} : vector<256x784xbf16>, vector<784x256xbf16>, vector<256x256xf32> -> vector<256x256xf32>
    %c0_29 = arith.constant 0 : index
    %c0_30 = arith.constant 0 : index
    %27 = vector.load %arg3[%c0_29, %c0_30] : memref<1x256xf32, #tpu.memory_space<vmem>>, vector<1x256xf32>
    %28 = vector.broadcast %27 : vector<1x256xf32> to vector<256x256xf32>
    %29 = arith.addf %26, %28 : vector<256x256xf32>
    %c0_31 = arith.constant 0 : index
    %c0_32 = arith.constant 0 : index
    %30 = vector.load %arg8[%c0_31, %c0_32] : memref<256x256xf32, #tpu.memory_space<vmem>>, vector<256x256xf32>
    tpu.vector_store %arg8[%c0_31, %c0_32], %29 {strides = array<i32>} : memref<256x256xf32, #tpu.memory_space<vmem>>, vector<256x256xf32>,
    %c0_33 = arith.constant 0 : index
    %c0_34 = arith.constant 0 : index
    %31 = vector.load %arg4[%c0_33, %c0_34] : memref<256x128xbf16, #tpu.memory_space<vmem>>, vector<256x128xbf16>
    %c0_35 = arith.constant 0 : index
    %c0_36 = arith.constant 0 : index
    %32 = vector.load %arg5[%c0_35, %c0_36] : memref<1x128xf32, #tpu.memory_space<vmem>>, vector<1x128xf32>
    %cst_37 = arith.constant 0.000000e+00 : f32
    %33 = vector.broadcast %cst_37 : f32 to vector<32x256xf32>
    %cst_38 = arith.constant 0.000000e+00 : f32
    %34 = vector.broadcast %cst_38 : f32 to vector<32x128xf32>
    %cst_39 = arith.constant 0.000000e+00 : f32
    %35 = vector.broadcast %cst_39 : f32 to vector<32x128xf32>
    %c0_40 = arith.constant 0 : index
    %c0_41 = arith.constant 0 : index
    %36 = vector.load %arg8[%c0_40, %c0_41] : memref<256x256xf32, #tpu.memory_space<vmem>>, vector<32x256xf32>
    %cst_42 = arith.constant 5.000000e-01 : f32
    %37 = vector.broadcast %cst_42 : f32 to vector<32x256xf32>
    %38 = arith.mulf %33, %37 : vector<32x256xf32>
    %39 = arith.addf %38, %36 : vector<32x256xf32>
    %cst_43 = arith.constant 1.000000e+00 : f32
    %40 = vector.broadcast %cst_43 : f32 to vector<32x256xf32>
    %41 = arith.cmpf oge, %39, %40 : vector<32x256xf32>
    %cst_44 = arith.constant 0.000000e+00 : f32
    %42 = vector.broadcast %cst_44 : f32 to vector<32x256xf32>
    %43 = arith.select %41, %42, %39 : vector<32x256xi1>, vector<32x256xf32>
    %44 = arith.extui %41 : vector<32x256xi1> to vector<32x256xi32>
    %45 = arith.sitofp %44 : vector<32x256xi32> to vector<32x256xf32>
    %46 = arith.truncf %45 : vector<32x256xf32> to vector<32x256xbf16>
    %cst_45 = arith.constant dense<0.000000e+00> : vector<32x128xf32>
    %47 = tpu.matmul %46, %31, %cst_45 {dimension_numbers = #tpu.dot_dimension_numbers<[1], [0], [0], [1], [0, 0, 1, 1], [], []>} : vector<32x256xbf16>, vector<256x128xbf16>, vector<32x128xf32> -> vector<32x128xf32>
    %48 = vector.broadcast %32 : vector<1x128xf32> to vector<32x128xf32>
    %49 = arith.addf %47, %48 : vector<32x128xf32>
    %cst_46 = arith.constant 5.000000e-01 : f32
    %50 = vector.broadcast %cst_46 : f32 to vector<32x128xf32>
    %51 = arith.mulf %34, %50 : vector<32x128xf32>
    %52 = arith.addf %51, %49 : vector<32x128xf32>
    %cst_47 = arith.constant 1.000000e+00 : f32
    %53 = vector.broadcast %cst_47 : f32 to vector<32x128xf32>
    %54 = arith.cmpf oge, %52, %53 : vector<32x128xf32>
    %cst_48 = arith.constant 0.000000e+00 : f32
    %55 = vector.broadcast %cst_48 : f32 to vector<32x128xf32>
    %56 = arith.select %54, %55, %52 : vector<32x128xi1>, vector<32x128xf32>
    %57 = arith.extui %54 : vector<32x128xi1> to vector<32x128xi32>
    %58 = arith.sitofp %57 : vector<32x128xi32> to vector<32x128xf32>
    %59 = arith.addf %35, %58 : vector<32x128xf32>
    %c32_49 = arith.constant 32 : index
    %c0_50 = arith.constant 0 : index
    %60 = vector.load %arg8[%c32_49, %c0_50] : memref<256x256xf32, #tpu.memory_space<vmem>>, vector<32x256xf32>
    %cst_51 = arith.constant 5.000000e-01 : f32
    %61 = vector.broadcast %cst_51 : f32 to vector<32x256xf32>
    %62 = arith.mulf %43, %61 : vector<32x256xf32>
    %63 = arith.addf %62, %60 : vector<32x256xf32>
    %cst_52 = arith.constant 1.000000e+00 : f32
    %64 = vector.broadcast %cst_52 : f32 to vector<32x256xf32>
    %65 = arith.cmpf oge, %63, %64 : vector<32x256xf32>
    %cst_53 = arith.constant 0.000000e+00 : f32
    %66 = vector.broadcast %cst_53 : f32 to vector<32x256xf32>
    %67 = arith.select %65, %66, %63 : vector<32x256xi1>, vector<32x256xf32>
    %68 = arith.extui %65 : vector<32x256xi1> to vector<32x256xi32>
    %69 = arith.sitofp %68 : vector<32x256xi32> to vector<32x256xf32>
    %70 = arith.truncf %69 : vector<32x256xf32> to vector<32x256xbf16>
    %cst_54 = arith.constant dense<0.000000e+00> : vector<32x128xf32>
    %71 = tpu.matmul %70, %31, %cst_54 {dimension_numbers = #tpu.dot_dimension_numbers<[1], [0], [0], [1], [0, 0, 1, 1], [], []>} : vector<32x256xbf16>, vector<256x128xbf16>, vector<32x128xf32> -> vector<32x128xf32>
    %72 = vector.broadcast %32 : vector<1x128xf32> to vector<32x128xf32>
    %73 = arith.addf %71, %72 : vector<32x128xf32>
    %cst_55 = arith.constant 5.000000e-01 : f32
    %74 = vector.broadcast %cst_55 : f32 to vector<32x128xf32>
    %75 = arith.mulf %56, %74 : vector<32x128xf32>
    %76 = arith.addf %75, %73 : vector<32x128xf32>
    %cst_56 = arith.constant 1.000000e+00 : f32
    %77 = vector.broadcast %cst_56 : f32 to vector<32x128xf32>
    %78 = arith.cmpf oge, %76, %77 : vector<32x128xf32>
    %cst_57 = arith.constant 0.000000e+00 : f32
    %79 = vector.broadcast %cst_57 : f32 to vector<32x128xf32>
    %80 = arith.select %78, %79, %76 : vector<32x128xi1>, vector<32x128xf32>
    %81 = arith.extui %78 : vector<32x128xi1> to vector<32x128xi32>
    %82 = arith.sitofp %81 : vector<32x128xi32> to vector<32x128xf32>
    %83 = arith.addf %59, %82 : vector<32x128xf32>
    %c64_58 = arith.constant 64 : index
    %c0_59 = arith.constant 0 : index
    %84 = vector.load %arg8[%c64_58, %c0_59] : memref<256x256xf32, #tpu.memory_space<vmem>>, vector<32x256xf32>
    %cst_60 = arith.constant 5.000000e-01 : f32
    %85 = vector.broadcast %cst_60 : f32 to vector<32x256xf32>
    %86 = arith.mulf %67, %85 : vector<32x256xf32>
    %87 = arith.addf %86, %84 : vector<32x256xf32>
    %cst_61 = arith.constant 1.000000e+00 : f32
    %88 = vector.broadcast %cst_61 : f32 to vector<32x256xf32>
    %89 = arith.cmpf oge, %87, %88 : vector<32x256xf32>
    %cst_62 = arith.constant 0.000000e+00 : f32
    %90 = vector.broadcast %cst_62 : f32 to vector<32x256xf32>
    %91 = arith.select %89, %90, %87 : vector<32x256xi1>, vector<32x256xf32>
    %92 = arith.extui %89 : vector<32x256xi1> to vector<32x256xi32>
    %93 = arith.sitofp %92 : vector<32x256xi32> to vector<32x256xf32>
    %94 = arith.truncf %93 : vector<32x256xf32> to vector<32x256xbf16>
    %cst_63 = arith.constant dense<0.000000e+00> : vector<32x128xf32>
    %95 = tpu.matmul %94, %31, %cst_63 {dimension_numbers = #tpu.dot_dimension_numbers<[1], [0], [0], [1], [0, 0, 1, 1], [], []>} : vector<32x256xbf16>, vector<256x128xbf16>, vector<32x128xf32> -> vector<32x128xf32>
    %96 = vector.broadcast %32 : vector<1x128xf32> to vector<32x128xf32>
    %97 = arith.addf %95, %96 : vector<32x128xf32>
    %cst_64 = arith.constant 5.000000e-01 : f32
    %98 = vector.broadcast %cst_64 : f32 to vector<32x128xf32>
    %99 = arith.mulf %80, %98 : vector<32x128xf32>
    %100 = arith.addf %99, %97 : vector<32x128xf32>
    %cst_65 = arith.constant 1.000000e+00 : f32
    %101 = vector.broadcast %cst_65 : f32 to vector<32x128xf32>
    %102 = arith.cmpf oge, %100, %101 : vector<32x128xf32>
    %cst_66 = arith.constant 0.000000e+00 : f32
    %103 = vector.broadcast %cst_66 : f32 to vector<32x128xf32>
    %104 = arith.select %102, %103, %100 : vector<32x128xi1>, vector<32x128xf32>
    %105 = arith.extui %102 : vector<32x128xi1> to vector<32x128xi32>
    %106 = arith.sitofp %105 : vector<32x128xi32> to vector<32x128xf32>
    %107 = arith.addf %83, %106 : vector<32x128xf32>
    %c96_67 = arith.constant 96 : index
    %c0_68 = arith.constant 0 : index
    %108 = vector.load %arg8[%c96_67, %c0_68] : memref<256x256xf32, #tpu.memory_space<vmem>>, vector<32x256xf32>
    %cst_69 = arith.constant 5.000000e-01 : f32
    %109 = vector.broadcast %cst_69 : f32 to vector<32x256xf32>
    %110 = arith.mulf %91, %109 : vector<32x256xf32>
    %111 = arith.addf %110, %108 : vector<32x256xf32>
    %cst_70 = arith.constant 1.000000e+00 : f32
    %112 = vector.broadcast %cst_70 : f32 to vector<32x256xf32>
    %113 = arith.cmpf oge, %111, %112 : vector<32x256xf32>
    %cst_71 = arith.constant 0.000000e+00 : f32
    %114 = vector.broadcast %cst_71 : f32 to vector<32x256xf32>
    %115 = arith.select %113, %114, %111 : vector<32x256xi1>, vector<32x256xf32>
    %116 = arith.extui %113 : vector<32x256xi1> to vector<32x256xi32>
    %117 = arith.sitofp %116 : vector<32x256xi32> to vector<32x256xf32>
    %118 = arith.truncf %117 : vector<32x256xf32> to vector<32x256xbf16>
    %cst_72 = arith.constant dense<0.000000e+00> : vector<32x128xf32>
    %119 = tpu.matmul %118, %31, %cst_72 {dimension_numbers = #tpu.dot_dimension_numbers<[1], [0], [0], [1], [0, 0, 1, 1], [], []>} : vector<32x256xbf16>, vector<256x128xbf16>, vector<32x128xf32> -> vector<32x128xf32>
    %120 = vector.broadcast %32 : vector<1x128xf32> to vector<32x128xf32>
    %121 = arith.addf %119, %120 : vector<32x128xf32>
    %cst_73 = arith.constant 5.000000e-01 : f32
    %122 = vector.broadcast %cst_73 : f32 to vector<32x128xf32>
    %123 = arith.mulf %104, %122 : vector<32x128xf32>
    %124 = arith.addf %123, %121 : vector<32x128xf32>
    %cst_74 = arith.constant 1.000000e+00 : f32
    %125 = vector.broadcast %cst_74 : f32 to vector<32x128xf32>
    %126 = arith.cmpf oge, %124, %125 : vector<32x128xf32>
    %cst_75 = arith.constant 0.000000e+00 : f32
    %127 = vector.broadcast %cst_75 : f32 to vector<32x128xf32>
    %128 = arith.select %126, %127, %124 : vector<32x128xi1>, vector<32x128xf32>
    %129 = arith.extui %126 : vector<32x128xi1> to vector<32x128xi32>
    %130 = arith.sitofp %129 : vector<32x128xi32> to vector<32x128xf32>
    %131 = arith.addf %107, %130 : vector<32x128xf32>
    %c128_76 = arith.constant 128 : index
    %c0_77 = arith.constant 0 : index
    %132 = vector.load %arg8[%c128_76, %c0_77] : memref<256x256xf32, #tpu.memory_space<vmem>>, vector<32x256xf32>
    %cst_78 = arith.constant 5.000000e-01 : f32
    %133 = vector.broadcast %cst_78 : f32 to vector<32x256xf32>
    %134 = arith.mulf %115, %133 : vector<32x256xf32>
    %135 = arith.addf %134, %132 : vector<32x256xf32>
    %cst_79 = arith.constant 1.000000e+00 : f32
    %136 = vector.broadcast %cst_79 : f32 to vector<32x256xf32>
    %137 = arith.cmpf oge, %135, %136 : vector<32x256xf32>
    %cst_80 = arith.constant 0.000000e+00 : f32
    %138 = vector.broadcast %cst_80 : f32 to vector<32x256xf32>
    %139 = arith.select %137, %138, %135 : vector<32x256xi1>, vector<32x256xf32>
    %140 = arith.extui %137 : vector<32x256xi1> to vector<32x256xi32>
    %141 = arith.sitofp %140 : vector<32x256xi32> to vector<32x256xf32>
    %142 = arith.truncf %141 : vector<32x256xf32> to vector<32x256xbf16>
    %cst_81 = arith.constant dense<0.000000e+00> : vector<32x128xf32>
    %143 = tpu.matmul %142, %31, %cst_81 {dimension_numbers = #tpu.dot_dimension_numbers<[1], [0], [0], [1], [0, 0, 1, 1], [], []>} : vector<32x256xbf16>, vector<256x128xbf16>, vector<32x128xf32> -> vector<32x128xf32>
    %144 = vector.broadcast %32 : vector<1x128xf32> to vector<32x128xf32>
    %145 = arith.addf %143, %144 : vector<32x128xf32>
    %cst_82 = arith.constant 5.000000e-01 : f32
    %146 = vector.broadcast %cst_82 : f32 to vector<32x128xf32>
    %147 = arith.mulf %128, %146 : vector<32x128xf32>
    %148 = arith.addf %147, %145 : vector<32x128xf32>
    %cst_83 = arith.constant 1.000000e+00 : f32
    %149 = vector.broadcast %cst_83 : f32 to vector<32x128xf32>
    %150 = arith.cmpf oge, %148, %149 : vector<32x128xf32>
    %cst_84 = arith.constant 0.000000e+00 : f32
    %151 = vector.broadcast %cst_84 : f32 to vector<32x128xf32>
    %152 = arith.select %150, %151, %148 : vector<32x128xi1>, vector<32x128xf32>
    %153 = arith.extui %150 : vector<32x128xi1> to vector<32x128xi32>
    %154 = arith.sitofp %153 : vector<32x128xi32> to vector<32x128xf32>
    %155 = arith.addf %131, %154 : vector<32x128xf32>
    %c160_85 = arith.constant 160 : index
    %c0_86 = arith.constant 0 : index
    %156 = vector.load %arg8[%c160_85, %c0_86] : memref<256x256xf32, #tpu.memory_space<vmem>>, vector<32x256xf32>
    %cst_87 = arith.constant 5.000000e-01 : f32
    %157 = vector.broadcast %cst_87 : f32 to vector<32x256xf32>
    %158 = arith.mulf %139, %157 : vector<32x256xf32>
    %159 = arith.addf %158, %156 : vector<32x256xf32>
    %cst_88 = arith.constant 1.000000e+00 : f32
    %160 = vector.broadcast %cst_88 : f32 to vector<32x256xf32>
    %161 = arith.cmpf oge, %159, %160 : vector<32x256xf32>
    %cst_89 = arith.constant 0.000000e+00 : f32
    %162 = vector.broadcast %cst_89 : f32 to vector<32x256xf32>
    %163 = arith.select %161, %162, %159 : vector<32x256xi1>, vector<32x256xf32>
    %164 = arith.extui %161 : vector<32x256xi1> to vector<32x256xi32>
    %165 = arith.sitofp %164 : vector<32x256xi32> to vector<32x256xf32>
    %166 = arith.truncf %165 : vector<32x256xf32> to vector<32x256xbf16>
    %cst_90 = arith.constant dense<0.000000e+00> : vector<32x128xf32>
    %167 = tpu.matmul %166, %31, %cst_90 {dimension_numbers = #tpu.dot_dimension_numbers<[1], [0], [0], [1], [0, 0, 1, 1], [], []>} : vector<32x256xbf16>, vector<256x128xbf16>, vector<32x128xf32> -> vector<32x128xf32>
    %168 = vector.broadcast %32 : vector<1x128xf32> to vector<32x128xf32>
    %169 = arith.addf %167, %168 : vector<32x128xf32>
    %cst_91 = arith.constant 5.000000e-01 : f32
    %170 = vector.broadcast %cst_91 : f32 to vector<32x128xf32>
    %171 = arith.mulf %152, %170 : vector<32x128xf32>
    %172 = arith.addf %171, %169 : vector<32x128xf32>
    %cst_92 = arith.constant 1.000000e+00 : f32
    %173 = vector.broadcast %cst_92 : f32 to vector<32x128xf32>
    %174 = arith.cmpf oge, %172, %173 : vector<32x128xf32>
    %cst_93 = arith.constant 0.000000e+00 : f32
    %175 = vector.broadcast %cst_93 : f32 to vector<32x128xf32>
    %176 = arith.select %174, %175, %172 : vector<32x128xi1>, vector<32x128xf32>
    %177 = arith.extui %174 : vector<32x128xi1> to vector<32x128xi32>
    %178 = arith.sitofp %177 : vector<32x128xi32> to vector<32x128xf32>
    %179 = arith.addf %155, %178 : vector<32x128xf32>
    %c192_94 = arith.constant 192 : index
    %c0_95 = arith.constant 0 : index
    %180 = vector.load %arg8[%c192_94, %c0_95] : memref<256x256xf32, #tpu.memory_space<vmem>>, vector<32x256xf32>
    %cst_96 = arith.constant 5.000000e-01 : f32
    %181 = vector.broadcast %cst_96 : f32 to vector<32x256xf32>
    %182 = arith.mulf %163, %181 : vector<32x256xf32>
    %183 = arith.addf %182, %180 : vector<32x256xf32>
    %cst_97 = arith.constant 1.000000e+00 : f32
    %184 = vector.broadcast %cst_97 : f32 to vector<32x256xf32>
    %185 = arith.cmpf oge, %183, %184 : vector<32x256xf32>
    %cst_98 = arith.constant 0.000000e+00 : f32
    %186 = vector.broadcast %cst_98 : f32 to vector<32x256xf32>
    %187 = arith.select %185, %186, %183 : vector<32x256xi1>, vector<32x256xf32>
    %188 = arith.extui %185 : vector<32x256xi1> to vector<32x256xi32>
    %189 = arith.sitofp %188 : vector<32x256xi32> to vector<32x256xf32>
    %190 = arith.truncf %189 : vector<32x256xf32> to vector<32x256xbf16>
    %cst_99 = arith.constant dense<0.000000e+00> : vector<32x128xf32>
    %191 = tpu.matmul %190, %31, %cst_99 {dimension_numbers = #tpu.dot_dimension_numbers<[1], [0], [0], [1], [0, 0, 1, 1], [], []>} : vector<32x256xbf16>, vector<256x128xbf16>, vector<32x128xf32> -> vector<32x128xf32>
    %192 = vector.broadcast %32 : vector<1x128xf32> to vector<32x128xf32>
    %193 = arith.addf %191, %192 : vector<32x128xf32>
    %cst_100 = arith.constant 5.000000e-01 : f32
    %194 = vector.broadcast %cst_100 : f32 to vector<32x128xf32>
    %195 = arith.mulf %176, %194 : vector<32x128xf32>
    %196 = arith.addf %195, %193 : vector<32x128xf32>
    %cst_101 = arith.constant 1.000000e+00 : f32
    %197 = vector.broadcast %cst_101 : f32 to vector<32x128xf32>
    %198 = arith.cmpf oge, %196, %197 : vector<32x128xf32>
    %cst_102 = arith.constant 0.000000e+00 : f32
    %199 = vector.broadcast %cst_102 : f32 to vector<32x128xf32>
    %200 = arith.select %198, %199, %196 : vector<32x128xi1>, vector<32x128xf32>
    %201 = arith.extui %198 : vector<32x128xi1> to vector<32x128xi32>
    %202 = arith.sitofp %201 : vector<32x128xi32> to vector<32x128xf32>
    %203 = arith.addf %179, %202 : vector<32x128xf32>
    %c224_103 = arith.constant 224 : index
    %c0_104 = arith.constant 0 : index
    %204 = vector.load %arg8[%c224_103, %c0_104] : memref<256x256xf32, #tpu.memory_space<vmem>>, vector<32x256xf32>
    %cst_105 = arith.constant 5.000000e-01 : f32
    %205 = vector.broadcast %cst_105 : f32 to vector<32x256xf32>
    %206 = arith.mulf %187, %205 : vector<32x256xf32>
    %207 = arith.addf %206, %204 : vector<32x256xf32>
    %cst_106 = arith.constant 1.000000e+00 : f32
    %208 = vector.broadcast %cst_106 : f32 to vector<32x256xf32>
    %209 = arith.cmpf oge, %207, %208 : vector<32x256xf32>
    %210 = arith.extui %209 : vector<32x256xi1> to vector<32x256xi32>
    %211 = arith.sitofp %210 : vector<32x256xi32> to vector<32x256xf32>
    %212 = arith.truncf %211 : vector<32x256xf32> to vector<32x256xbf16>
    %cst_107 = arith.constant dense<0.000000e+00> : vector<32x128xf32>
    %213 = tpu.matmul %212, %31, %cst_107 {dimension_numbers = #tpu.dot_dimension_numbers<[1], [0], [0], [1], [0, 0, 1, 1], [], []>} : vector<32x256xbf16>, vector<256x128xbf16>, vector<32x128xf32> -> vector<32x128xf32>
    %214 = vector.broadcast %32 : vector<1x128xf32> to vector<32x128xf32>
    %215 = arith.addf %213, %214 : vector<32x128xf32>
    %cst_108 = arith.constant 5.000000e-01 : f32
    %216 = vector.broadcast %cst_108 : f32 to vector<32x128xf32>
    %217 = arith.mulf %200, %216 : vector<32x128xf32>
    %218 = arith.addf %217, %215 : vector<32x128xf32>
    %cst_109 = arith.constant 1.000000e+00 : f32
    %219 = vector.broadcast %cst_109 : f32 to vector<32x128xf32>
    %220 = arith.cmpf oge, %218, %219 : vector<32x128xf32>
    %221 = arith.extui %220 : vector<32x128xi1> to vector<32x128xi32>
    %222 = arith.sitofp %221 : vector<32x128xi32> to vector<32x128xf32>
    %223 = arith.addf %203, %222 : vector<32x128xf32>
    %cst_110 = arith.constant 1.250000e-01 : f32
    %224 = vector.broadcast %cst_110 : f32 to vector<32x128xf32>
    %225 = arith.mulf %223, %224 : vector<32x128xf32>
    %c0_111 = arith.constant 0 : index
    %c0_112 = arith.constant 0 : index
    %226 = vector.load %arg6[%c0_111, %c0_112] : memref<32x128xf32, #tpu.memory_space<vmem>>, vector<32x128xf32>
    tpu.vector_store %arg6[%c0_111, %c0_112], %225 {strides = array<i32>} : memref<32x128xf32, #tpu.memory_space<vmem>>, vector<32x128xf32>,
    return
  }
  func.func @transform_0(%arg0: i32) -> (i32, i32, i32) {
    %c0_i32 = arith.constant 0 : i32
    %c0_i32_0 = arith.constant 0 : i32
    %c0_i32_1 = arith.constant 0 : i32
    return %c0_i32, %arg0, %c0_i32_0 : i32, i32, i32
  }
  func.func @transform_1(%arg0: i32) -> (i32, i32) {
    %c0_i32 = arith.constant 0 : i32
    %c0_i32_0 = arith.constant 0 : i32
    %c0_i32_1 = arith.constant 0 : i32
    return %c0_i32, %c0_i32_0 : i32, i32
  }
  func.func @transform_2(%arg0: i32) -> (i32, i32) {
    %c0_i32 = arith.constant 0 : i32
    %c0_i32_0 = arith.constant 0 : i32
    %c0_i32_1 = arith.constant 0 : i32
    return %c0_i32, %c0_i32_0 : i32, i32
  }
  func.func @transform_3(%arg0: i32) -> (i32, i32) {
    %c0_i32 = arith.constant 0 : i32
    %c0_i32_0 = arith.constant 0 : i32
    %c0_i32_1 = arith.constant 0 : i32
    return %c0_i32, %c0_i32_0 : i32, i32
  }
  func.func @transform_4(%arg0: i32) -> (i32, i32) {
    %c0_i32 = arith.constant 0 : i32
    %c0_i32_0 = arith.constant 0 : i32
    %c0_i32_1 = arith.constant 0 : i32
    return %c0_i32, %c0_i32_0 : i32, i32
  }
  func.func @transform_5(%arg0: i32) -> (i32, i32) {
    %c0_i32 = arith.constant 0 : i32
    %c0_i32_0 = arith.constant 0 : i32
    return %arg0, %c0_i32 : i32, i32
  }
}

</mosaic_0001>

<bundles_post_ra>
// kernel: tpu_custom_call.1
= control target key start
LH: loop header
LB: loop body
LE: loop exit
PB: predicated region body
PF: predicated region fallthrough
CT: control target
= control target key end

     0   :  { %10 = vsyncpa [#allocation5], 0  ;;  %s7346_s0 = inlined_call_operand.hbm [shape: bf16[8,32,784], index: 0, kind: input, shape index: {}]   ;;  %s7347_s1 = inlined_call_operand.hbm [shape: bf16[784,256], index: 1, kind: input, shape index: {}]   ;;  %s7348_s2 = inlined_call_operand.hbm [shape: f32[1,256], index: 2, kind: input, shape index: {}]   ;;  %s7349_s3 = inlined_call_operand.hbm [shape: bf16[256,128], index: 3, kind: input, shape index: {}]   ;;  %s7350_s4 = inlined_call_operand.vmem [shape: f32[1,128], index: 4, kind: input, shape index: {}]   ;;  %s7351_s5 = inlined_call_operand.hbm [shape: f32[32,128], index: 5, kind: output, shape index: {}]  }
   0x1   :  { %11 = vsyncpa [#allocation8], 0 }
   0x2   :  { %12 = vsyncpa [#allocation11], 0  ;;  %s31_s20 = sshll.u32 %s7347_s1, 4  ;;  %s32_s20 = int_to_ptr.hbm [resolvable:$true] %s31_s20 }
   0x3   :  { %13 = vsyncpa [#allocation6], 0  ;;  %s5604_s21 = smov [#allocation7]   ;;  %s18_s25 = sshll.u32 %s7346_s0, 4  ;;  %s19_s25 = int_to_ptr.hbm [resolvable:$true] %s18_s25 }
   0x4   :  { %s33_s22 = sshll.u32 %s5604_s21, 4  ;;  %s5605_s26 = smov 128   ;;  %s34_s22 = int_to_ptr.vmem [resolvable:$true] %s33_s22 }
   0x5   :  { %s5606_s27 = smov 8   ;;  %s5607_s28 = smov [#allocation4]  }
   0x6   :  { %39 = dma.hbm_to_vmem [thread:$0]  %s32_s20, 12544, %s34_s22, [#allocation8], %s5605_s26, %s5605_s26, %s5606_s27  }
   0x7   :  { %s20_s29 = sshll.u32 %s5607_s28, 4  ;;  %s5608_s1 = smov 448   ;;  %s21_s29 = int_to_ptr.vmem [resolvable:$true] %s20_s29 }
   0x8   :  { %s5609_s30 = smov 28   ;;  %s45_s8 = sshll.u32 %s7348_s2, 4  ;;  %s46_s8 = int_to_ptr.hbm [resolvable:$true] %s45_s8 }
   0x9   :  { %26 = dma.hbm_to_vmem [thread:$0]  %s19_s25, 14336, %s21_s29, [#allocation5], %s5608_s1, %s5608_s1, %s5609_s30  }
   0xa   :  { %s5610_s9 = smov [#allocation9]   ;;  %s55_s12 = sshll.u32 %s7349_s3, 4  ;;  %s56_s12 = int_to_ptr.hbm [resolvable:$true] %s55_s12 }
   0xb   :  { %s47_s0 = sshll.u32 %s5610_s9, 4  ;;  %s5611_s13 = smov [#allocation10]   ;;  %s48_s0 = int_to_ptr.vmem [resolvable:$true] %s47_s0 }
   0xc   :  { %50 = dma.hbm_to_vmem [thread:$0]  %s46_s8, 32, %s48_s0, [#allocation8]  }
   0xd   :  { %s57_s14 = sshll.u32 %s5611_s13, 4  ;;  %s5612_s15 = smov 64   ;;  %s58_s14 = int_to_ptr.vmem [resolvable:$true] %s57_s14 }
   0xe   :  { %s5613_s16 = smov 4  }
   0xf   :  { %63 = dma.hbm_to_vmem [thread:$0]  %s56_s12, 2048, %s58_s14, [#allocation11], %s5612_s15, %s5612_s15, %s5613_s16  }
  0x10   :  { %5596 = dma.done.wait [#allocation5], 14336  }
  0x11   :  { %5597 = vsyncadd [#allocation5], 4294952960 }
  0x12   :  { %5598 = dma.done.wait [#allocation8], 12576  }
  0x13   :  { %5599 = vsyncadd [#allocation8], 4294954720 }
  0x14   :  { %5600 = dma.done.wait [#allocation11], 2048  }
  0x15   :  { %5601 = vsyncadd [#allocation11], 4294965248  ;;  %v4639_v0 = vld [vmem:[#allocation7 + $0x70] sm:$0xf]  ;;  %v5356_v1 = vld [vmem:[#allocation7 + $0x74] sm:$0xf0] }
  0x16   :  { %v4703_v2 = vld [vmem:[#allocation7 + $0xf0] sm:$0xf]  ;;  %v4640_v3 = vor.u32 %v5356_v1, %v4639_v0  ;;  %v5372_v4 = vld [vmem:[#allocation7 + $0xf4] sm:$0xf0]  ;;  %v4631_v11 = vld [vmem:[#allocation7 + $0x60] sm:$0xf] }
  0x17   :  { %v4767_v5 = vld [vmem:[#allocation7 + $0x170] sm:$0xf]  ;;  %v5388_v6 = vld [vmem:[#allocation7 + $0x174] sm:$0xf0]  ;;  %v4704_v7 = vor.u32 %v5372_v4, %v4703_v2  ;;  %v5354_v13 = vld [vmem:[#allocation7 + $0x64] sm:$0xf0] }
  0x18   :  { %v4768_v8 = vor.u32 %v5388_v6, %v4767_v5  ;;  %v4831_v9 = vld [vmem:[#allocation7 + $0x1f0] sm:$0xf]  ;;  %v5404_v10 = vld [vmem:[#allocation7 + $0x1f4] sm:$0xf0]  ;;  %1678 = vmatpush.bf16.msra.mxu0 %v4640_v3  ;;  %v4695_v14 = vld [vmem:[#allocation7 + $0xe0] sm:$0xf]  ;;  %v4632_v16 = vor.u32 %v5354_v13, %v4631_v11 }
  0x19   :  { %v4832_v12 = vor.u32 %v5404_v10, %v4831_v9  ;;  %v5370_v15 = vld [vmem:[#allocation7 + $0xe4] sm:$0xf0]  ;;  %1767 = vmatpush.bf16.msra.mxu1 %v4704_v7  ;;  %v4759_v18 = vld [vmem:[#allocation7 + $0x160] sm:$0xf]  ;;  %v4623_v23 = vld [vmem:[#allocation7 + $0x50] sm:$0xf] }
  0x1a   :  { %1856 = vmatpush.bf16.msra.mxu2 %v4768_v8  ;;  %v4696_v17 = vor.u32 %v5370_v15, %v4695_v14  ;;  %v5386_v19 = vld [vmem:[#allocation7 + $0x164] sm:$0xf0]  ;;  %v4823_v20 = vld [vmem:[#allocation7 + $0x1e0] sm:$0xf]  ;;  %v5352_v24 = vld [vmem:[#allocation7 + $0x54] sm:$0xf0] }
  0x1b   :  { %1945 = vmatpush.bf16.msra.mxu3 %v4832_v12  ;;  %v4760_v21 = vor.u32 %v5386_v19, %v4759_v18  ;;  %v5402_v22 = vld [vmem:[#allocation7 + $0x1e4] sm:$0xf0]  ;;  %v4687_v26 = vld [vmem:[#allocation7 + $0xd0] sm:$0xf]  ;;  %v5368_v27 = vld [vmem:[#allocation7 + $0xd4] sm:$0xf0]  ;;  %v4624_v29 = vor.u32 %v5352_v24, %v4623_v23 }
  0x1c   :  { %v4824_v25 = vor.u32 %v5402_v22, %v4823_v20  ;;  %v4751_v28 = vld [vmem:[#allocation7 + $0x150] sm:$0xf]  ;;  %1679 = vmatpush.bf16.msra.mxu0 %v4632_v16  ;;  %v5384_v30 = vld [vmem:[#allocation7 + $0x154] sm:$0xf0]  ;;  %v4688_v33 = vor.u32 %v5368_v27, %v4687_v26  ;;  %v4615_v35 = vld [vmem:[#allocation7 + $0x40] sm:$0xf] }
  0x1d   :  { %v4815_v31 = vld [vmem:[#allocation7 + $0x1d0] sm:$0xf]  ;;  %v5400_v32 = vld [vmem:[#allocation7 + $0x1d4] sm:$0xf0]  ;;  %1768 = vmatpush.bf16.msra.mxu1 %v4696_v17  ;;  %v4752_v34 = vor.u32 %v5384_v30, %v4751_v28  ;;  %v5350_v36 = vld [vmem:[#allocation7 + $0x44] sm:$0xf0] }
  0x1e   :  { %1857 = vmatpush.bf16.msra.mxu2 %v4760_v21  ;;  %v4679_v37 = vld [vmem:[#allocation7 + $0xc0] sm:$0xf]  ;;  %v4816_v38 = vor.u32 %v5400_v32, %v4815_v31  ;;  %v5366_v39 = vld [vmem:[#allocation7 + $0xc4] sm:$0xf0]  ;;  %v4616_v44 = vor.u32 %v5350_v36, %v4615_v35  ;;  %v4607_v47 = vld [vmem:[#allocation7 + $0x30] sm:$0xf] }
  0x1f   :  { %1946 = vmatpush.bf16.msra.mxu3 %v4824_v25  ;;  %v4743_v40 = vld [vmem:[#allocation7 + $0x140] sm:$0xf]  ;;  %v5382_v41 = vld [vmem:[#allocation7 + $0x144] sm:$0xf0]  ;;  %v4680_v45 = vor.u32 %v5366_v39, %v4679_v37  ;;  %v5348_v48 = vld [vmem:[#allocation7 + $0x34] sm:$0xf0] }
  0x20   :  { %v4807_v42 = vld [vmem:[#allocation7 + $0x1c0] sm:$0xf]  ;;  %v5398_v43 = vld [vmem:[#allocation7 + $0x1c4] sm:$0xf0]  ;;  %1680 = vmatpush.bf16.msra.mxu0 %v4624_v29  ;;  %v4744_v46 = vor.u32 %v5382_v41, %v4743_v40  ;;  %v4671_v49 = vld [vmem:[#allocation7 + $0xb0] sm:$0xf]  ;;  %v4608_v56 = vor.u32 %v5348_v48, %v4607_v47 }
  0x21   :  { %1769 = vmatpush.bf16.msra.mxu1 %v4688_v33  ;;  %v4808_v50 = vor.u32 %v5398_v43, %v4807_v42  ;;  %v5364_v51 = vld [vmem:[#allocation7 + $0xb4] sm:$0xf0]  ;;  %v4735_v52 = vld [vmem:[#allocation7 + $0x130] sm:$0xf]  ;;  %v4599_v59 = vld [vmem:[#allocation7 + $0x20] sm:$0xf] }
  0x22   :  { %1858 = vmatpush.bf16.msra.mxu2 %v4752_v34  ;;  %v5380_v53 = vld [vmem:[#allocation7 + $0x134] sm:$0xf0]  ;;  %v4799_v54 = vld [vmem:[#allocation7 + $0x1b0] sm:$0xf]  ;;  %v4672_v57 = vor.u32 %v5364_v51, %v4671_v49  ;;  %v5346_v60 = vld [vmem:[#allocation7 + $0x24] sm:$0xf0] }
  0x23   :  { %1947 = vmatpush.bf16.msra.mxu3 %v4816_v38  ;;  %v5396_v55 = vld [vmem:[#allocation7 + $0x1b4] sm:$0xf0]  ;;  %v4736_v58 = vor.u32 %v5380_v53, %v4735_v52  ;;  %v4663_v61 = vld [vmem:[#allocation7 + $0xa0] sm:$0xf]  ;;  %v5362_v63 = vld [vmem:[#allocation7 + $0xa4] sm:$0xf0]  ;;  %v4600_v5 = vor.u32 %v5346_v60, %v4599_v59 }
  0x24   :  { %1681 = vmatpush.bf16.msra.mxu0 %v4616_v44  ;;  %v4800_v62 = vor.u32 %v5396_v55, %v4799_v54  ;;  %v4727_v0 = vld [vmem:[#allocation7 + $0x120] sm:$0xf]  ;;  %v5378_v1 = vld [vmem:[#allocation7 + $0x124] sm:$0xf0]  ;;  %v4591_v4 = vld [vmem:[#allocation7 + $0x10] sm:$0xf]  ;;  %v4664_v9 = vor.u32 %v5362_v63, %v4663_v61 }
  0x25   :  { %1770 = vmatpush.bf16.msra.mxu1 %v4680_v45  ;;  %v4791_v2 = vld [vmem:[#allocation7 + $0x1a0] sm:$0xf]  ;;  %v5394_v3 = vld [vmem:[#allocation7 + $0x1a4] sm:$0xf0]  ;;  %v5344_v6 = vld [vmem:[#allocation7 + $0x14] sm:$0xf0]  ;;  %v4728_v10 = vor.u32 %v5378_v1, %v4727_v0 }
  0x26   :  { %1859 = vmatpush.bf16.msra.mxu2 %v4744_v46  ;;  %v4655_v7 = vld [vmem:[#allocation7 + $0x90] sm:$0xf]  ;;  %v5360_v8 = vld [vmem:[#allocation7 + $0x94] sm:$0xf0]  ;;  %v4792_v14 = vor.u32 %v5394_v3, %v4791_v2  ;;  %v83_v16 = vld [vmem:[#allocation4] sm:$0xff]  ;;  %v4592_v22 = vor.u32 %v5344_v6, %v4591_v4  ;;  %vm102_vm0 = vcmask 125952  }
  0x27   :  { %1948 = vmatpush.bf16.msra.mxu3 %v4808_v50  ;;  %v4719_v11 = vld [vmem:[#allocation7 + $0x110] sm:$0xf]  ;;  %v5376_v12 = vld [vmem:[#allocation7 + $0x114] sm:$0xf0]  ;;  %v87_v17 = vld [vmem:[#allocation4 + $0x1c] sm:$0xff]  ;;  %99 = vst [vmem:[#allocation2] sm:$0xff] %v83_v16  ;;  %v4656_v27 = vor.u32 %v5360_v8, %v4655_v7 }
  0x28   :  { %1682 = vmatpush.bf16.msra.mxu0 %v4608_v56  ;;  %v4783_v13 = vld [vmem:[#allocation7 + $0x190] sm:$0xf]  ;;  %v5392_v15 = vld [vmem:[#allocation7 + $0x194] sm:$0xf0]  ;;  %v4583_v18 = vld [vmem:[#allocation7] sm:$0xf]  ;;  %v4720_v28 = vor.u32 %v5376_v12, %v4719_v11 }
  0x29   :  { %1771 = vmatpush.bf16.msra.mxu1 %v4672_v57  ;;  %v5342_v19 = vld [vmem:[#allocation7 + $0x4] sm:$0xf0]  ;;  %v4647_v23 = vld [vmem:[#allocation7 + $0x80] sm:$0xf]  ;;  %104 = vst [vmem:[#allocation2 + $0x1c] sm:$0xff] %v87_v17  ;;  %v91_v26 = vld [vmem:[#allocation4 + $0x38] sm:$0xff]  ;;  %v4784_v32 = vor.u32 %v5392_v15, %v4783_v13 }
  0x2a   :  { %1860 = vmatpush.bf16.msra.mxu2 %v4736_v58  ;;  %v84_v20 = vld [vmem:[#allocation4 + $0x8] sm:$0xff]  ;;  %v4711_v25 = vld [vmem:[#allocation7 + $0x100] sm:$0xf]  ;;  %v95_v31 = vld [vmem:[#allocation4 + $0x54] sm:$0xff]  ;;  %108 = vst [vmem:[#allocation2 + $0x38] sm:$0xff] %v91_v26  ;;  %v4584_v38 = vor.u32 %v5342_v19, %v4583_v18  ;;  %vm7435_vm1 = vcmask 130048  }
  0x2b   :  { %1949 = vmatpush.bf16.msra.mxu3 %v4800_v62  ;;  %v88_v21 = vld [vmem:[#allocation4 + $0x24] sm:$0xff]  ;;  %v4775_v30 = vld [vmem:[#allocation7 + $0x180] sm:$0xf]  ;;  %100 = vst [vmem:[#allocation2 + $0x8] sm:$0xff] %v84_v20  ;;  %v4895_v34 = vld [vmem:[#allocation7 + $0x270] sm:$0xf] }
  0x2c   :  { %1683 = vmatpush.bf16.msra.mxu0 %v4600_v5  ;;  %v5358_v24 = vld [vmem:[#allocation7 + $0x84] sm:$0xf0]  ;;  %105 = vst [vmem:[#allocation2 + $0x24] sm:$0xff] %v88_v21  ;;  %v92_v35 = vld [vmem:[#allocation4 + $0x40] sm:$0xff]  ;;  %v5420_v36 = vld [vmem:[#allocation7 + $0x274] sm:$0xf0] }
  0x2d   :  { %1772 = vmatpush.bf16.msra.mxu1 %v4664_v9  ;;  %v5374_v29 = vld [vmem:[#allocation7 + $0x104] sm:$0xf0]  ;;  %v96_v37 = vld [vmem:[#allocation4 + $0x5c] sm:$0xff]  ;;  %v4959_v39 = vld [vmem:[#allocation7 + $0x2f0] sm:$0xf]  ;;  %112 = vst [vmem:[#allocation2 + $0x54] sm:$0xff] %v95_v31  ;;  %v4648_v42 = vor.u32 %v5358_v24, %v4647_v23  ;;  %v4896_v48 = vor.u32 %v5420_v36, %v4895_v34 }
  0x2e   :  { %1861 = vmatpush.bf16.msra.mxu2 %v4728_v10  ;;  %v5390_v33 = vld [vmem:[#allocation7 + $0x184] sm:$0xf0]  ;;  %v5436_v40 = vld [vmem:[#allocation7 + $0x2f4] sm:$0xf0]  ;;  %v117_v41 = vld [vmem:[#allocation4 + $0x70] sm:$0xff]  ;;  %v4712_v43 = vor.u32 %v5374_v29, %v4711_v25  ;;  %109 = vst [vmem:[#allocation2 + $0x40] sm:$0xff] %v92_v35 }
  0x2f   :  { %1950 = vmatpush.bf16.msra.mxu3 %v4792_v14  ;;  %v121_v44 = vld [vmem:[#allocation4 + $0x8c] sm:$0xff]  ;;  %v4776_v45 = vor.u32 %v5390_v33, %v4775_v30  ;;  %v4135_v46 = vld [vmem:[#allocation2] sm:$0xf]  ;;  %v5229_v47 = vld [vmem:[#allocation2 + $0x4] sm:$0xf]  ;;  %113 = vst [vmem:[#allocation2 + $0x5c] sm:$0xff] %v96_v37  ;;  %v4960_v52 = vor.u32 %v5436_v40, %v4959_v39 }
  0x30   :  { %1684 = vmatpush.bf16.msra.mxu0 %v4592_v22  ;;  %v118_v49 = vld [vmem:[#allocation4 + $0x78] sm:$0xff]  ;;  %v4137_v51 = vld [vmem:[#allocation2 + $0x1c] sm:$0xf0]  ;;  %133 = vst [vmem:[#allocation2 + $0x70] sm:$0xff] %v117_v41  ;;  %v5418_v63 = vld [vmem:[#allocation7 + $0x264] sm:$0xf0] }
  0x31   :  { %1773 = vmatpush.bf16.msra.mxu1 %v4656_v27  ;;  %v5232_v50 = vld [vmem:[#allocation2 + $0x18] sm:$0xf0]  ;;  %v122_v53 = vld [vmem:[#allocation4 + $0x94] sm:$0xff]  ;;  %v5664_v55 = vor.u32 %v5229_v47, %v4137_v51  ;;  %137 = vst [vmem:[#allocation2 + $0x8c] sm:$0xff] %v121_v44  ;;  %v4887_v62 = vld [vmem:[#allocation7 + $0x260] sm:$0xf] }
  0x32   :  { %1862 = vmatpush.bf16.msra.mxu2 %v4720_v28  ;;  %v5662_v54 = vor.u32 %v5232_v50, %v4135_v46  ;;  %v4143_v56 = vld [vmem:[#allocation2 + $0x8] sm:$0xf]  ;;  %v5230_v57 = vld [vmem:[#allocation2 + $0xc] sm:$0xf]  ;;  %134 = vst [vmem:[#allocation2 + $0x78] sm:$0xff] %v118_v49  ;;  %v4888_v0 = vor.u32 %v5418_v63, %v4887_v62  ;;  %v126_v6 = vld [vmem:[#allocation4 + $0xb0] sm:$0xff] }
  0x33   :  { %1951 = vmatpush.bf16.msra.mxu3 %v4784_v32  ;;  %v5233_v58 = vld [vmem:[#allocation2 + $0x20] sm:$0xf0]  ;;  %v4145_v59 = vld [vmem:[#allocation2 + $0x24] sm:$0xf0]  ;;  %138 = vst [vmem:[#allocation2 + $0x94] sm:$0xff] %v122_v53  ;;  %v130_v7 = vld [vmem:[#allocation4 + $0xcc] sm:$0xff] }
  0x34   :  { %1685 = vmatpush.bf16.msra.mxu0 %v4584_v38  ;;  %v5666_v60 = vor.u32 %v5233_v58, %v4143_v56  ;;  %v5668_v61 = vor.u32 %v5230_v57, %v4145_v59  ;;  %v4951_v1 = vld [vmem:[#allocation7 + $0x2e0] sm:$0xf]  ;;  %v5434_v2 = vld [vmem:[#allocation7 + $0x2e4] sm:$0xf0]  ;;  %v4163_v8 = vld [vmem:[#allocation2 + $0x38] sm:$0xf] }
  0x35   :  { %1774 = vmatpush.bf16.msra.mxu1 %v4648_v42  ;;  %v4952_v3 = vor.u32 %v5434_v2, %v4951_v1  ;;  %v125_v4 = vld [vmem:[#allocation4 + $0xa8] sm:$0xff]  ;;  %142 = vst [vmem:[#allocation2 + $0xb0] sm:$0xff] %v126_v6  ;;  %v5239_v9 = vld [vmem:[#allocation2 + $0x50] sm:$0xf0]  ;;  %v5236_v10 = vld [vmem:[#allocation2 + $0x3c] sm:$0xf] }
  0x36   :  { %1863 = vmatpush.bf16.msra.mxu2 %v4712_v43  ;;  %v129_v5 = vld [vmem:[#allocation4 + $0xc4] sm:$0xff]  ;;  %141 = vst [vmem:[#allocation2 + $0xa8] sm:$0xff] %v125_v4  ;;  %v4165_v11 = vld [vmem:[#allocation2 + $0x54] sm:$0xf0]  ;;  %v4171_v12 = vld [vmem:[#allocation2 + $0x40] sm:$0xf]  ;;  %v5674_v16 = vor.u32 %v5239_v9, %v4163_v8 }
  0x37   :  { %1952 = vmatpush.bf16.msra.mxu3 %v4776_v45  ;;  %1686 = vmatmul.bf16.vlgmr.msra.gmra.mxu0 %v5662_v54  ;;  %145 = vst [vmem:[#allocation2 + $0xc4] sm:$0xff] %v129_v5  ;;  %v5240_v13 = vld [vmem:[#allocation2 + $0x58] sm:$0xf0]  ;;  %v5237_v14 = vld [vmem:[#allocation2 + $0x44] sm:$0xf]  ;;  %v5676_v17 = vor.u32 %v5236_v10, %v4165_v11  ;;  %v151_v22 = vld [vmem:[#allocation4 + $0xe8] sm:$0xff] }
  0x38   :  { %2034 = vmatpush.bf16.msrb.mxu0 %v4896_v48  ;;  %1775 = vmatmul.bf16.vlgmr.msra.gmra.mxu1 %v5664_v55  ;;  %146 = vst [vmem:[#allocation2 + $0xcc] sm:$0xff] %v130_v7  ;;  %v4173_v15 = vld [vmem:[#allocation2 + $0x5c] sm:$0xf0]  ;;  %v5678_v18 = vor.u32 %v5240_v13, %v4171_v12  ;;  %v155_v23 = vld [vmem:[#allocation4 + $0x104] sm:$0xff]  ;;  %v4191_v24 = vld [vmem:[#allocation2 + $0x70] sm:$0xf] }
  0x39   :  { %2123 = vmatpush.bf16.msrb.mxu1 %v4960_v52  ;;  %1864 = vmatmul.bf16.vlgmr.msra.gmra.mxu2 %v5666_v60  ;;  %v5680_v19 = vor.u32 %v5237_v14, %v4173_v15  ;;  %v150_v20 = vld [vmem:[#allocation4 + $0xe0] sm:$0xff]  ;;  %167 = vst [vmem:[#allocation2 + $0xe8] sm:$0xff] %v151_v22  ;;  %v5246_v25 = vld [vmem:[#allocation2 + $0x88] sm:$0xf0]  ;;  %v5243_v26 = vld [vmem:[#allocation2 + $0x74] sm:$0xf] }
  0x3a   :  { %1953 = vmatmul.bf16.vlgmr.msra.gmra.mxu3 %v5668_v61  ;;  %v154_v21 = vld [vmem:[#allocation4 + $0xfc] sm:$0xff]  ;;  %166 = vst [vmem:[#allocation2 + $0xe0] sm:$0xff] %v150_v20  ;;  %v4193_v27 = vld [vmem:[#allocation2 + $0x8c] sm:$0xf0]  ;;  %v4199_v28 = vld [vmem:[#allocation2 + $0x78] sm:$0xf]  ;;  %v5686_v32 = vor.u32 %v5246_v25, %v4191_v24 }
  0x3b   :  { %170 = vst [vmem:[#allocation2 + $0xfc] sm:$0xff] %v154_v21  ;;  %v5247_v29 = vld [vmem:[#allocation2 + $0x90] sm:$0xf0]  ;;  %v5244_v30 = vld [vmem:[#allocation2 + $0x7c] sm:$0xf]  ;;  %v5688_v33 = vor.u32 %v5243_v26, %v4193_v27  ;;  %v159_v44 = vld [vmem:[#allocation4 + $0x120] sm:$0xff] }
  0x3c   :  { %2035 = vmatpush.bf16.msrb.mxu0 %v4888_v0  ;;  %171 = vst [vmem:[#allocation2 + $0x104] sm:$0xff] %v155_v23  ;;  %v4201_v31 = vld [vmem:[#allocation2 + $0x94] sm:$0xf0]  ;;  %v5690_v34 = vor.u32 %v5247_v29, %v4199_v28  ;;  %v4879_v36 = vld [vmem:[#allocation7 + $0x250] sm:$0xf]  ;;  %v163_v45 = vld [vmem:[#allocation4 + $0x13c] sm:$0xff] }
  0x3d   :  { %2124 = vmatpush.bf16.msrb.mxu1 %v4952_v3  ;;  %v5692_v35 = vor.u32 %v5244_v30, %v4201_v31  ;;  %v5416_v37 = vld [vmem:[#allocation7 + $0x254] sm:$0xf0]  ;;  %v4943_v39 = vld [vmem:[#allocation7 + $0x2d0] sm:$0xf]  ;;  %175 = vst [vmem:[#allocation2 + $0x120] sm:$0xff] %v159_v44  ;;  %v191_v23 = vld [vmem:[#allocation4 + $0x188] sm:$0xff] }
  0x3e   :  { %v4880_v38 = vor.u32 %v5416_v37, %v4879_v36  ;;  %v5432_v40 = vld [vmem:[#allocation7 + $0x2d4] sm:$0xf0]  ;;  %179 = vst [vmem:[#allocation2 + $0x13c] sm:$0xff] %v163_v45  ;;  %v4219_v46 = vld [vmem:[#allocation2 + $0xa8] sm:$0xf]  ;;  %v183_v62 = vld [vmem:[#allocation4 + $0x150] sm:$0xff] }
  0x3f   :  { %7451 = vst [vmem:[#allocation17_spill] sm:$0xff] %v5692_v35  ;;  %v158_v41 = vld [vmem:[#allocation4 + $0x118] sm:$0xff]  ;;  %v4944_v42 = vor.u32 %v5432_v40, %v4943_v39  ;;  %v5253_v47 = vld [vmem:[#allocation2 + $0xc0] sm:$0xf0]  ;;  %v5250_v48 = vld [vmem:[#allocation2 + $0xac] sm:$0xf] }
  0x40   :  { %v162_v43 = vld [vmem:[#allocation4 + $0x134] sm:$0xff]  ;;  %174 = vst [vmem:[#allocation2 + $0x118] sm:$0xff] %v158_v41  ;;  %2036 = vmatpush.bf16.msrb.mxu0 %v4880_v38  ;;  %v4221_v49 = vld [vmem:[#allocation2 + $0xc4] sm:$0xf0]  ;;  %v4227_v50 = vld [vmem:[#allocation2 + $0xb0] sm:$0xf]  ;;  %v5698_v56 = vor.u32 %v5253_v47, %v4219_v46 }
  0x41   :  { %178 = vst [vmem:[#allocation2 + $0x134] sm:$0xff] %v162_v43  ;;  %2125 = vmatpush.bf16.msrb.mxu1 %v4944_v42  ;;  %v5254_v51 = vld [vmem:[#allocation2 + $0xc8] sm:$0xf0]  ;;  %v5251_v52 = vld [vmem:[#allocation2 + $0xb4] sm:$0xf]  ;;  %v5700_v57 = vor.u32 %v5250_v48, %v4221_v49  ;;  %v184_v0 = vld [vmem:[#allocation4 + $0x158] sm:$0xff] }
  0x42   :  { %v4229_v53 = vld [vmem:[#allocation2 + $0xcc] sm:$0xf0]  ;;  %v5702_v58 = vor.u32 %v5254_v51, %v4227_v50  ;;  %199 = vst [vmem:[#allocation2 + $0x150] sm:$0xff] %v183_v62  ;;  %v188_v1 = vld [vmem:[#allocation4 + $0x174] sm:$0xff]  ;;  %v4247_v2 = vld [vmem:[#allocation2 + $0xe0] sm:$0xf] }
  0x43   :  { %7452 = vst [vmem:[#allocation18_spill] sm:$0xff] %v5700_v57  ;;  %v5704_v59 = vor.u32 %v5251_v52, %v4229_v53  ;;  %v187_v63 = vld [vmem:[#allocation4 + $0x16c] sm:$0xff]  ;;  %v5260_v3 = vld [vmem:[#allocation2 + $0xf8] sm:$0xf0]  ;;  %v5257_v4 = vld [vmem:[#allocation2 + $0xe4] sm:$0xf] }
  0x44   :  { %7453 = vst [vmem:[#allocation19_spill] sm:$0xff] %v5702_v58  ;;  %v4249_v5 = vld [vmem:[#allocation2 + $0xfc] sm:$0xf0]  ;;  %v4255_v6 = vld [vmem:[#allocation2 + $0xe8] sm:$0xf]  ;;  %v5710_v10 = vor.u32 %v5260_v3, %v4247_v2  ;;  %v192_v26 = vld [vmem:[#allocation4 + $0x190] sm:$0xff] }
  0x45   :  { %7454 = vst [vmem:[#allocation20_spill] sm:$0xff] %v5704_v59  ;;  %v5261_v7 = vld [vmem:[#allocation2 + $0x100] sm:$0xf0]  ;;  %v5258_v8 = vld [vmem:[#allocation2 + $0xec] sm:$0xf]  ;;  %v5712_v11 = vor.u32 %v5257_v4, %v4249_v5  ;;  %v220_v45 = vld [vmem:[#allocation4 + $0x1dc] sm:$0xff] }
  0x46   :  { %203 = vst [vmem:[#allocation2 + $0x16c] sm:$0xff] %v187_v63  ;;  %v4257_v9 = vld [vmem:[#allocation2 + $0x104] sm:$0xf0]  ;;  %v5714_v12 = vor.u32 %v5261_v7, %v4255_v6  ;;  %v4871_v14 = vld [vmem:[#allocation7 + $0x240] sm:$0xf]  ;;  %v196_v27 = vld [vmem:[#allocation4 + $0x1ac] sm:$0xff] }
  0x47   :  { %1691 = vmatmul.bf16.gmra.mxu0 %v5674_v16  ;;  %200 = vst [vmem:[#allocation2 + $0x158] sm:$0xff] %v184_v0  ;;  %v5716_v13 = vor.u32 %v5258_v8, %v4257_v9  ;;  %v5414_v15 = vld [vmem:[#allocation7 + $0x244] sm:$0xf0]  ;;  %v4935_v21 = vld [vmem:[#allocation7 + $0x2c0] sm:$0xf]  ;;  %s4118_s20 = sshll.u32 %s7351_s5, 4  ;;  %s4119_s20 = int_to_ptr.hbm [resolvable:$true] %s4118_s20 }
  0x48   :  { %1780 = vmatmul.bf16.gmra.mxu1 %v5676_v17  ;;  %204 = vst [vmem:[#allocation2 + $0x174] sm:$0xff] %v188_v1  ;;  %v4872_v20 = vor.u32 %v5414_v15, %v4871_v14  ;;  %v5430_v22 = vld [vmem:[#allocation7 + $0x2c4] sm:$0xf0]  ;;  %v4275_v28 = vld [vmem:[#allocation2 + $0x118] sm:$0xf]  ;;  %v216_v44 = vld [vmem:[#allocation4 + $0x1c0] sm:$0xff] }
  0x49   :  { %1869 = vmatmul.bf16.gmra.mxu2 %v5678_v18  ;;  %7455 = vst [vmem:[#allocation21_spill] sm:$0xff] %v5712_v11  ;;  %v4936_v24 = vor.u32 %v5430_v22, %v4935_v21  ;;  %v195_v25 = vld [vmem:[#allocation4 + $0x1a4] sm:$0xff]  ;;  %v5267_v29 = vld [vmem:[#allocation2 + $0x130] sm:$0xf0]  ;;  %v5264_v30 = vld [vmem:[#allocation2 + $0x11c] sm:$0xf] }
  0x4a   :  { %1958 = vmatmul.bf16.gmra.mxu3 %v5680_v19  ;;  %7456 = vst [vmem:[#allocation22_spill] sm:$0xff] %v5714_v12  ;;  %2037 = vmatpush.bf16.msrb.mxu0 %v4872_v20  ;;  %v4277_v31 = vld [vmem:[#allocation2 + $0x134] sm:$0xf0]  ;;  %v4283_v36 = vld [vmem:[#allocation2 + $0x120] sm:$0xf]  ;;  %v5722_v40 = vor.u32 %v5267_v29, %v4275_v28  ;;  %v217_v46 = vld [vmem:[#allocation4 + $0x1c8] sm:$0xff] }
  0x4b   :  { %7457 = vst [vmem:[#allocation23_spill] sm:$0xff] %v5716_v13  ;;  %2126 = vmatpush.bf16.msrb.mxu1 %v4936_v24  ;;  %v5268_v37 = vld [vmem:[#allocation2 + $0x138] sm:$0xf0]  ;;  %v5265_v38 = vld [vmem:[#allocation2 + $0x124] sm:$0xf]  ;;  %v5724_v41 = vor.u32 %v5264_v30, %v4277_v31  ;;  %v228_v15 = vld [vmem:[#allocation4 + $0x214] sm:$0xff] }
  0x4c   :  { %207 = vst [vmem:[#allocation2 + $0x188] sm:$0xff] %v191_v23  ;;  %v4285_v39 = vld [vmem:[#allocation2 + $0x13c] sm:$0xf0]  ;;  %v5726_v42 = vor.u32 %v5268_v37, %v4283_v36  ;;  %v221_v47 = vld [vmem:[#allocation4 + $0x1e4] sm:$0xff]  ;;  %v4303_v48 = vld [vmem:[#allocation2 + $0x150] sm:$0xf] }
  0x4d   :  { %211 = vst [vmem:[#allocation2 + $0x1a4] sm:$0xff] %v195_v25  ;;  %v5728_v43 = vor.u32 %v5265_v38, %v4285_v39  ;;  %v5274_v49 = vld [vmem:[#allocation2 + $0x168] sm:$0xf0]  ;;  %v5271_v50 = vld [vmem:[#allocation2 + $0x154] sm:$0xf]  ;;  %v224_v14 = vld [vmem:[#allocation4 + $0x1f8] sm:$0xff] }
  0x4e   :  { %208 = vst [vmem:[#allocation2 + $0x190] sm:$0xff] %v192_v26  ;;  %v4305_v51 = vld [vmem:[#allocation2 + $0x16c] sm:$0xf0]  ;;  %v4311_v52 = vld [vmem:[#allocation2 + $0x158] sm:$0xf]  ;;  %v5734_v0 = vor.u32 %v5274_v49, %v4303_v48  ;;  %v225_v20 = vld [vmem:[#allocation4 + $0x200] sm:$0xff] }
  0x4f   :  { %212 = vst [vmem:[#allocation2 + $0x1ac] sm:$0xff] %v196_v27  ;;  %v5275_v53 = vld [vmem:[#allocation2 + $0x170] sm:$0xf0]  ;;  %v5272_v62 = vld [vmem:[#allocation2 + $0x15c] sm:$0xf]  ;;  %v5736_v1 = vor.u32 %v5271_v50, %v4305_v51  ;;  %v253_v49 = vld [vmem:[#allocation4 + $0x24c] sm:$0xff] }
  0x50   :  { %7458 = vst [vmem:[#allocation24_spill] sm:$0xff] %v5724_v41  ;;  %v4313_v63 = vld [vmem:[#allocation2 + $0x174] sm:$0xf0]  ;;  %v5738_v2 = vor.u32 %v5275_v53, %v4311_v52  ;;  %v4863_v4 = vld [vmem:[#allocation7 + $0x230] sm:$0xf]  ;;  %v229_v21 = vld [vmem:[#allocation4 + $0x21c] sm:$0xff] }
  0x51   :  { %7459 = vst [vmem:[#allocation25_spill] sm:$0xff] %v5726_v42  ;;  %v5740_v3 = vor.u32 %v5272_v62, %v4313_v63  ;;  %v5412_v5 = vld [vmem:[#allocation7 + $0x234] sm:$0xf0]  ;;  %v4927_v7 = vld [vmem:[#allocation7 + $0x2b0] sm:$0xf] }
  0x52   :  { %7460 = vst [vmem:[#allocation26_spill] sm:$0xff] %v5728_v43  ;;  %v4864_v6 = vor.u32 %v5412_v5, %v4863_v4  ;;  %v5428_v8 = vld [vmem:[#allocation7 + $0x2b4] sm:$0xf0]  ;;  %v4967_v37 = vld [vmem:[#allocation7 + $0x300] sm:$0xf]  ;;  %v249_v48 = vld [vmem:[#allocation4 + $0x230] sm:$0xff] }
  0x53   :  { %232 = vst [vmem:[#allocation2 + $0x1c0] sm:$0xff] %v216_v44  ;;  %v4928_v9 = vor.u32 %v5428_v8, %v4927_v7  ;;  %v4331_v22 = vld [vmem:[#allocation2 + $0x188] sm:$0xf]  ;;  %v5278_v24 = vld [vmem:[#allocation2 + $0x18c] sm:$0xf]  ;;  %v250_v50 = vld [vmem:[#allocation4 + $0x238] sm:$0xff] }
  0x54   :  { %236 = vst [vmem:[#allocation2 + $0x1dc] sm:$0xff] %v220_v45  ;;  %2038 = vmatpush.bf16.msrb.mxu0 %v4864_v6  ;;  %v5281_v23 = vld [vmem:[#allocation2 + $0x1a0] sm:$0xf0]  ;;  %v4333_v25 = vld [vmem:[#allocation2 + $0x1a4] sm:$0xf0]  ;;  %v254_v52 = vld [vmem:[#allocation4 + $0x254] sm:$0xff] }
  0x55   :  { %233 = vst [vmem:[#allocation2 + $0x1c8] sm:$0xff] %v217_v46  ;;  %2127 = vmatpush.bf16.msrb.mxu1 %v4928_v9  ;;  %v4339_v26 = vld [vmem:[#allocation2 + $0x190] sm:$0xf]  ;;  %v5279_v28 = vld [vmem:[#allocation2 + $0x194] sm:$0xf]  ;;  %v5746_v30 = vor.u32 %v5281_v23, %v4331_v22  ;;  %v5748_v31 = vor.u32 %v5278_v24, %v4333_v25 }
  0x56   :  { %237 = vst [vmem:[#allocation2 + $0x1e4] sm:$0xff] %v221_v47  ;;  %v5282_v27 = vld [vmem:[#allocation2 + $0x1a8] sm:$0xf0]  ;;  %v4341_v29 = vld [vmem:[#allocation2 + $0x1ac] sm:$0xf0] }
  0x57   :  { %1696 = vmatmul.bf16.gmra.mxu0 %v5686_v32  ;;  %7461 = vst [vmem:[#allocation27_spill] sm:$0xff] %v5736_v1  ;;  %v5750_v36 = vor.u32 %v5282_v27, %v4339_v26  ;;  %v5438_v38 = vld [vmem:[#allocation7 + $0x304] sm:$0xf0]  ;;  %v5752_v39 = vor.u32 %v5279_v28, %v4341_v29  ;;  %v5355_v45 = vld [vmem:[#allocation7 + $0x74] sm:$0xf] }
  0x58   :  { %1785 = vmatmul.bf16.gmra.mxu1 %v5688_v33  ;;  %7462 = vst [vmem:[#allocation28_spill] sm:$0xff] %v5738_v2  ;;  %v4968_v44 = vor.u32 %v5438_v38, %v4967_v37  ;;  %v4641_v46 = vld [vmem:[#allocation7 + $0x78] sm:$0xf0]  ;;  %v573_v51 = vld [vmem:[#allocation9] sm:$0x3] }
  0x59   :  { %1874 = vmatmul.bf16.gmra.mxu2 %v5690_v34  ;;  %7463 = vst [vmem:[#allocation29_spill] sm:$0xff] %v5740_v3  ;;  %v4644_v47 = vor.u32 %v5355_v45, %v4641_v46  ;;  %v5758_v5 = vperm.slane %v573_v51, 0  ;;  %v4855_v26 = vld [vmem:[#allocation7 + $0x220] sm:$0xf]  ;;  %v5410_v27 = vld [vmem:[#allocation7 + $0x224] sm:$0xf0] }
  0x5a   :  { %1963 = vmatmul.bf16.gmra.mxu3 %v5692_v35  ;;  %240 = vst [vmem:[#allocation2 + $0x1f8] sm:$0xff] %v224_v14  ;;  %2219 = vmatpush.bf16.msrb.mxu2 %v4968_v44  ;;  %v4359_v53 = vld [vmem:[#allocation2 + $0x1c0] sm:$0xf]  ;;  %v5285_v62 = vld [vmem:[#allocation2 + $0x1c4] sm:$0xf]  ;;  %v4856_v28 = vor.u32 %v5410_v27, %v4855_v26 }
  0x5b   :  { %244 = vst [vmem:[#allocation2 + $0x214] sm:$0xff] %v228_v15  ;;  %2301 = vmatpush.bf16.msrb.mxu3 %v4644_v47  ;;  %v5288_v63 = vld [vmem:[#allocation2 + $0x1d8] sm:$0xf0]  ;;  %v4361_v4 = vld [vmem:[#allocation2 + $0x1dc] sm:$0xf0]  ;;  %v261_v51 = vld [vmem:[#allocation4 + $0x284] sm:$0xff] }
  0x5c   :  { %241 = vst [vmem:[#allocation2 + $0x200] sm:$0xff] %v225_v20  ;;  %v4367_v6 = vld [vmem:[#allocation2 + $0x1c8] sm:$0xf]  ;;  %v5286_v8 = vld [vmem:[#allocation2 + $0x1cc] sm:$0xf]  ;;  %v5760_v14 = vor.u32 %v5288_v63, %v4359_v53  ;;  %v5762_v20 = vor.u32 %v5285_v62, %v4361_v4  ;;  %2039 = vmatpush.bf16.msrb.mxu0 %v4856_v28 }
  0x5d   :  { %245 = vst [vmem:[#allocation2 + $0x21c] sm:$0xff] %v229_v21  ;;  %v5289_v7 = vld [vmem:[#allocation2 + $0x1e0] sm:$0xf0]  ;;  %v4369_v9 = vld [vmem:[#allocation2 + $0x1e4] sm:$0xf0]  ;;  %v262_v62 = vld [vmem:[#allocation4 + $0x28c] sm:$0xff] }
  0x5e   :  { %7464 = vst [vmem:[#allocation30_spill] sm:$0xff] %v5748_v31  ;;  %v5764_v21 = vor.u32 %v5289_v7, %v4367_v6  ;;  %v5767_v24 = vor.u32 %v5286_v8, %v4369_v9  ;;  %v4919_v29 = vld [vmem:[#allocation7 + $0x2a0] sm:$0xf]  ;;  %v5426_v37 = vld [vmem:[#allocation7 + $0x2a4] sm:$0xf0] }
  0x5f   :  { %7465 = vst [vmem:[#allocation31_spill] sm:$0xff] %v5750_v36  ;;  %v4920_v38 = vor.u32 %v5426_v37, %v4919_v29 }
  0x60   :  { %7466 = vst [vmem:[#allocation32_spill] sm:$0xff] %v5752_v39 }
  0x61   :  { %265 = vst [vmem:[#allocation2 + $0x230] sm:$0xff] %v249_v48  ;;  %2128 = vmatpush.bf16.msrb.mxu1 %v4920_v38  ;;  %v4387_v4 = vld [vmem:[#allocation2 + $0x1f8] sm:$0xf]  ;;  %v5292_v6 = vld [vmem:[#allocation2 + $0x1fc] sm:$0xf] }
  0x62   :  { %269 = vst [vmem:[#allocation2 + $0x24c] sm:$0xff] %v253_v49  ;;  %v5295_v7 = vld [vmem:[#allocation2 + $0x210] sm:$0xf0]  ;;  %v4389_v8 = vld [vmem:[#allocation2 + $0x214] sm:$0xf0] }
  0x63   :  { %266 = vst [vmem:[#allocation2 + $0x238] sm:$0xff] %v250_v50  ;;  %v257_v50 = vld [vmem:[#allocation4 + $0x268] sm:$0xff]  ;;  %v4395_v9 = vld [vmem:[#allocation2 + $0x200] sm:$0xf]  ;;  %v5776_v26 = vor.u32 %v5295_v7, %v4387_v4  ;;  %v5778_v37 = vor.u32 %v5292_v6, %v4389_v8 }
  0x64   :  { %270 = vst [vmem:[#allocation2 + $0x254] sm:$0xff] %v254_v52  ;;  %v258_v52 = vld [vmem:[#allocation4 + $0x270] sm:$0xff]  ;;  %v282_v8 = vld [vmem:[#allocation4 + $0x2a0] sm:$0xff] }
  0x65   :  { %7467 = vst [vmem:[#allocation33_spill] sm:$0xff] %v5762_v20 }
  0x66   :  { %7468 = vst [vmem:[#allocation34_spill] sm:$0xff] %v5764_v21 }
  0x67   :  { %1701 = vmatmul.bf16.gmra.mxu0 %v5698_v56  ;;  %7469 = vst [vmem:[#allocation35_spill] sm:$0xff] %v5767_v24 }
  0x68   :  { %1790 = vmatmul.bf16.gmra.mxu1 %v5700_v57  ;;  %273 = vst [vmem:[#allocation2 + $0x268] sm:$0xff] %v257_v50  ;;  %v4633_v50 = vld [vmem:[#allocation7 + $0x68] sm:$0xf0] }
  0x69   :  { %1879 = vmatmul.bf16.gmra.mxu2 %v5702_v58  ;;  %277 = vst [vmem:[#allocation2 + $0x284] sm:$0xff] %v261_v51 }
  0x6a   :  { %1968 = vmatmul.bf16.gmra.mxu3 %v5704_v59  ;;  %274 = vst [vmem:[#allocation2 + $0x270] sm:$0xff] %v258_v52 }
  0x6b   :  { %278 = vst [vmem:[#allocation2 + $0x28c] sm:$0xff] %v262_v62 }
  0x6c   :  { %7470 = vst [vmem:[#allocation36_spill] sm:$0xff] %v5778_v37 }
  0x6d   :  { %298 = vst [vmem:[#allocation2 + $0x2a0] sm:$0xff] %v282_v8 }
  0x77   :  { %1706 = vmatmul.bf16.gmra.mxu0 %v5710_v10 }
  0x78   :  { %1795 = vmatmul.bf16.gmra.mxu1 %v5712_v11 }
  0x79   :  { %1884 = vmatmul.bf16.gmra.mxu2 %v5714_v12 }
  0x7a   :  { %1973 = vmatmul.bf16.gmra.mxu3 %v5716_v13 }
  0x87   :  { %1711 = vmatmul.bf16.gmra.mxu0 %v5722_v40 }
  0x88   :  { %1800 = vmatmul.bf16.gmra.mxu1 %v5724_v41 }
  0x89   :  { %1889 = vmatmul.bf16.gmra.mxu2 %v5726_v42 }
  0x8a   :  { %1978 = vmatmul.bf16.gmra.mxu3 %v5728_v43 }
  0x97   :  { %1716 = vmatmul.bf16.gmra.mxu0 %v5734_v0 }
  0x98   :  { %1805 = vmatmul.bf16.gmra.mxu1 %v5736_v1 }
  0x99   :  { %1894 = vmatmul.bf16.gmra.mxu2 %v5738_v2 }
  0x9a   :  { %1983 = vmatmul.bf16.gmra.mxu3 %v5740_v3 }
  0xa7   :  { %1721 = vmatmul.bf16.gmra.mxu0 %v5746_v30 }
  0xa8   :  { %1810 = vmatmul.bf16.gmra.mxu1 %v5748_v31 }
  0xa9   :  { %1899 = vmatmul.bf16.gmra.mxu2 %v5750_v36 }
  0xaa   :  { %1988 = vmatmul.bf16.gmra.mxu3 %v5752_v39 }
  0xb4   :  { %v1687_v15 = vpop.f32.mrf.mxu0 }
  0xb5   :  { %v1688_v22 = vadd.f32 %v1687_v15, %v5758_v5  ;;  %v1776_v23 = vpop.f32.mrf.mxu1  ;;  %v5296_v15 = vld [vmem:[#allocation2 + $0x218] sm:$0xf0] }
  0xb6   :  { %v5780_v38 = vor.u32 %v5296_v15, %v4395_v9  ;;  %v286_v9 = vld [vmem:[#allocation4 + $0x2bc] sm:$0xff]  ;;  %v283_v15 = vld [vmem:[#allocation4 + $0x2a8] sm:$0xff] }
  0xb7   :  { %v1777_v25 = vadd.f32 %v1776_v23, %v1688_v22  ;;  %1726 = vmatmul.bf16.gmra.mxu0 %v5760_v14  ;;  %v5293_v22 = vld [vmem:[#allocation2 + $0x204] sm:$0xf]  ;;  %v4397_v23 = vld [vmem:[#allocation2 + $0x21c] sm:$0xf0]  ;;  %302 = vst [vmem:[#allocation2 + $0x2bc] sm:$0xff] %v286_v9 }
  0xb8   :  { %1815 = vmatmul.bf16.gmra.mxu1 %v5762_v20  ;;  %7471 = vst [vmem:[#allocation37_spill] sm:$0xff] %v5780_v38 }
  0xb9   :  { %1904 = vmatmul.bf16.gmra.mxu2 %v5764_v21  ;;  %299 = vst [vmem:[#allocation2 + $0x2a8] sm:$0xff] %v283_v15  ;;  %v5351_v21 = vld [vmem:[#allocation7 + $0x54] sm:$0xf] }
  0xba   :  { %1993 = vmatmul.bf16.gmra.mxu3 %v5767_v24 }
  0xbc   :  { %v1865_v44 = vpop.f32.mrf.mxu2  ;;  %v1689_v46 = vpop.f32.mrf.mxu0 }
  0xbd   :  { %v1866_v45 = vadd.f32 %v1865_v44, %v1777_v25  ;;  %v1954_v47 = vpop.f32.mrf.mxu3  ;;  %v1690_v48 = vadd.f32 %v1689_v46, %v5758_v5  ;;  %v1778_v49 = vpop.f32.mrf.mxu1  ;;  %v5783_v46 = vor.u32 %v5293_v22, %v4397_v23  ;;  %v287_v23 = vld [vmem:[#allocation4 + $0x2c4] sm:$0xff] }
  0xbe   :  { %303 = vst [vmem:[#allocation2 + $0x2c4] sm:$0xff] %v287_v23 }
  0xbf   :  { %v5774_v53 = vadd.f32 %v1954_v47, %v1866_v45  ;;  %v1779_v63 = vadd.f32 %v1778_v49, %v1690_v48  ;;  %7472 = vst [vmem:[#allocation38_spill] sm:$0xff] %v5783_v46  ;;  %v5353_v49 = vld [vmem:[#allocation7 + $0x64] sm:$0xf] }
  0xc0   :  { %v4636_v51 = vor.u32 %v5353_v49, %v4633_v50  ;;  %v5300_v49 = vld [vmem:[#allocation2 + $0x23c] sm:$0xf]  ;;  %v4425_v50 = vld [vmem:[#allocation2 + $0x254] sm:$0xf0] }
  0xc2   :  { %2302 = vmatpush.bf16.msrb.mxu3 %v4636_v51 }
  0xc4   :  { %v1867_v25 = vpop.f32.mrf.mxu2  ;;  %v1692_v28 = vpop.f32.mrf.mxu0 }
  0xc5   :  { %v1868_v27 = vadd.f32 %v1867_v25, %v1779_v63  ;;  %v1956_v29 = vpop.f32.mrf.mxu3  ;;  %v1693_v44 = vadd.f32 %v1692_v28, %v5758_v5  ;;  %v1781_v45 = vpop.f32.mrf.mxu1  ;;  %v5299_v28 = vld [vmem:[#allocation2 + $0x234] sm:$0xf] }
  0xc7   :  { %v5785_v47 = vadd.f32 %v1956_v29, %v1868_v27  ;;  %v1782_v48 = vadd.f32 %v1781_v45, %v1693_v44  ;;  %1731 = vmatmul.bf16.gmra.mxu0 %v5776_v26  ;;  %v4415_v27 = vld [vmem:[#allocation2 + $0x230] sm:$0xf]  ;;  %v5302_v29 = vld [vmem:[#allocation2 + $0x248] sm:$0xf0]  ;;  %v4423_v45 = vld [vmem:[#allocation2 + $0x238] sm:$0xf] }
  0xc8   :  { %1820 = vmatmul.bf16.gmra.mxu1 %v5778_v37  ;;  %v4417_v44 = vld [vmem:[#allocation2 + $0x24c] sm:$0xf0] }
  0xc9   :  { %1909 = vmatmul.bf16.gmra.mxu2 %v5780_v38  ;;  %v5796_v8 = vor.u32 %v5299_v28, %v4417_v44  ;;  %v5424_v44 = vld [vmem:[#allocation7 + $0x294] sm:$0xf0] }
  0xca   :  { %1998 = vmatmul.bf16.gmra.mxu3 %v5783_v46  ;;  %v5801_v46 = vor.u32 %v5300_v49, %v4425_v50 }
  0xcb   :  { %7473 = vst [vmem:[#allocation39_spill] sm:$0xff] %v5796_v8 }
  0xcc   :  { %v1870_v52 = vpop.f32.mrf.mxu2  ;;  %v1694_v63 = vpop.f32.mrf.mxu0  ;;  %7475 = vst [vmem:[#allocation41_spill] sm:$0xff] %v5801_v46 }
  0xcd   :  { %v1871_v62 = vadd.f32 %v1870_v52, %v1782_v48  ;;  %v1959_v4 = vpop.f32.mrf.mxu3  ;;  %v1695_v6 = vadd.f32 %v1694_v63, %v5758_v5  ;;  %v1783_v7 = vpop.f32.mrf.mxu1  ;;  %v5303_v48 = vld [vmem:[#allocation2 + $0x250] sm:$0xf0]  ;;  %v5794_v52 = vor.u32 %v5302_v29, %v4415_v27  ;;  %v5408_v27 = vld [vmem:[#allocation7 + $0x214] sm:$0xf0]  ;;  %v4911_v29 = vld [vmem:[#allocation7 + $0x290] sm:$0xf] }
  0xcf   :  { %v5792_v22 = vadd.f32 %v1959_v4, %v1871_v62  ;;  %v1784_v25 = vadd.f32 %v1783_v7, %v1695_v6  ;;  %v5798_v6 = vor.u32 %v5303_v48, %v4423_v45  ;;  %v4912_v45 = vor.u32 %v5424_v44, %v4911_v29  ;;  %v5309_v29 = vld [vmem:[#allocation2 + $0x280] sm:$0xf0]  ;;  %v5310_v44 = vld [vmem:[#allocation2 + $0x288] sm:$0xf0] }
  0xd1   :  { %7474 = vst [vmem:[#allocation40_spill] sm:$0xff] %v5798_v6  ;;  %2129 = vmatpush.bf16.msrb.mxu1 %v4912_v45  ;;  %v5307_v45 = vld [vmem:[#allocation2 + $0x274] sm:$0xf] }
  0xd4   :  { %v1872_v51 = vpop.f32.mrf.mxu2  ;;  %v1697_v62 = vpop.f32.mrf.mxu0 }
  0xd5   :  { %v1873_v63 = vadd.f32 %v1872_v51, %v1784_v25  ;;  %v1961_v4 = vpop.f32.mrf.mxu3  ;;  %v1698_v7 = vadd.f32 %v1697_v62, %v5758_v5  ;;  %v1786_v9 = vpop.f32.mrf.mxu1  ;;  %v4847_v25 = vld [vmem:[#allocation7 + $0x210] sm:$0xf] }
  0xd6   :  { %v4848_v28 = vor.u32 %v5408_v27, %v4847_v25  ;;  %v4443_v27 = vld [vmem:[#allocation2 + $0x268] sm:$0xf] }
  0xd7   :  { %v5803_v15 = vadd.f32 %v1961_v4, %v1873_v63  ;;  %v1787_v23 = vadd.f32 %v1786_v9, %v1698_v7  ;;  %1736 = vmatmul.bf16.gmra.mxu0 %v5794_v52  ;;  %v290_v4 = vld [vmem:[#allocation4 + $0x2d8] sm:$0xff]  ;;  %v291_v9 = vld [vmem:[#allocation4 + $0x2e0] sm:$0xff]  ;;  %v5812_v38 = vor.u32 %v5309_v29, %v4443_v27 }
  0xd8   :  { %1825 = vmatmul.bf16.gmra.mxu1 %v5796_v8  ;;  %2040 = vmatpush.bf16.msrb.mxu0 %v4848_v28  ;;  %v294_v7 = vld [vmem:[#allocation4 + $0x2f4] sm:$0xff]  ;;  %306 = vst [vmem:[#allocation2 + $0x2d8] sm:$0xff] %v290_v4  ;;  %v5306_v8 = vld [vmem:[#allocation2 + $0x26c] sm:$0xf]  ;;  %v4445_v28 = vld [vmem:[#allocation2 + $0x284] sm:$0xf0] }
  0xd9   :  { %1914 = vmatmul.bf16.gmra.mxu2 %v5798_v6  ;;  %310 = vst [vmem:[#allocation2 + $0x2f4] sm:$0xff] %v294_v7  ;;  %v5814_v4 = vor.u32 %v5306_v8, %v4445_v28  ;;  %v4625_v27 = vld [vmem:[#allocation7 + $0x58] sm:$0xf0] }
  0xda   :  { %2003 = vmatmul.bf16.gmra.mxu3 %v5801_v46  ;;  %v295_v46 = vld [vmem:[#allocation4 + $0x2fc] sm:$0xff]  ;;  %307 = vst [vmem:[#allocation2 + $0x2e0] sm:$0xff] %v291_v9  ;;  %v4628_v8 = vor.u32 %v5351_v21, %v4625_v27  ;;  %v5313_v21 = vld [vmem:[#allocation2 + $0x2a4] sm:$0xf] }
  0xdb   :  { %311 = vst [vmem:[#allocation2 + $0x2fc] sm:$0xff] %v295_v46  ;;  %v5316_v27 = vld [vmem:[#allocation2 + $0x2b8] sm:$0xf0] }
  0xdc   :  { %v1875_v48 = vpop.f32.mrf.mxu2  ;;  %v1699_v50 = vpop.f32.mrf.mxu0  ;;  %7476 = vst [vmem:[#allocation42_spill] sm:$0xff] %v5814_v4  ;;  %2303 = vmatpush.bf16.msrb.mxu3 %v4628_v8  ;;  %v4473_v8 = vld [vmem:[#allocation2 + $0x2bc] sm:$0xf0] }
  0xdd   :  { %v1876_v49 = vadd.f32 %v1875_v48, %v1787_v23  ;;  %v1964_v51 = vpop.f32.mrf.mxu3  ;;  %v1700_v63 = vadd.f32 %v1699_v50, %v5758_v5  ;;  %v1788_v62 = vpop.f32.mrf.mxu1  ;;  %v4451_v23 = vld [vmem:[#allocation2 + $0x270] sm:$0xf] }
  0xde   :  { %v4453_v48 = vld [vmem:[#allocation2 + $0x28c] sm:$0xf0] }
  0xdf   :  { %v5810_v6 = vadd.f32 %v1964_v51, %v1876_v49  ;;  %v1789_v25 = vadd.f32 %v1788_v62, %v1700_v63  ;;  %v5816_v63 = vor.u32 %v5310_v44, %v4451_v23  ;;  %v5819_v24 = vor.u32 %v5307_v45, %v4453_v48  ;;  %v315_v45 = vld [vmem:[#allocation4 + $0x310] sm:$0xff] }
  0xe0   :  { %v319_v48 = vld [vmem:[#allocation4 + $0x32c] sm:$0xff]  ;;  %331 = vst [vmem:[#allocation2 + $0x310] sm:$0xff] %v315_v45  ;;  %v5832_v45 = vor.u32 %v5313_v21, %v4473_v8  ;;  %v4903_v21 = vld [vmem:[#allocation7 + $0x280] sm:$0xf] }
  0xe1   :  { %7477 = vst [vmem:[#allocation43_spill] sm:$0xff] %v5816_v63 }
  0xe2   :  { %7478 = vst [vmem:[#allocation44_spill] sm:$0xff] %v5819_v24 }
  0xe3   :  { %335 = vst [vmem:[#allocation2 + $0x32c] sm:$0xff] %v319_v48 }
  0xe4   :  { %v1877_v50 = vpop.f32.mrf.mxu2  ;;  %v1702_v49 = vpop.f32.mrf.mxu0  ;;  %7479 = vst [vmem:[#allocation45_spill] sm:$0xff] %v5832_v45 }
  0xe5   :  { %v1878_v37 = vadd.f32 %v1877_v50, %v1789_v25  ;;  %v1966_v51 = vpop.f32.mrf.mxu3  ;;  %v1703_v62 = vadd.f32 %v1702_v49, %v5758_v5  ;;  %v1791_v7 = vpop.f32.mrf.mxu1  ;;  %v316_v50 = vld [vmem:[#allocation4 + $0x318] sm:$0xff] }
  0xe6   :  { %332 = vst [vmem:[#allocation2 + $0x318] sm:$0xff] %v316_v50 }
  0xe7   :  { %v5821_v9 = vadd.f32 %v1966_v51, %v1878_v37  ;;  %v1792_v46 = vadd.f32 %v1791_v7, %v1703_v62  ;;  %1741 = vmatmul.bf16.gmra.mxu0 %v5812_v38  ;;  %v320_v51 = vld [vmem:[#allocation4 + $0x334] sm:$0xff]  ;;  %v4471_v7 = vld [vmem:[#allocation2 + $0x2a0] sm:$0xf] }
  0xe8   :  { %1830 = vmatmul.bf16.gmra.mxu1 %v5814_v4  ;;  %336 = vst [vmem:[#allocation2 + $0x334] sm:$0xff] %v320_v51  ;;  %v5830_v4 = vor.u32 %v5316_v27, %v4471_v7  ;;  %v5422_v27 = vld [vmem:[#allocation7 + $0x284] sm:$0xf0] }
  0xe9   :  { %1919 = vmatmul.bf16.gmra.mxu2 %v5816_v63  ;;  %v4904_v8 = vor.u32 %v5422_v27, %v4903_v21  ;;  %v5323_v21 = vld [vmem:[#allocation2 + $0x2f0] sm:$0xf0]  ;;  %v5324_v27 = vld [vmem:[#allocation2 + $0x2f8] sm:$0xf0] }
  0xea   :  { %2008 = vmatmul.bf16.gmra.mxu3 %v5819_v24  ;;  %v5314_v24 = vld [vmem:[#allocation2 + $0x2ac] sm:$0xf] }
  0xeb   :  { %2130 = vmatpush.bf16.msrb.mxu1 %v4904_v8  ;;  %v5321_v8 = vld [vmem:[#allocation2 + $0x2e4] sm:$0xf] }
  0xec   :  { %v1880_v25 = vpop.f32.mrf.mxu2  ;;  %v1704_v28 = vpop.f32.mrf.mxu0 }
  0xed   :  { %v1881_v29 = vadd.f32 %v1880_v25, %v1792_v46  ;;  %v1969_v23 = vpop.f32.mrf.mxu3  ;;  %v1705_v37 = vadd.f32 %v1704_v28, %v5758_v5  ;;  %v1793_v44 = vpop.f32.mrf.mxu1  ;;  %v4479_v46 = vld [vmem:[#allocation2 + $0x2a8] sm:$0xf]  ;;  %v5317_v25 = vld [vmem:[#allocation2 + $0x2c0] sm:$0xf0] }
  0xee   :  { %v4481_v28 = vld [vmem:[#allocation2 + $0x2c4] sm:$0xf0] }
  0xef   :  { %v5828_v49 = vadd.f32 %v1969_v23, %v1881_v29  ;;  %v1794_v62 = vadd.f32 %v1793_v44, %v1705_v37  ;;  %v5834_v37 = vor.u32 %v5317_v25, %v4479_v46  ;;  %v5837_v39 = vor.u32 %v5314_v24, %v4481_v28 }
  0xf1   :  { %7480 = vst [vmem:[#allocation46_spill] sm:$0xff] %v5834_v37 }
  0xf2   :  { %7481 = vst [vmem:[#allocation47_spill] sm:$0xff] %v5837_v39 }
  0xf4   :  { %v1882_v63 = vpop.f32.mrf.mxu2  ;;  %v1707_v29 = vpop.f32.mrf.mxu0 }
  0xf5   :  { %v1883_v20 = vadd.f32 %v1882_v63, %v1794_v62  ;;  %v1971_v23 = vpop.f32.mrf.mxu3  ;;  %v1708_v44 = vadd.f32 %v1707_v29, %v5758_v5  ;;  %v1796_v48 = vpop.f32.mrf.mxu1  ;;  %v4839_v63 = vld [vmem:[#allocation7 + $0x200] sm:$0xf]  ;;  %v5406_v62 = vld [vmem:[#allocation7 + $0x204] sm:$0xf0] }
  0xf6   :  { %v4840_v7 = vor.u32 %v5406_v62, %v4839_v63  ;;  %v4499_v62 = vld [vmem:[#allocation2 + $0x2d8] sm:$0xf] }
  0xf7   :  { %v5839_v50 = vadd.f32 %v1971_v23, %v1883_v20  ;;  %v1797_v51 = vadd.f32 %v1796_v48, %v1708_v44  ;;  %1746 = vmatmul.bf16.gmra.mxu0 %v5830_v4  ;;  %v323_v23 = vld [vmem:[#allocation4 + $0x348] sm:$0xff]  ;;  %v324_v48 = vld [vmem:[#allocation4 + $0x350] sm:$0xff]  ;;  %v5848_v36 = vor.u32 %v5323_v21, %v4499_v62 }
  0xf8   :  { %1835 = vmatmul.bf16.gmra.mxu1 %v5832_v45  ;;  %2041 = vmatpush.bf16.msrb.mxu0 %v4840_v7  ;;  %v327_v44 = vld [vmem:[#allocation4 + $0x364] sm:$0xff]  ;;  %339 = vst [vmem:[#allocation2 + $0x348] sm:$0xff] %v323_v23  ;;  %v5320_v45 = vld [vmem:[#allocation2 + $0x2dc] sm:$0xf]  ;;  %v4501_v7 = vld [vmem:[#allocation2 + $0x2f4] sm:$0xf0] }
  0xf9   :  { %1924 = vmatmul.bf16.gmra.mxu2 %v5834_v37  ;;  %343 = vst [vmem:[#allocation2 + $0x364] sm:$0xff] %v327_v44  ;;  %v5850_v23 = vor.u32 %v5320_v45, %v4501_v7  ;;  %v4617_v44 = vld [vmem:[#allocation7 + $0x48] sm:$0xf0]  ;;  %v5347_v45 = vld [vmem:[#allocation7 + $0x34] sm:$0xf] }
  0xfa   :  { %2013 = vmatmul.bf16.gmra.mxu3 %v5837_v39  ;;  %v328_v39 = vld [vmem:[#allocation4 + $0x36c] sm:$0xff]  ;;  %340 = vst [vmem:[#allocation2 + $0x350] sm:$0xff] %v324_v48 }
  0xfb   :  { %344 = vst [vmem:[#allocation2 + $0x36c] sm:$0xff] %v328_v39 }
  0xfc   :  { %v1885_v46 = vpop.f32.mrf.mxu2  ;;  %v1709_v20 = vpop.f32.mrf.mxu0  ;;  %7482 = vst [vmem:[#allocation48_spill] sm:$0xff] %v5850_v23 }
  0xfd   :  { %v1886_v24 = vadd.f32 %v1885_v46, %v1797_v51  ;;  %v1974_v25 = vpop.f32.mrf.mxu3  ;;  %v1710_v28 = vadd.f32 %v1709_v20, %v5758_v5  ;;  %v1798_v29 = vpop.f32.mrf.mxu1  ;;  %v4507_v51 = vld [vmem:[#allocation2 + $0x2e0] sm:$0xf] }
  0xfe   :  { %v4509_v46 = vld [vmem:[#allocation2 + $0x2fc] sm:$0xf0] }
  0xff   :  { %v5846_v37 = vadd.f32 %v1974_v25, %v1886_v24  ;;  %v1799_v63 = vadd.f32 %v1798_v29, %v1710_v28  ;;  %v5852_v28 = vor.u32 %v5324_v27, %v4507_v51  ;;  %v5349_v29 = vld [vmem:[#allocation7 + $0x44] sm:$0xf]  ;;  %v5855_v2 = vor.u32 %v5321_v8, %v4509_v46  ;;  %v4601_v8 = vld [vmem:[#allocation7 + $0x28] sm:$0xf0] }
 0x100   :  { %v4620_v39 = vor.u32 %v5349_v29, %v4617_v44  ;;  %v86_v29 = vld [vmem:[#allocation4 + $0x18] sm:$0xf] }
 0x101   :  { %7483 = vst [vmem:[#allocation49_spill] sm:$0xff] %v5852_v28 }
 0x102   :  { %7484 = vst [vmem:[#allocation50_spill] sm:$0xff] %v5855_v2  ;;  %2304 = vmatpush.bf16.msrb.mxu3 %v4620_v39  ;;  %v90_v39 = vld [vmem:[#allocation4 + $0x34] sm:$0xf] }
 0x103   :  { %103 = vst.msk [vmem:[#allocation2 + $0x18] sm:$0xf] %vm102_vm0, %v86_v29  ;;  %v4585_v29 = vld [vmem:[#allocation7 + $0x8] sm:$0xf0] }
 0x104   :  { %v1887_v20 = vpop.f32.mrf.mxu2  ;;  %v1712_v24 = vpop.f32.mrf.mxu0  ;;  %107 = vst.msk [vmem:[#allocation2 + $0x34] sm:$0xf] %vm102_vm0, %v90_v39 }
 0x105   :  { %v1888_v31 = vadd.f32 %v1887_v20, %v1799_v63  ;;  %v1976_v25 = vpop.f32.mrf.mxu3  ;;  %v1713_v3 = vadd.f32 %v1712_v24, %v5758_v5  ;;  %v1801_v48 = vpop.f32.mrf.mxu1  ;;  %v4609_v63 = vld [vmem:[#allocation7 + $0x38] sm:$0xf0]  ;;  %v85_v24 = vld [vmem:[#allocation4 + $0x10] sm:$0xff] }
 0x106   :  { %v4612_v62 = vor.u32 %v5347_v45, %v4609_v63  ;;  %101 = vst [vmem:[#allocation2 + $0x10] sm:$0xff] %v85_v24  ;;  %v5327_v63 = vld [vmem:[#allocation2 + $0x314] sm:$0xf] }
 0x107   :  { %v5857_v1 = vadd.f32 %v1976_v25, %v1888_v31  ;;  %v1802_v43 = vadd.f32 %v1801_v48, %v1713_v3  ;;  %1751 = vmatmul.bf16.gmra.mxu0 %v5848_v36  ;;  %v5345_v31 = vld [vmem:[#allocation7 + $0x24] sm:$0xf]  ;;  %v89_v25 = vld [vmem:[#allocation4 + $0x2c] sm:$0xff] }
 0x108   :  { %1840 = vmatmul.bf16.gmra.mxu1 %v5850_v23  ;;  %2305 = vmatpush.bf16.msrb.mxu3 %v4612_v62  ;;  %v4604_v20 = vor.u32 %v5345_v31, %v4601_v8  ;;  %v4527_v48 = vld [vmem:[#allocation2 + $0x310] sm:$0xf]  ;;  %106 = vst [vmem:[#allocation2 + $0x2c] sm:$0xff] %v89_v25  ;;  %v5343_v62 = vld [vmem:[#allocation7 + $0x14] sm:$0xf] }
 0x109   :  { %1929 = vmatmul.bf16.gmra.mxu2 %v5852_v28  ;;  %v5331_v31 = vld [vmem:[#allocation2 + $0x330] sm:$0xf0]  ;;  %v5341_v25 = vld [vmem:[#allocation7 + $0x4] sm:$0xf] }
 0x10a   :  { %2018 = vmatmul.bf16.gmra.mxu3 %v5855_v2  ;;  %v4593_v2 = vld [vmem:[#allocation7 + $0x18] sm:$0xf0]  ;;  %v4588_v13 = vor.u32 %v5341_v25, %v4585_v29  ;;  %v94_v25 = vld [vmem:[#allocation4 + $0x50] sm:$0xf] }
 0x10b   :  { %v4596_v8 = vor.u32 %v5343_v62, %v4593_v2  ;;  %111 = vst.msk [vmem:[#allocation2 + $0x50] sm:$0xf] %vm102_vm0, %v94_v25 }
 0x10c   :  { %v1890_v21 = vpop.f32.mrf.mxu2  ;;  %v1714_v51 = vpop.f32.mrf.mxu0  ;;  %2306 = vmatpush.bf16.msrb.mxu3 %v4604_v20 }
 0x10d   :  { %v1891_v7 = vadd.f32 %v1890_v21, %v1802_v43  ;;  %v1979_v27 = vpop.f32.mrf.mxu3  ;;  %v1715_v3 = vadd.f32 %v1714_v51, %v5758_v5  ;;  %v1803_v46 = vpop.f32.mrf.mxu1  ;;  %v5330_v43 = vld [vmem:[#allocation2 + $0x328] sm:$0xf0]  ;;  %v4529_v21 = vld [vmem:[#allocation2 + $0x32c] sm:$0xf0]  ;;  %v4535_v51 = vld [vmem:[#allocation2 + $0x318] sm:$0xf] }
 0x10e   :  { %v5868_v24 = vor.u32 %v5330_v43, %v4527_v48  ;;  %v5870_v42 = vor.u32 %v5327_v63, %v4529_v21  ;;  %v5872_v20 = vor.u32 %v5331_v31, %v4535_v51  ;;  %v5387_v63 = vld [vmem:[#allocation7 + $0x174] sm:$0xf]  ;;  %v4769_v21 = vld [vmem:[#allocation7 + $0x178] sm:$0xf0] }
 0x10f   :  { %v5864_v44 = vadd.f32 %v1979_v27, %v1891_v7  ;;  %v1804_v45 = vadd.f32 %v1803_v46, %v1715_v3  ;;  %v5328_v7 = vld [vmem:[#allocation2 + $0x31c] sm:$0xf]  ;;  %v4537_v27 = vld [vmem:[#allocation2 + $0x334] sm:$0xf0]  ;;  %v4772_v51 = vor.u32 %v5387_v63, %v4769_v21  ;;  %v5337_v63 = vld [vmem:[#allocation2 + $0x360] sm:$0xf0] }
 0x110   :  { %7485 = vst [vmem:[#allocation51_spill] sm:$0xff] %v5870_v42  ;;  %2307 = vmatpush.bf16.msrb.mxu3 %v4596_v8  ;;  %v5875_v62 = vor.u32 %v5328_v7, %v4537_v27  ;;  %v5338_v21 = vld [vmem:[#allocation2 + $0x368] sm:$0xf0] }
 0x111   :  { %7486 = vst [vmem:[#allocation52_spill] sm:$0xff] %v5872_v20  ;;  %2479 = vmatpush.bf16.msra.mxu1 %v4772_v51  ;;  %v5335_v51 = vld [vmem:[#allocation2 + $0x354] sm:$0xf] }
 0x112   :  { %7487 = vst [vmem:[#allocation53_spill] sm:$0xff] %v5875_v62 }
 0x114   :  { %v1892_v28 = vpop.f32.mrf.mxu2  ;;  %v1717_v46 = vpop.f32.mrf.mxu0  ;;  %2308 = vmatpush.bf16.msrb.mxu3 %v4588_v13  ;;  %v5334_v13 = vld [vmem:[#allocation2 + $0x34c] sm:$0xf] }
 0x115   :  { %v1893_v3 = vadd.f32 %v1892_v28, %v1804_v45  ;;  %v1981_v23 = vpop.f32.mrf.mxu3  ;;  %v1718_v41 = vadd.f32 %v1717_v46, %v5758_v5  ;;  %v1806_v2 = vpop.f32.mrf.mxu1  ;;  %v5371_v28 = vld [vmem:[#allocation7 + $0xf4] sm:$0xf]  ;;  %v4705_v45 = vld [vmem:[#allocation7 + $0xf8] sm:$0xf0]  ;;  %v97_v46 = vld [vmem:[#allocation4 + $0x64] sm:$0xff] }
 0x116   :  { %v4708_v43 = vor.u32 %v5371_v28, %v4705_v45  ;;  %v4555_v45 = vld [vmem:[#allocation2 + $0x348] sm:$0xf]  ;;  %114 = vst [vmem:[#allocation2 + $0x64] sm:$0xff] %v97_v46 }
 0x117   :  { %v5877_v39 = vadd.f32 %v1981_v23, %v1893_v3  ;;  %v1807_v48 = vadd.f32 %v1806_v2, %v1718_v41  ;;  %1756 = vmatmul.bf16.gmra.mxu0 %v5868_v24  ;;  %v93_v3 = vld [vmem:[#allocation4 + $0x48] sm:$0xff] }
 0x118   :  { %1845 = vmatmul.bf16.gmra.mxu1 %v5870_v42  ;;  %2390 = vmatpush.bf16.msra.mxu0 %v4708_v43  ;;  %110 = vst [vmem:[#allocation2 + $0x48] sm:$0xff] %v93_v3  ;;  %v98_v2 = vld [vmem:[#allocation4 + $0x6c] sm:$0xf]  ;;  %v4557_v43 = vld [vmem:[#allocation2 + $0x364] sm:$0xf0] }
 0x119   :  { %1934 = vmatmul.bf16.gmra.mxu2 %v5872_v20  ;;  %115 = vst.msk [vmem:[#allocation2 + $0x6c] sm:$0xf] %vm102_vm0, %v98_v2 }
 0x11a   :  { %2023 = vmatmul.bf16.gmra.mxu3 %v5875_v62  ;;  %v5888_v62 = vor.u32 %v5337_v63, %v4555_v45 }
 0x11c   :  { %v1895_v31 = vpop.f32.mrf.mxu2  ;;  %v1719_v8 = vpop.f32.mrf.mxu0 }
 0x11d   :  { %v1896_v23 = vadd.f32 %v1895_v31, %v1807_v48  ;;  %v1984_v41 = vpop.f32.mrf.mxu3  ;;  %v1720_v7 = vadd.f32 %v1719_v8, %v5758_v5  ;;  %v1808_v27 = vpop.f32.mrf.mxu1  ;;  %v4563_v48 = vld [vmem:[#allocation2 + $0x350] sm:$0xf] }
 0x11e   :  { %v4565_v31 = vld [vmem:[#allocation2 + $0x36c] sm:$0xf0] }
 0x11f   :  { %v5884_v29 = vadd.f32 %v1984_v41, %v1896_v23  ;;  %v1809_v28 = vadd.f32 %v1808_v27, %v1720_v7  ;;  %v5890_v7 = vor.u32 %v5334_v13, %v4557_v43  ;;  %v5892_v27 = vor.u32 %v5338_v21, %v4563_v48  ;;  %v119_v21 = vld [vmem:[#allocation4 + $0x80] sm:$0xff]  ;;  %v5238_v11 = vld [vmem:[#allocation2 + $0x4c] sm:$0xf] }
 0x120   :  { %v5895_v25 = vor.u32 %v5335_v51, %v4565_v31  ;;  %v123_v51 = vld [vmem:[#allocation4 + $0x9c] sm:$0xff]  ;;  %v120_v31 = vld [vmem:[#allocation4 + $0x88] sm:$0xf]  ;;  %135 = vst [vmem:[#allocation2 + $0x80] sm:$0xff] %v119_v21 }
 0x121   :  { %7488 = vst [vmem:[#allocation54_spill] sm:$0xff] %v5890_v7 }
 0x122   :  { %7489 = vst [vmem:[#allocation55_spill] sm:$0xff] %v5892_v27 }
 0x123   :  { %7490 = vst [vmem:[#allocation56_spill] sm:$0xff] %v5895_v25 }
 0x124   :  { %v1897_v8 = vpop.f32.mrf.mxu2  ;;  %v1722_v41 = vpop.f32.mrf.mxu0  ;;  %139 = vst [vmem:[#allocation2 + $0x9c] sm:$0xff] %v123_v51 }
 0x125   :  { %v1898_v23 = vadd.f32 %v1897_v8, %v1809_v28  ;;  %v1986_v3 = vpop.f32.mrf.mxu3  ;;  %v1723_v46 = vadd.f32 %v1722_v41, %v5758_v5  ;;  %v1811_v20 = vpop.f32.mrf.mxu1  ;;  %v4151_v41 = vld [vmem:[#allocation2 + $0x10] sm:$0xf]  ;;  %136 = vst.msk [vmem:[#allocation2 + $0x88] sm:$0xf] %vm102_vm0, %v120_v31 }
 0x127   :  { %v5897_v42 = vadd.f32 %v1986_v3, %v1898_v23  ;;  %v1812_v2 = vadd.f32 %v1811_v20, %v1723_v46  ;;  %1761 = vmatmul.bf16.gmra.mxu0 %v5888_v62  ;;  %v124_v20 = vld [vmem:[#allocation4 + $0xa4] sm:$0xf]  ;;  %v5231_v3 = vld [vmem:[#allocation2 + $0x14] sm:$0xf]  ;;  %v5234_v46 = vld [vmem:[#allocation2 + $0x28] sm:$0xf0] }
 0x128   :  { %1850 = vmatmul.bf16.gmra.mxu1 %v5890_v7  ;;  %140 = vst.msk [vmem:[#allocation2 + $0xa4] sm:$0xf] %vm102_vm0, %v124_v20  ;;  %v5369_v20 = vld [vmem:[#allocation7 + $0xe4] sm:$0xf] }
 0x129   :  { %1939 = vmatmul.bf16.gmra.mxu2 %v5892_v27  ;;  %v5908_v27 = vor.u32 %v5234_v46, %v4151_v41  ;;  %v5385_v41 = vld [vmem:[#allocation7 + $0x164] sm:$0xf] }
 0x12a   :  { %2028 = vmatmul.bf16.gmra.mxu3 %v5895_v25  ;;  %v4153_v25 = vld [vmem:[#allocation2 + $0x2c] sm:$0xf0] }
 0x12b   :  { %v5910_v21 = vor.u32 %v5231_v3, %v4153_v25  ;;  %v4761_v3 = vld [vmem:[#allocation7 + $0x168] sm:$0xf0] }
 0x12c   :  { %v1900_v28 = vpop.f32.mrf.mxu2  ;;  %v1724_v13 = vpop.f32.mrf.mxu0  ;;  %v4764_v46 = vor.u32 %v5385_v41, %v4761_v3  ;;  %v5241_v41 = vld [vmem:[#allocation2 + $0x60] sm:$0xf0]  ;;  %v5242_v3 = vld [vmem:[#allocation2 + $0x68] sm:$0xf0] }
 0x12d   :  { %v1901_v45 = vadd.f32 %v1900_v28, %v1812_v2  ;;  %v1989_v63 = vpop.f32.mrf.mxu3  ;;  %v1725_v43 = vadd.f32 %v1724_v13, %v5758_v5  ;;  %v1813_v48 = vpop.f32.mrf.mxu1  ;;  %v4159_v2 = vld [vmem:[#allocation2 + $0x18] sm:$0xf]  ;;  %v5235_v28 = vld [vmem:[#allocation2 + $0x30] sm:$0xf0]  ;;  %7491 = vst [vmem:[#allocation57_spill] sm:$0xff] %v5910_v21 }
 0x12e   :  { %2480 = vmatpush.bf16.msra.mxu1 %v4764_v46 }
 0x12f   :  { %v5904_v8 = vadd.f32 %v1989_v63, %v1901_v45  ;;  %v1814_v23 = vadd.f32 %v1813_v48, %v1725_v43  ;;  %v5912_v43 = vor.u32 %v5235_v28, %v4159_v2 }
 0x131   :  { %7492 = vst [vmem:[#allocation58_spill] sm:$0xff] %v5912_v43 }
 0x134   :  { %v1902_v13 = vpop.f32.mrf.mxu2  ;;  %v1727_v45 = vpop.f32.mrf.mxu0 }
 0x135   :  { %v1903_v7 = vadd.f32 %v1902_v13, %v1814_v23  ;;  %v1991_v63 = vpop.f32.mrf.mxu3  ;;  %v1728_v48 = vadd.f32 %v1727_v45, %v5758_v5  ;;  %v1816_v51 = vpop.f32.mrf.mxu1  ;;  %v4697_v23 = vld [vmem:[#allocation7 + $0xe8] sm:$0xf0] }
 0x136   :  { %v4700_v25 = vor.u32 %v5369_v20, %v4697_v23  ;;  %v4179_v23 = vld [vmem:[#allocation2 + $0x48] sm:$0xf] }
 0x137   :  { %v5915_v12 = vadd.f32 %v1991_v63, %v1903_v7  ;;  %v1817_v31 = vadd.f32 %v1816_v51, %v1728_v48  ;;  %2042 = vmatmul.bf16.vlgmr.msrb.gmra.mxu0 %v5908_v27  ;;  %v127_v48 = vld [vmem:[#allocation4 + $0xb8] sm:$0xff] }
 0x138   :  { %2131 = vmatmul.bf16.vlgmr.msrb.gmra.mxu1 %v5910_v21  ;;  %2391 = vmatpush.bf16.msra.mxu0 %v4700_v25  ;;  %v131_v51 = vld [vmem:[#allocation4 + $0xd4] sm:$0xff]  ;;  %143 = vst [vmem:[#allocation2 + $0xb8] sm:$0xff] %v127_v48  ;;  %v4181_v25 = vld [vmem:[#allocation2 + $0x64] sm:$0xf0] }
 0x139   :  { %4973 = vmatmul.msk.bf16.vlgmr.msrb.gmra.mxu2 %vm7435_vm1, %v5912_v43  ;;  %v128_v43 = vld [vmem:[#allocation4 + $0xc0] sm:$0xf]  ;;  %147 = vst [vmem:[#allocation2 + $0xd4] sm:$0xff] %v131_v51  ;;  %v5929_v48 = vor.u32 %v5238_v11, %v4181_v25 }
 0x13a   :  { %2309 = vmatmul.bf16.vlgmr.msrb.gmra.mxu3 %v5662_v54  ;;  %v132_v54 = vld [vmem:[#allocation4 + $0xdc] sm:$0xf]  ;;  %144 = vst.msk [vmem:[#allocation2 + $0xc0] sm:$0xf] %vm102_vm0, %v128_v43 }
 0x13b   :  { %148 = vst.msk [vmem:[#allocation2 + $0xdc] sm:$0xf] %vm102_vm0, %v132_v54 }
 0x13c   :  { %v1905_v2 = vpop.f32.mrf.mxu2  ;;  %v1729_v28 = vpop.f32.mrf.mxu0  ;;  %7493 = vst [vmem:[#allocation59_spill] sm:$0xff] %v5929_v48 }
 0x13d   :  { %v1906_v7 = vadd.f32 %v1905_v2, %v1817_v31  ;;  %v1994_v13 = vpop.f32.mrf.mxu3  ;;  %v1730_v45 = vadd.f32 %v1729_v28, %v5758_v5  ;;  %v1818_v63 = vpop.f32.mrf.mxu1  ;;  %v4187_v31 = vld [vmem:[#allocation2 + $0x50] sm:$0xf]  ;;  %v5927_v2 = vor.u32 %v5241_v41, %v4179_v23 }
 0x13f   :  { %v5923_v21 = vadd.f32 %v1994_v13, %v1906_v7  ;;  %v1819_v20 = vadd.f32 %v1818_v63, %v1730_v45  ;;  %v5931_v45 = vor.u32 %v5242_v3, %v4187_v31  ;;  %v152_v31 = vld [vmem:[#allocation4 + $0xf0] sm:$0xff] }
 0x140   :  { %v156_v3 = vld [vmem:[#allocation4 + $0x10c] sm:$0xff]  ;;  %168 = vst [vmem:[#allocation2 + $0xf0] sm:$0xff] %v152_v31 }
 0x141   :  { %7494 = vst [vmem:[#allocation60_spill] sm:$0xff] %v5931_v45 }
 0x142   :  { %172 = vst [vmem:[#allocation2 + $0x10c] sm:$0xff] %v156_v3 }
 0x144   :  { %v1907_v46 = vpop.f32.mrf.mxu2  ;;  %v1732_v7 = vpop.f32.mrf.mxu0 }
 0x145   :  { %v1908_v28 = vadd.f32 %v1907_v46, %v1819_v20  ;;  %v1996_v13 = vpop.f32.mrf.mxu3  ;;  %v1733_v63 = vadd.f32 %v1732_v7, %v5758_v5  ;;  %v1821_v51 = vpop.f32.mrf.mxu1  ;;  %v153_v46 = vld [vmem:[#allocation4 + $0xf8] sm:$0xf]  ;;  %v157_v7 = vld [vmem:[#allocation4 + $0x114] sm:$0xf] }
 0x146   :  { %169 = vst.msk [vmem:[#allocation2 + $0xf8] sm:$0xf] %vm102_vm0, %v153_v46 }
 0x147   :  { %v5934_v59 = vadd.f32 %v1996_v13, %v1908_v28  ;;  %v1822_v43 = vadd.f32 %v1821_v51, %v1733_v63  ;;  %2047 = vmatmul.bf16.gmra.mxu0 %v5927_v2  ;;  %v4207_v63 = vld [vmem:[#allocation2 + $0x80] sm:$0xf]  ;;  %v5245_v51 = vld [vmem:[#allocation2 + $0x84] sm:$0xf]  ;;  %173 = vst.msk [vmem:[#allocation2 + $0x114] sm:$0xf] %vm102_vm0, %v157_v7 }
 0x148   :  { %2136 = vmatmul.bf16.gmra.mxu1 %v5929_v48  ;;  %v4689_v7 = vld [vmem:[#allocation7 + $0xd8] sm:$0xf0] }
 0x149   :  { %4974 = vmatmul.msk.bf16.gmra.mxu2 %vm7435_vm1, %v5931_v45  ;;  %v5248_v45 = vld [vmem:[#allocation2 + $0x98] sm:$0xf0] }
 0x14a   :  { %2314 = vmatmul.bf16.gmra.mxu3 %v5674_v16  ;;  %v4209_v16 = vld [vmem:[#allocation2 + $0x9c] sm:$0xf0]  ;;  %v5946_v48 = vor.u32 %v5248_v45, %v4207_v63  ;;  %v5367_v45 = vld [vmem:[#allocation7 + $0xd4] sm:$0xf] }
 0x14b   :  { %v5948_v31 = vor.u32 %v5245_v51, %v4209_v16  ;;  %v5383_v63 = vld [vmem:[#allocation7 + $0x154] sm:$0xf]  ;;  %v4753_v51 = vld [vmem:[#allocation7 + $0x158] sm:$0xf0] }
 0x14c   :  { %v1910_v54 = vpop.f32.mrf.mxu2  ;;  %v1734_v20 = vpop.f32.mrf.mxu0  ;;  %7495 = vst [vmem:[#allocation61_spill] sm:$0xff] %v5946_v48  ;;  %v4756_v16 = vor.u32 %v5383_v63, %v4753_v51  ;;  %v5255_v63 = vld [vmem:[#allocation2 + $0xd0] sm:$0xf0]  ;;  %v5256_v51 = vld [vmem:[#allocation2 + $0xd8] sm:$0xf0] }
 0x14d   :  { %v1911_v11 = vadd.f32 %v1910_v54, %v1822_v43  ;;  %v1999_v23 = vpop.f32.mrf.mxu3  ;;  %v1735_v41 = vadd.f32 %v1734_v20, %v5758_v5  ;;  %v1823_v25 = vpop.f32.mrf.mxu1  ;;  %v4215_v43 = vld [vmem:[#allocation2 + $0x88] sm:$0xf]  ;;  %v5249_v54 = vld [vmem:[#allocation2 + $0xa0] sm:$0xf0]  ;;  %7496 = vst [vmem:[#allocation62_spill] sm:$0xff] %v5948_v31 }
 0x14e   :  { %2481 = vmatpush.bf16.msra.mxu1 %v4756_v16 }
 0x14f   :  { %v5942_v28 = vadd.f32 %v1999_v23, %v1911_v11  ;;  %v1824_v13 = vadd.f32 %v1823_v25, %v1735_v41  ;;  %v5950_v41 = vor.u32 %v5249_v54, %v4215_v43 }
 0x151   :  { %7497 = vst [vmem:[#allocation63_spill] sm:$0xff] %v5950_v41 }
 0x154   :  { %v1912_v20 = vpop.f32.mrf.mxu2  ;;  %v1737_v11 = vpop.f32.mrf.mxu0 }
 0x155   :  { %v1913_v58 = vadd.f32 %v1912_v20, %v1824_v13  ;;  %v2001_v23 = vpop.f32.mrf.mxu3  ;;  %v1738_v25 = vadd.f32 %v1737_v11, %v5758_v5  ;;  %v1826_v3 = vpop.f32.mrf.mxu1  ;;  %v4692_v13 = vor.u32 %v5367_v45, %v4689_v7  ;;  %v4235_v7 = vld [vmem:[#allocation2 + $0xb8] sm:$0xf] }
 0x157   :  { %v5953_v57 = vadd.f32 %v2001_v23, %v1913_v58  ;;  %v1827_v46 = vadd.f32 %v1826_v3, %v1738_v25  ;;  %2052 = vmatmul.bf16.gmra.mxu0 %v5946_v48  ;;  %v160_v25 = vld [vmem:[#allocation4 + $0x128] sm:$0xff]  ;;  %v5252_v48 = vld [vmem:[#allocation2 + $0xbc] sm:$0xf] }
 0x158   :  { %2141 = vmatmul.bf16.gmra.mxu1 %v5948_v31  ;;  %2392 = vmatpush.bf16.msra.mxu0 %v4692_v13  ;;  %v164_v3 = vld [vmem:[#allocation4 + $0x144] sm:$0xff]  ;;  %176 = vst [vmem:[#allocation2 + $0x128] sm:$0xff] %v160_v25  ;;  %v4237_v13 = vld [vmem:[#allocation2 + $0xd4] sm:$0xf0] }
 0x159   :  { %4975 = vmatmul.msk.bf16.gmra.mxu2 %vm7435_vm1, %v5950_v41  ;;  %v161_v41 = vld [vmem:[#allocation4 + $0x130] sm:$0xf]  ;;  %180 = vst [vmem:[#allocation2 + $0x144] sm:$0xff] %v164_v3  ;;  %v5967_v25 = vor.u32 %v5252_v48, %v4237_v13 }
 0x15a   :  { %2319 = vmatmul.bf16.gmra.mxu3 %v5686_v32  ;;  %v165_v32 = vld [vmem:[#allocation4 + $0x14c] sm:$0xf]  ;;  %177 = vst.msk [vmem:[#allocation2 + $0x130] sm:$0xf] %vm102_vm0, %v161_v41 }
 0x15b   :  { %181 = vst.msk [vmem:[#allocation2 + $0x14c] sm:$0xf] %vm102_vm0, %v165_v32 }
 0x15c   :  { %v1915_v43 = vpop.f32.mrf.mxu2  ;;  %v1739_v54 = vpop.f32.mrf.mxu0  ;;  %7499 = vst [vmem:[#allocation65_spill] sm:$0xff] %v5967_v25 }
 0x15d   :  { %v1916_v58 = vadd.f32 %v1915_v43, %v1827_v46  ;;  %v2004_v20 = vpop.f32.mrf.mxu3  ;;  %v1740_v11 = vadd.f32 %v1739_v54, %v5758_v5  ;;  %v1828_v23 = vpop.f32.mrf.mxu1  ;;  %v4243_v46 = vld [vmem:[#allocation2 + $0xc0] sm:$0xf]  ;;  %v5965_v43 = vor.u32 %v5255_v63, %v4235_v7 }
 0x15f   :  { %v5961_v31 = vadd.f32 %v2004_v20, %v1916_v58  ;;  %v1829_v45 = vadd.f32 %v1828_v23, %v1740_v11  ;;  %7498 = vst [vmem:[#allocation64_spill] sm:$0xff] %v5965_v43  ;;  %v5969_v11 = vor.u32 %v5256_v51, %v4243_v46  ;;  %v185_v46 = vld [vmem:[#allocation4 + $0x160] sm:$0xff] }
 0x160   :  { %v189_v51 = vld [vmem:[#allocation4 + $0x17c] sm:$0xff]  ;;  %201 = vst [vmem:[#allocation2 + $0x160] sm:$0xff] %v185_v46 }
 0x161   :  { %7500 = vst [vmem:[#allocation66_spill] sm:$0xff] %v5969_v11 }
 0x162   :  { %205 = vst [vmem:[#allocation2 + $0x17c] sm:$0xff] %v189_v51 }
 0x164   :  { %v1917_v16 = vpop.f32.mrf.mxu2  ;;  %v1742_v58 = vpop.f32.mrf.mxu0 }
 0x165   :  { %v1918_v54 = vadd.f32 %v1917_v16, %v1829_v45  ;;  %v2006_v20 = vpop.f32.mrf.mxu3  ;;  %v1743_v23 = vadd.f32 %v1742_v58, %v5758_v5  ;;  %v1831_v3 = vpop.f32.mrf.mxu1  ;;  %v186_v16 = vld [vmem:[#allocation4 + $0x168] sm:$0xf]  ;;  %v190_v58 = vld [vmem:[#allocation4 + $0x184] sm:$0xf] }
 0x166   :  { %202 = vst.msk [vmem:[#allocation2 + $0x168] sm:$0xf] %vm102_vm0, %v186_v16 }
 0x167   :  { %v5972_v35 = vadd.f32 %v2006_v20, %v1918_v54  ;;  %v1832_v41 = vadd.f32 %v1831_v3, %v1743_v23  ;;  %2057 = vmatmul.bf16.gmra.mxu0 %v5965_v43  ;;  %v4263_v23 = vld [vmem:[#allocation2 + $0xf0] sm:$0xf]  ;;  %v5259_v3 = vld [vmem:[#allocation2 + $0xf4] sm:$0xf]  ;;  %206 = vst.msk [vmem:[#allocation2 + $0x184] sm:$0xf] %vm102_vm0, %v190_v58 }
 0x168   :  { %2146 = vmatmul.bf16.gmra.mxu1 %v5967_v25  ;;  %v4681_v58 = vld [vmem:[#allocation7 + $0xc8] sm:$0xf0] }
 0x169   :  { %4976 = vmatmul.msk.bf16.gmra.mxu2 %vm7435_vm1, %v5969_v11  ;;  %v5262_v11 = vld [vmem:[#allocation2 + $0x108] sm:$0xf0] }
 0x16a   :  { %2324 = vmatmul.bf16.gmra.mxu3 %v5698_v56  ;;  %v4265_v56 = vld [vmem:[#allocation2 + $0x10c] sm:$0xf0]  ;;  %v5984_v25 = vor.u32 %v5262_v11, %v4263_v23  ;;  %v5365_v11 = vld [vmem:[#allocation7 + $0xc4] sm:$0xf] }
 0x16b   :  { %v5986_v46 = vor.u32 %v5259_v3, %v4265_v56  ;;  %v5381_v23 = vld [vmem:[#allocation7 + $0x144] sm:$0xf]  ;;  %v4745_v3 = vld [vmem:[#allocation7 + $0x148] sm:$0xf0] }
 0x16c   :  { %v1920_v32 = vpop.f32.mrf.mxu2  ;;  %v1744_v45 = vpop.f32.mrf.mxu0  ;;  %7502 = vst [vmem:[#allocation68_spill] sm:$0xff] %v5984_v25  ;;  %v4748_v56 = vor.u32 %v5381_v23, %v4745_v3  ;;  %v5269_v23 = vld [vmem:[#allocation2 + $0x140] sm:$0xf0]  ;;  %v5270_v3 = vld [vmem:[#allocation2 + $0x148] sm:$0xf0] }
 0x16d   :  { %v1921_v48 = vadd.f32 %v1920_v32, %v1832_v41  ;;  %v2009_v7 = vpop.f32.mrf.mxu3  ;;  %v1745_v63 = vadd.f32 %v1744_v45, %v5758_v5  ;;  %v1833_v13 = vpop.f32.mrf.mxu1  ;;  %v4271_v41 = vld [vmem:[#allocation2 + $0xf8] sm:$0xf]  ;;  %v5263_v32 = vld [vmem:[#allocation2 + $0x110] sm:$0xf0]  ;;  %7503 = vst [vmem:[#allocation69_spill] sm:$0xff] %v5986_v46 }
 0x16e   :  { %2482 = vmatpush.bf16.msra.mxu1 %v4748_v56 }
 0x16f   :  { %v5980_v54 = vadd.f32 %v2009_v7, %v1921_v48  ;;  %v1834_v20 = vadd.f32 %v1833_v13, %v1745_v63  ;;  %v5988_v63 = vor.u32 %v5263_v32, %v4271_v41 }
 0x171   :  { %7501 = vst [vmem:[#allocation67_spill] sm:$0xff] %v5980_v54 }
 0x172   :  { %7504 = vst [vmem:[#allocation70_spill] sm:$0xff] %v5988_v63 }
 0x174   :  { %v1922_v45 = vpop.f32.mrf.mxu2  ;;  %v1747_v48 = vpop.f32.mrf.mxu0 }
 0x175   :  { %v1923_v43 = vadd.f32 %v1922_v45, %v1834_v20  ;;  %v2011_v7 = vpop.f32.mrf.mxu3  ;;  %v1748_v13 = vadd.f32 %v1747_v48, %v5758_v5  ;;  %v1836_v51 = vpop.f32.mrf.mxu1  ;;  %v4684_v20 = vor.u32 %v5365_v11, %v4681_v58  ;;  %v4291_v58 = vld [vmem:[#allocation2 + $0x128] sm:$0xf] }
 0x177   :  { %v5991_v54 = vadd.f32 %v2011_v7, %v1923_v43  ;;  %v1837_v16 = vadd.f32 %v1836_v51, %v1748_v13  ;;  %2062 = vmatmul.bf16.gmra.mxu0 %v5984_v25  ;;  %v193_v13 = vld [vmem:[#allocation4 + $0x198] sm:$0xff]  ;;  %v5266_v25 = vld [vmem:[#allocation2 + $0x12c] sm:$0xf] }
 0x178   :  { %2151 = vmatmul.bf16.gmra.mxu1 %v5986_v46  ;;  %2393 = vmatpush.bf16.msra.mxu0 %v4684_v20  ;;  %v197_v51 = vld [vmem:[#allocation4 + $0x1b4] sm:$0xff]  ;;  %209 = vst [vmem:[#allocation2 + $0x198] sm:$0xff] %v193_v13  ;;  %v4293_v20 = vld [vmem:[#allocation2 + $0x144] sm:$0xf0] }
 0x179   :  { %4977 = vmatmul.msk.bf16.gmra.mxu2 %vm7435_vm1, %v5988_v63  ;;  %v194_v63 = vld [vmem:[#allocation4 + $0x1a0] sm:$0xf]  ;;  %213 = vst [vmem:[#allocation2 + $0x1b4] sm:$0xff] %v197_v51  ;;  %v6005_v13 = vor.u32 %v5266_v25, %v4293_v20 }
 0x17a   :  { %2329 = vmatmul.bf16.gmra.mxu3 %v5710_v10  ;;  %v198_v10 = vld [vmem:[#allocation4 + $0x1bc] sm:$0xf]  ;;  %210 = vst.msk [vmem:[#allocation2 + $0x1a0] sm:$0xf] %vm102_vm0, %v194_v63 }
 0x17b   :  { %214 = vst.msk [vmem:[#allocation2 + $0x1bc] sm:$0xf] %vm102_vm0, %v198_v10 }
 0x17c   :  { %v1925_v41 = vpop.f32.mrf.mxu2  ;;  %v1749_v32 = vpop.f32.mrf.mxu0  ;;  %7507 = vst [vmem:[#allocation73_spill] sm:$0xff] %v6005_v13 }
 0x17d   :  { %v1926_v43 = vadd.f32 %v1925_v41, %v1837_v16  ;;  %v2014_v45 = vpop.f32.mrf.mxu3  ;;  %v1750_v48 = vadd.f32 %v1749_v32, %v5758_v5  ;;  %v1838_v7 = vpop.f32.mrf.mxu1  ;;  %v4299_v16 = vld [vmem:[#allocation2 + $0x130] sm:$0xf]  ;;  %v6003_v41 = vor.u32 %v5269_v23, %v4291_v58 }
 0x17f   :  { %v5999_v46 = vadd.f32 %v2014_v45, %v1926_v43  ;;  %v1839_v11 = vadd.f32 %v1838_v7, %v1750_v48  ;;  %7506 = vst [vmem:[#allocation72_spill] sm:$0xff] %v6003_v41  ;;  %v6007_v48 = vor.u32 %v5270_v3, %v4299_v16  ;;  %v218_v16 = vld [vmem:[#allocation4 + $0x1d0] sm:$0xff] }
 0x180   :  { %v222_v3 = vld [vmem:[#allocation4 + $0x1ec] sm:$0xff]  ;;  %234 = vst [vmem:[#allocation2 + $0x1d0] sm:$0xff] %v218_v16 }
 0x181   :  { %7505 = vst [vmem:[#allocation71_spill] sm:$0xff] %v5999_v46 }
 0x182   :  { %7508 = vst [vmem:[#allocation74_spill] sm:$0xff] %v6007_v48 }
 0x183   :  { %238 = vst [vmem:[#allocation2 + $0x1ec] sm:$0xff] %v222_v3 }
 0x184   :  { %v1927_v56 = vpop.f32.mrf.mxu2  ;;  %v1752_v43 = vpop.f32.mrf.mxu0 }
 0x185   :  { %v1928_v32 = vadd.f32 %v1927_v56, %v1839_v11  ;;  %v2016_v45 = vpop.f32.mrf.mxu3  ;;  %v1753_v7 = vadd.f32 %v1752_v43, %v5758_v5  ;;  %v1841_v51 = vpop.f32.mrf.mxu1  ;;  %v219_v56 = vld [vmem:[#allocation4 + $0x1d8] sm:$0xf]  ;;  %v223_v43 = vld [vmem:[#allocation4 + $0x1f4] sm:$0xf] }
 0x186   :  { %235 = vst.msk [vmem:[#allocation2 + $0x1d8] sm:$0xf] %vm102_vm0, %v219_v56 }
 0x187   :  { %v6010_v46 = vadd.f32 %v2016_v45, %v1928_v32  ;;  %v1842_v63 = vadd.f32 %v1841_v51, %v1753_v7  ;;  %2067 = vmatmul.bf16.gmra.mxu0 %v6003_v41  ;;  %v4319_v7 = vld [vmem:[#allocation2 + $0x160] sm:$0xf]  ;;  %v5273_v51 = vld [vmem:[#allocation2 + $0x164] sm:$0xf]  ;;  %239 = vst.msk [vmem:[#allocation2 + $0x1f4] sm:$0xf] %vm102_vm0, %v223_v43 }
 0x188   :  { %2156 = vmatmul.bf16.gmra.mxu1 %v6005_v13  ;;  %v4673_v43 = vld [vmem:[#allocation7 + $0xb8] sm:$0xf0] }
 0x189   :  { %4978 = vmatmul.msk.bf16.gmra.mxu2 %vm7435_vm1, %v6007_v48  ;;  %v5276_v48 = vld [vmem:[#allocation2 + $0x178] sm:$0xf0] }
 0x18a   :  { %2334 = vmatmul.bf16.gmra.mxu3 %v5722_v40  ;;  %v4321_v40 = vld [vmem:[#allocation2 + $0x17c] sm:$0xf0]  ;;  %v6022_v13 = vor.u32 %v5276_v48, %v4319_v7  ;;  %v5363_v48 = vld [vmem:[#allocation7 + $0xb4] sm:$0xf] }
 0x18b   :  { %v6024_v16 = vor.u32 %v5273_v51, %v4321_v40  ;;  %v5379_v7 = vld [vmem:[#allocation7 + $0x134] sm:$0xf]  ;;  %v4737_v51 = vld [vmem:[#allocation7 + $0x138] sm:$0xf0] }
 0x18c   :  { %v1930_v10 = vpop.f32.mrf.mxu2  ;;  %v1754_v11 = vpop.f32.mrf.mxu0  ;;  %7510 = vst [vmem:[#allocation76_spill] sm:$0xff] %v6022_v13  ;;  %v4740_v40 = vor.u32 %v5379_v7, %v4737_v51  ;;  %v5283_v7 = vld [vmem:[#allocation2 + $0x1b0] sm:$0xf0]  ;;  %v5284_v51 = vld [vmem:[#allocation2 + $0x1b8] sm:$0xf0] }
 0x18d   :  { %v1931_v25 = vadd.f32 %v1930_v10, %v1842_v63  ;;  %v2019_v58 = vpop.f32.mrf.mxu3  ;;  %v1755_v23 = vadd.f32 %v1754_v11, %v5758_v5  ;;  %v1843_v20 = vpop.f32.mrf.mxu1  ;;  %v4327_v63 = vld [vmem:[#allocation2 + $0x168] sm:$0xf]  ;;  %v5277_v10 = vld [vmem:[#allocation2 + $0x180] sm:$0xf0]  ;;  %7511 = vst [vmem:[#allocation77_spill] sm:$0xff] %v6024_v16 }
 0x18e   :  { %2483 = vmatpush.bf16.msra.mxu1 %v4740_v40 }
 0x18f   :  { %v6018_v32 = vadd.f32 %v2019_v58, %v1931_v25  ;;  %v1844_v45 = vadd.f32 %v1843_v20, %v1755_v23  ;;  %v6026_v23 = vor.u32 %v5277_v10, %v4327_v63 }
 0x191   :  { %7509 = vst [vmem:[#allocation75_spill] sm:$0xff] %v6018_v32 }
 0x192   :  { %7512 = vst [vmem:[#allocation78_spill] sm:$0xff] %v6026_v23 }
 0x194   :  { %v1932_v11 = vpop.f32.mrf.mxu2  ;;  %v1757_v25 = vpop.f32.mrf.mxu0 }
 0x195   :  { %v1933_v41 = vadd.f32 %v1932_v11, %v1844_v45  ;;  %v2021_v58 = vpop.f32.mrf.mxu3  ;;  %v1758_v20 = vadd.f32 %v1757_v25, %v5758_v5  ;;  %v1846_v3 = vpop.f32.mrf.mxu1  ;;  %v4676_v45 = vor.u32 %v5363_v48, %v4673_v43  ;;  %v4347_v43 = vld [vmem:[#allocation2 + $0x198] sm:$0xf] }
 0x197   :  { %v6029_v32 = vadd.f32 %v2021_v58, %v1933_v41  ;;  %v1847_v56 = vadd.f32 %v1846_v3, %v1758_v20  ;;  %2072 = vmatmul.bf16.gmra.mxu0 %v6022_v13  ;;  %v226_v20 = vld [vmem:[#allocation4 + $0x208] sm:$0xff]  ;;  %v5280_v13 = vld [vmem:[#allocation2 + $0x19c] sm:$0xf] }
 0x198   :  { %2161 = vmatmul.bf16.gmra.mxu1 %v6024_v16  ;;  %2394 = vmatpush.bf16.msra.mxu0 %v4676_v45  ;;  %v230_v3 = vld [vmem:[#allocation4 + $0x224] sm:$0xff]  ;;  %242 = vst [vmem:[#allocation2 + $0x208] sm:$0xff] %v226_v20  ;;  %v4349_v45 = vld [vmem:[#allocation2 + $0x1b4] sm:$0xf0] }
 0x199   :  { %4979 = vmatmul.msk.bf16.gmra.mxu2 %vm7435_vm1, %v6026_v23  ;;  %v227_v23 = vld [vmem:[#allocation4 + $0x210] sm:$0xf]  ;;  %246 = vst [vmem:[#allocation2 + $0x224] sm:$0xff] %v230_v3  ;;  %v6043_v20 = vor.u32 %v5280_v13, %v4349_v45 }
 0x19a   :  { %2339 = vmatmul.bf16.gmra.mxu3 %v5734_v0  ;;  %v231_v0 = vld [vmem:[#allocation4 + $0x22c] sm:$0xf]  ;;  %243 = vst.msk [vmem:[#allocation2 + $0x210] sm:$0xf] %vm102_vm0, %v227_v23 }
 0x19b   :  { %247 = vst.msk [vmem:[#allocation2 + $0x22c] sm:$0xf] %vm102_vm0, %v231_v0  ;;  %v5403_v0 = vld [vmem:[#allocation7 + $0x1f4] sm:$0xf] }
 0x19c   :  { %v1935_v63 = vpop.f32.mrf.mxu2  ;;  %v1759_v10 = vpop.f32.mrf.mxu0  ;;  %7515 = vst [vmem:[#allocation81_spill] sm:$0xff] %v6043_v20 }
 0x19d   :  { %v1936_v41 = vadd.f32 %v1935_v63, %v1847_v56  ;;  %v2024_v11 = vpop.f32.mrf.mxu3  ;;  %v1760_v25 = vadd.f32 %v1759_v10, %v5758_v5  ;;  %v1848_v58 = vpop.f32.mrf.mxu1  ;;  %v4355_v56 = vld [vmem:[#allocation2 + $0x1a0] sm:$0xf]  ;;  %v6041_v63 = vor.u32 %v5283_v7, %v4347_v43  ;;  %v5419_v43 = vld [vmem:[#allocation7 + $0x274] sm:$0xf]  ;;  %v4897_v7 = vld [vmem:[#allocation7 + $0x278] sm:$0xf0] }
 0x19e   :  { %v4900_v45 = vor.u32 %v5419_v43, %v4897_v7  ;;  %v5290_v43 = vld [vmem:[#allocation2 + $0x1e8] sm:$0xf0]  ;;  %v5291_v7 = vld [vmem:[#allocation2 + $0x1f0] sm:$0xf0] }
 0x19f   :  { %v6037_v16 = vadd.f32 %v2024_v11, %v1936_v41  ;;  %v1849_v48 = vadd.f32 %v1848_v58, %v1760_v25  ;;  %7514 = vst [vmem:[#allocation80_spill] sm:$0xff] %v6041_v63  ;;  %v6045_v25 = vor.u32 %v5284_v51, %v4355_v56 }
 0x1a0   :  { %2657 = vmatpush.bf16.msra.mxu3 %v4900_v45 }
 0x1a1   :  { %7513 = vst [vmem:[#allocation79_spill] sm:$0xff] %v6037_v16 }
 0x1a2   :  { %7516 = vst [vmem:[#allocation82_spill] sm:$0xff] %v6045_v25 }
 0x1a4   :  { %v1937_v40 = vpop.f32.mrf.mxu2  ;;  %v1762_v41 = vpop.f32.mrf.mxu0 }
 0x1a5   :  { %v1938_v10 = vadd.f32 %v1937_v40, %v1849_v48  ;;  %v2026_v11 = vpop.f32.mrf.mxu3  ;;  %v1763_v58 = vadd.f32 %v1762_v41, %v5758_v5  ;;  %v1851_v3 = vpop.f32.mrf.mxu1  ;;  %v4833_v48 = vld [vmem:[#allocation7 + $0x1f8] sm:$0xf0] }
 0x1a6   :  { %v4836_v13 = vor.u32 %v5403_v0, %v4833_v48  ;;  %v4375_v0 = vld [vmem:[#allocation2 + $0x1d0] sm:$0xf]  ;;  %v5287_v48 = vld [vmem:[#allocation2 + $0x1d4] sm:$0xf] }
 0x1a7   :  { %v6048_v16 = vadd.f32 %v2026_v11, %v1938_v10  ;;  %v1852_v23 = vadd.f32 %v1851_v3, %v1763_v58  ;;  %2077 = vmatmul.bf16.gmra.mxu0 %v6041_v63  ;;  %v251_v58 = vld [vmem:[#allocation4 + $0x240] sm:$0xff]  ;;  %v6060_v45 = vor.u32 %v5290_v43, %v4375_v0  ;;  %v4729_v43 = vld [vmem:[#allocation7 + $0x128] sm:$0xf0] }
 0x1a8   :  { %2166 = vmatmul.bf16.gmra.mxu1 %v6043_v20  ;;  %2568 = vmatpush.bf16.msra.mxu2 %v4836_v13  ;;  %v255_v3 = vld [vmem:[#allocation4 + $0x25c] sm:$0xff]  ;;  %267 = vst [vmem:[#allocation2 + $0x240] sm:$0xff] %v251_v58  ;;  %v256_v63 = vld [vmem:[#allocation4 + $0x264] sm:$0xf]  ;;  %v4377_v13 = vld [vmem:[#allocation2 + $0x1ec] sm:$0xf0] }
 0x1a9   :  { %4980 = vmatmul.msk.bf16.gmra.mxu2 %vm7435_vm1, %v6045_v25  ;;  %v252_v25 = vld [vmem:[#allocation4 + $0x248] sm:$0xf]  ;;  %271 = vst [vmem:[#allocation2 + $0x25c] sm:$0xff] %v255_v3 }
 0x1aa   :  { %2344 = vmatmul.bf16.gmra.mxu3 %v5746_v30  ;;  %268 = vst.msk [vmem:[#allocation2 + $0x248] sm:$0xf] %vm102_vm0, %v252_v25 }
 0x1ab   :  { %272 = vst.msk [vmem:[#allocation2 + $0x264] sm:$0xf] %vm102_vm0, %v256_v63  ;;  %v5361_v63 = vld [vmem:[#allocation7 + $0xa4] sm:$0xf] }
 0x1ac   :  { %v1940_v56 = vpop.f32.mrf.mxu2  ;;  %v1764_v40 = vpop.f32.mrf.mxu0 }
 0x1ad   :  { %v1941_v51 = vadd.f32 %v1940_v56, %v1852_v23  ;;  %v2029_v10 = vpop.f32.mrf.mxu3  ;;  %v1765_v41 = vadd.f32 %v1764_v40, %v5758_v5  ;;  %v1853_v11 = vpop.f32.mrf.mxu1  ;;  %v4383_v23 = vld [vmem:[#allocation2 + $0x1d8] sm:$0xf] }
 0x1af   :  { %v6056_v20 = vadd.f32 %v2029_v10, %v1941_v51  ;;  %v1854_v30 = vadd.f32 %v1853_v11, %v1765_v41  ;;  %v6062_v10 = vor.u32 %v5287_v48, %v4377_v13  ;;  %v6064_v41 = vor.u32 %v5291_v7, %v4383_v23  ;;  %v5377_v48 = vld [vmem:[#allocation7 + $0x124] sm:$0xf] }
 0x1b0   :  { %v4732_v13 = vor.u32 %v5377_v48, %v4729_v43  ;;  %v5297_v48 = vld [vmem:[#allocation2 + $0x220] sm:$0xf0]  ;;  %v5298_v43 = vld [vmem:[#allocation2 + $0x228] sm:$0xf0] }
 0x1b1   :  { %7517 = vst [vmem:[#allocation83_spill] sm:$0xff] %v6062_v10 }
 0x1b2   :  { %7518 = vst [vmem:[#allocation84_spill] sm:$0xff] %v6064_v41  ;;  %2484 = vmatpush.bf16.msra.mxu1 %v4732_v13 }
 0x1b4   :  { %v1942_v5 = vpop.f32.mrf.mxu2  ;;  %v2043_v40 = vpop.f32.mrf.mxu0 }
 0x1b5   :  { %v1943_v56 = vadd.f32 %v1942_v5, %v1854_v30  ;;  %v2031_v51 = vpop.f32.mrf.mxu3  ;;  %v2044_v11 = vadd.f32 %v2043_v40, %v5774_v53  ;;  %v2132_v58 = vpop.f32.mrf.mxu1  ;;  %v4665_v30 = vld [vmem:[#allocation7 + $0xa8] sm:$0xf0]  ;;  %v259_v40 = vld [vmem:[#allocation4 + $0x278] sm:$0xff] }
 0x1b6   :  { %v4668_v0 = vor.u32 %v5361_v63, %v4665_v30  ;;  %275 = vst [vmem:[#allocation2 + $0x278] sm:$0xff] %v259_v40  ;;  %v4403_v30 = vld [vmem:[#allocation2 + $0x208] sm:$0xf] }
 0x1b7   :  { %v6067_v3 = vadd.f32 %v2031_v51, %v1943_v56  ;;  %v2133_v25 = vadd.f32 %v2132_v58, %v2044_v11  ;;  %2082 = vmatmul.bf16.gmra.mxu0 %v6060_v45  ;;  %v263_v11 = vld [vmem:[#allocation4 + $0x294] sm:$0xff]  ;;  %v260_v58 = vld [vmem:[#allocation4 + $0x280] sm:$0xf] }
 0x1b8   :  { %2171 = vmatmul.bf16.gmra.mxu1 %v6062_v10  ;;  %2395 = vmatpush.bf16.msra.mxu0 %v4668_v0  ;;  %279 = vst [vmem:[#allocation2 + $0x294] sm:$0xff] %v263_v11  ;;  %v4405_v0 = vld [vmem:[#allocation2 + $0x224] sm:$0xf0] }
 0x1b9   :  { %4981 = vmatmul.msk.bf16.gmra.mxu2 %vm7435_vm1, %v6064_v41  ;;  %v5294_v41 = vld [vmem:[#allocation2 + $0x20c] sm:$0xf]  ;;  %276 = vst.msk [vmem:[#allocation2 + $0x280] sm:$0xf] %vm102_vm0, %v260_v58  ;;  %v7522_v58 = vmov 0 }
 0x1ba   :  { %2349 = vmatmul.bf16.gmra.mxu3 %v5760_v14  ;;  %v264_v14 = vld [vmem:[#allocation4 + $0x29c] sm:$0xf] }
 0x1bb   :  { %280 = vst.msk [vmem:[#allocation2 + $0x29c] sm:$0xf] %vm102_vm0, %v264_v14 }
 0x1bc   :  { %v2221_v53 = vpop.f32.mrf.mxu2  ;;  %v2045_v7 = vpop.f32.mrf.mxu0 }
 0x1bd   :  { %v6074_v23 = vadd.f32 %v2221_v53, %v2133_v25  ;;  %v6076_v5 = vpop.f32.mrf.mxu3  ;;  %v2046_v56 = vadd.f32 %v2045_v7, %v5785_v47  ;;  %v2134_v51 = vpop.f32.mrf.mxu1  ;;  %v4411_v25 = vld [vmem:[#allocation2 + $0x210] sm:$0xf]  ;;  %v6081_v47 = vor.u32 %v5297_v48, %v4403_v30  ;;  %v4889_v48 = vld [vmem:[#allocation7 + $0x268] sm:$0xf0] }
 0x1bf   :  { %v2135_v63 = vadd.f32 %v2134_v51, %v2046_v56  ;;  %7519 = vst [vmem:[#allocation85_spill] sm:$0xff] %v6081_v47  ;;  %v6087_v56 = vor.u32 %v5294_v41, %v4405_v0  ;;  %v6089_v51 = vor.u32 %v5298_v43, %v4411_v25  ;;  %vm3037_vm2 = vcmp.ge.f32.partialorder %v6074_v23, 1.0  ;;  %v4825_v41 = vld [vmem:[#allocation7 + $0x1e8] sm:$0xf0] }
 0x1c1   :  { %7520 = vst [vmem:[#allocation86_spill] sm:$0xff] %v6087_v56 }
 0x1c2   :  { %7521 = vst [vmem:[#allocation87_spill] sm:$0xff] %v6089_v51 }
 0x1c4   :  { %v2223_v13 = vpop.f32.mrf.mxu2  ;;  %v2048_v7 = vpop.f32.mrf.mxu0 }
 0x1c5   :  { %v6083_v53 = vadd.f32 %v2223_v13, %v2135_v63  ;;  %v6085_v40 = vpop.f32.mrf.mxu3  ;;  %v2049_v11 = vadd.f32 %v2048_v7, %v5792_v22  ;;  %v2137_v10 = vpop.f32.mrf.mxu1  ;;  %v5401_v22 = vld [vmem:[#allocation7 + $0x1e4] sm:$0xf] }
 0x1c6   :  { %v5417_v63 = vld [vmem:[#allocation7 + $0x264] sm:$0xf]  ;;  %v4828_v30 = vor.u32 %v5401_v22, %v4825_v41  ;;  %v4431_v22 = vld [vmem:[#allocation2 + $0x240] sm:$0xf] }
 0x1c7   :  { %vm3039_vm3 = vcmp.ge.f32.partialorder %v6083_v53, 1.0  ;;  %v2138_v14 = vadd.f32 %v2137_v10, %v2049_v11  ;;  %2087 = vmatmul.bf16.gmra.mxu0 %v6081_v47  ;;  %v4892_v25 = vor.u32 %v5417_v63, %v4889_v48  ;;  %v5301_v41 = vld [vmem:[#allocation2 + $0x244] sm:$0xf]  ;;  %v5304_v63 = vld [vmem:[#allocation2 + $0x258] sm:$0xf0] }
 0x1c8   :  { %vm6098_vm4 = vmpackc.low %vm3039_vm3, %vm3037_vm2  ;;  %2176 = vmatmul.bf16.gmra.mxu1 %v6087_v56  ;;  %2569 = vmatpush.bf16.msra.mxu2 %v4828_v30  ;;  %v288_v56 = vld [vmem:[#allocation4 + $0x2cc] sm:$0xff]  ;;  %v4439_v48 = vld [vmem:[#allocation2 + $0x248] sm:$0xf]  ;;  %v6114_v30 = vor.u32 %v5304_v63, %v4431_v22 }
 0x1c9   :  { %v7523_v58 = vsel %vm6098_vm4, 4294967295, %v7522_v58  ;;  %4982 = vmatmul.msk.bf16.gmra.mxu2 %vm7435_vm1, %v6089_v51  ;;  %2658 = vmatpush.bf16.msra.mxu3 %v4892_v25  ;;  %v284_v51 = vld [vmem:[#allocation4 + $0x2b0] sm:$0xff]  ;;  %304 = vst [vmem:[#allocation2 + $0x2cc] sm:$0xff] %v288_v56  ;;  %v4721_v63 = vld [vmem:[#allocation7 + $0x118] sm:$0xf0] }
 0x1ca   :  { %7524 = vst [vmem:[#allocation88_spill] sm:$0xff] %v7523_v58  ;;  %2354 = vmatmul.bf16.gmra.mxu3 %v5776_v26  ;;  %v285_v26 = vld [vmem:[#allocation4 + $0x2b8] sm:$0xf]  ;;  %v289_v58 = vld [vmem:[#allocation4 + $0x2d4] sm:$0xf] }
 0x1cb   :  { %300 = vst [vmem:[#allocation2 + $0x2b0] sm:$0xff] %v284_v51  ;;  %v5375_v22 = vld [vmem:[#allocation7 + $0x114] sm:$0xf] }
 0x1cc   :  { %v2226_v0 = vpop.f32.mrf.mxu2  ;;  %v2050_v13 = vpop.f32.mrf.mxu0  ;;  %301 = vst.msk [vmem:[#allocation2 + $0x2b8] sm:$0xf] %vm102_vm0, %v285_v26  ;;  %v4657_v26 = vld [vmem:[#allocation7 + $0x98] sm:$0xf0] }
 0x1cd   :  { %v6107_v43 = vadd.f32 %v2226_v0, %v2138_v14  ;;  %v6109_v10 = vpop.f32.mrf.mxu3  ;;  %v2051_v7 = vadd.f32 %v2050_v13, %v5803_v15  ;;  %v2139_v11 = vpop.f32.mrf.mxu1  ;;  %v4433_v14 = vld [vmem:[#allocation2 + $0x25c] sm:$0xf0]  ;;  %v5305_v0 = vld [vmem:[#allocation2 + $0x260] sm:$0xf0]  ;;  %305 = vst.msk [vmem:[#allocation2 + $0x2d4] sm:$0xf] %vm102_vm0, %v289_v58 }
 0x1ce   :  { %7525 = vst [vmem:[#allocation89_spill] sm:$0xff] %v6109_v10 }
 0x1cf   :  { %v2140_v47 = vadd.f32 %v2139_v11, %v2051_v7  ;;  %7526 = vst [vmem:[#allocation90_spill] sm:$0xff] %v6114_v30  ;;  %v6120_v7 = vor.u32 %v5301_v41, %v4433_v14  ;;  %v6122_v11 = vor.u32 %v5305_v0, %v4439_v48  ;;  %vm3041_vm5 = vcmp.ge.f32.partialorder %v6107_v43, 1.0 }
 0x1d0   :  { %v4724_v48 = vor.u32 %v5375_v22, %v4721_v63  ;;  %v5311_v22 = vld [vmem:[#allocation2 + $0x290] sm:$0xf0]  ;;  %v5312_v63 = vld [vmem:[#allocation2 + $0x298] sm:$0xf0] }
 0x1d1   :  { %7528 = vst [vmem:[#allocation92_spill] sm:$0xff] %v6120_v7 }
 0x1d2   :  { %7529 = vst [vmem:[#allocation93_spill] sm:$0xff] %v6122_v11  ;;  %2485 = vmatpush.bf16.msra.mxu1 %v4724_v48 }
 0x1d4   :  { %v2228_v15 = vpop.f32.mrf.mxu2  ;;  %v2053_v13 = vpop.f32.mrf.mxu0 }
 0x1d5   :  { %v6116_v25 = vadd.f32 %v2228_v15, %v2140_v47  ;;  %v6118_v51 = vpop.f32.mrf.mxu3  ;;  %v2054_v56 = vadd.f32 %v2053_v13, %v5810_v6  ;;  %v2142_v10 = vpop.f32.mrf.mxu1  ;;  %v7530_v47 = vmov 0  ;;  %v3045_v6 = vsel %vm3037_vm2, 0.0, %v6074_v23 }
 0x1d6   :  { %7527 = vst [vmem:[#allocation91_spill] sm:$0xff] %v6118_v51  ;;  %v3242_v0 = vmul.f32 0.5, %v3045_v6  ;;  %v4459_v51 = vld [vmem:[#allocation2 + $0x278] sm:$0xf]  ;;  %v5308_v6 = vld [vmem:[#allocation2 + $0x27c] sm:$0xf] }
 0x1d7   :  { %vm3043_vm6 = vcmp.ge.f32.partialorder %v6116_v25, 1.0  ;;  %v2143_v58 = vadd.f32 %v2142_v10, %v2054_v56  ;;  %2092 = vmatmul.bf16.gmra.mxu0 %v6114_v30  ;;  %v5359_v10 = vld [vmem:[#allocation7 + $0x94] sm:$0xf]  ;;  %v6153_v48 = vor.u32 %v5311_v22, %v4459_v51  ;;  %v3049_v51 = vsel %vm3041_vm5, 0.0, %v6107_v43 }
 0x1d8   :  { %vm6132_vm7 = vmpackc.low %vm3043_vm6, %vm3041_vm5  ;;  %2181 = vmatmul.bf16.gmra.mxu1 %v6120_v7  ;;  %v4660_v41 = vor.u32 %v5359_v10, %v4657_v26  ;;  %v297_v10 = vld [vmem:[#allocation4 + $0x30c] sm:$0xf] }
 0x1d9   :  { %v7531_v47 = vsel %vm6132_vm7, 4294967295, %v7530_v47  ;;  %4983 = vmatmul.msk.bf16.gmra.mxu2 %vm7435_vm1, %v6122_v11  ;;  %v292_v11 = vld [vmem:[#allocation4 + $0x2e8] sm:$0xff]  ;;  %313 = vst.msk [vmem:[#allocation2 + $0x30c] sm:$0xf] %vm102_vm0, %v297_v10  ;;  %v5399_v10 = vld [vmem:[#allocation7 + $0x1d4] sm:$0xf] }
 0x1da   :  { %7532 = vst [vmem:[#allocation94_spill] sm:$0xff] %v7531_v47  ;;  %2359 = vmatmul.bf16.gmra.mxu3 %v5794_v52  ;;  %2396 = vmatpush.bf16.msra.mxu0 %v4660_v41  ;;  %v296_v47 = vld [vmem:[#allocation4 + $0x304] sm:$0xff]  ;;  %v293_v52 = vld [vmem:[#allocation4 + $0x2f0] sm:$0xf]  ;;  %v4461_v41 = vld [vmem:[#allocation2 + $0x294] sm:$0xf0] }
 0x1db   :  { %308 = vst [vmem:[#allocation2 + $0x2e8] sm:$0xff] %v292_v11 }
 0x1dc   :  { %v2231_v14 = vpop.f32.mrf.mxu2  ;;  %v2055_v13 = vpop.f32.mrf.mxu0  ;;  %312 = vst [vmem:[#allocation2 + $0x304] sm:$0xff] %v296_v47  ;;  %v6157_v47 = vor.u32 %v5308_v6, %v4461_v41  ;;  %v5415_v6 = vld [vmem:[#allocation7 + $0x254] sm:$0xf] }
 0x1dd   :  { %v2232_v15 = vadd.f32 %v2231_v14, %v2143_v58  ;;  %v6143_v56 = vpop.f32.mrf.mxu3  ;;  %v2056_v23 = vadd.f32 %v2055_v13, %v5821_v9  ;;  %v2144_v7 = vpop.f32.mrf.mxu1  ;;  %v3047_v58 = vsel %vm3039_vm3, 0.0, %v6083_v53  ;;  %309 = vst.msk [vmem:[#allocation2 + $0x2f0] sm:$0xf] %vm102_vm0, %v293_v52  ;;  %v4467_v9 = vld [vmem:[#allocation2 + $0x280] sm:$0xf] }
 0x1de   :  { %7533 = vst [vmem:[#allocation95_spill] sm:$0xff] %v6143_v56  ;;  %v3244_v11 = vmul.f32 0.5, %v3047_v58  ;;  %v6159_v13 = vor.u32 %v5312_v63, %v4467_v9  ;;  %v4881_v58 = vld [vmem:[#allocation7 + $0x258] sm:$0xf0]  ;;  %v3246_v63 = vmul.f32 0.5, %v3049_v51 }
 0x1df   :  { %v6146_v30 = vadd.f32 %v3242_v0, %v2232_v15  ;;  %v2145_v26 = vadd.f32 %v2144_v7, %v2056_v23  ;;  %7534 = vst [vmem:[#allocation96_spill] sm:$0xff] %v6153_v48  ;;  %v4884_v9 = vor.u32 %v5415_v6, %v4881_v58  ;;  %v5318_v6 = vld [vmem:[#allocation2 + $0x2c8] sm:$0xf0]  ;;  %v5315_v51 = vld [vmem:[#allocation2 + $0x2b4] sm:$0xf] }
 0x1e0   :  { %7535 = vst [vmem:[#allocation97_spill] sm:$0xff] %v6157_v47  ;;  %v5319_v58 = vld [vmem:[#allocation2 + $0x2d0] sm:$0xf0] }
 0x1e1   :  { %7536 = vst [vmem:[#allocation98_spill] sm:$0xff] %v6159_v13  ;;  %vm3258_vm8 = vcmp.ge.f32.partialorder %v6146_v30, 1.0  ;;  %2659 = vmatpush.bf16.msra.mxu3 %v4884_v9 }
 0x1e4   :  { %v2233_v14 = vpop.f32.mrf.mxu2  ;;  %v2058_v7 = vpop.f32.mrf.mxu0 }
 0x1e5   :  { %v2234_v0 = vadd.f32 %v2233_v14, %v2145_v26  ;;  %v6155_v15 = vpop.f32.mrf.mxu3  ;;  %v2059_v53 = vadd.f32 %v2058_v7, %v5828_v49  ;;  %v2147_v23 = vpop.f32.mrf.mxu1  ;;  %v7537_v49 = vmov 0  ;;  %v4817_v26 = vld [vmem:[#allocation7 + $0x1d8] sm:$0xf0] }
 0x1e6   :  { %v4820_v22 = vor.u32 %v5399_v10, %v4817_v26  ;;  %v4487_v10 = vld [vmem:[#allocation2 + $0x2b0] sm:$0xf]  ;;  %v322_v26 = vld [vmem:[#allocation4 + $0x344] sm:$0xf] }
 0x1e7   :  { %v6162_v52 = vadd.f32 %v3244_v11, %v2234_v0  ;;  %v2148_v56 = vadd.f32 %v2147_v23, %v2059_v53  ;;  %2097 = vmatmul.bf16.gmra.mxu0 %v6153_v48  ;;  %v317_v53 = vld [vmem:[#allocation4 + $0x320] sm:$0xff]  ;;  %338 = vst.msk [vmem:[#allocation2 + $0x344] sm:$0xf] %vm102_vm0, %v322_v26  ;;  %v6192_v9 = vor.u32 %v5318_v6, %v4487_v10  ;;  %v4649_v10 = vld [vmem:[#allocation7 + $0x88] sm:$0xf0]  ;;  %v7544_v26 = vmov 0 }
 0x1e8   :  { %2186 = vmatmul.bf16.gmra.mxu1 %v6157_v47  ;;  %2570 = vmatpush.bf16.msra.mxu2 %v4820_v22  ;;  %v321_v23 = vld [vmem:[#allocation4 + $0x33c] sm:$0xff]  ;;  %333 = vst [vmem:[#allocation2 + $0x320] sm:$0xff] %v317_v53  ;;  %v4489_v22 = vld [vmem:[#allocation2 + $0x2cc] sm:$0xf0] }
 0x1e9   :  { %vm3260_vm9 = vcmp.ge.f32.partialorder %v6162_v52, 1.0  ;;  %4984 = vmatmul.msk.bf16.gmra.mxu2 %vm7435_vm1, %v6159_v13  ;;  %337 = vst [vmem:[#allocation2 + $0x33c] sm:$0xff] %v321_v23 }
 0x1ea   :  { %vm6177_vm10 = vmpackc.low %vm3260_vm9, %vm3258_vm8  ;;  %2364 = vmatmul.bf16.gmra.mxu3 %v5812_v38  ;;  %v318_v38 = vld [vmem:[#allocation4 + $0x328] sm:$0xf]  ;;  %7540 = vst [vmem:[#allocation100_spill] sm:$0xff] %v6192_v9 }
 0x1eb   :  { %v7538_v49 = vsel %vm6177_vm10, 4294967295, %v7537_v49  ;;  %334 = vst.msk [vmem:[#allocation2 + $0x328] sm:$0xf] %vm102_vm0, %v318_v38 }
 0x1ec   :  { %7539 = vst [vmem:[#allocation99_spill] sm:$0xff] %v7538_v49  ;;  %v2236_v41 = vpop.f32.mrf.mxu2  ;;  %v2060_v43 = vpop.f32.mrf.mxu0 }
 0x1ed   :  { %v2237_v14 = vadd.f32 %v2236_v41, %v2148_v56  ;;  %v6182_v11 = vpop.f32.mrf.mxu3  ;;  %v2061_v0 = vadd.f32 %v2060_v43, %v5839_v50  ;;  %v2149_v7 = vpop.f32.mrf.mxu1  ;;  %v3051_v56 = vsel %vm3043_vm6, 0.0, %v6116_v25  ;;  %v4495_v50 = vld [vmem:[#allocation2 + $0x2b8] sm:$0xf] }
 0x1ee   :  { %v6198_v53 = vor.u32 %v5319_v58, %v4495_v50 }
 0x1ef   :  { %v6185_v13 = vadd.f32 %v3246_v63, %v2237_v14  ;;  %v2150_v47 = vadd.f32 %v2149_v7, %v2061_v0  ;;  %v3248_v63 = vmul.f32 0.5, %v3051_v56  ;;  %v6196_v7 = vor.u32 %v5315_v51, %v4489_v22  ;;  %v5373_v51 = vld [vmem:[#allocation7 + $0x104] sm:$0xf]  ;;  %v4713_v56 = vld [vmem:[#allocation7 + $0x108] sm:$0xf0] }
 0x1f0   :  { %7543 = vst [vmem:[#allocation103_spill] sm:$0xff] %v6198_v53  ;;  %v4716_v50 = vor.u32 %v5373_v51, %v4713_v56  ;;  %v5325_v51 = vld [vmem:[#allocation2 + $0x300] sm:$0xf0]  ;;  %v4523_v56 = vld [vmem:[#allocation2 + $0x2f0] sm:$0xf] }
 0x1f1   :  { %7542 = vst [vmem:[#allocation102_spill] sm:$0xff] %v6196_v7  ;;  %vm3262_vm11 = vcmp.ge.f32.partialorder %v6185_v13, 1.0 }
 0x1f2   :  { %2486 = vmatpush.bf16.msra.mxu1 %v4716_v50  ;;  %v4809_v50 = vld [vmem:[#allocation7 + $0x1c8] sm:$0xf0] }
 0x1f4   :  { %v2238_v41 = vpop.f32.mrf.mxu2  ;;  %v2063_v43 = vpop.f32.mrf.mxu0 }
 0x1f5   :  { %v2239_v14 = vadd.f32 %v2238_v41, %v2150_v47  ;;  %v6194_v0 = vpop.f32.mrf.mxu3  ;;  %v2064_v25 = vadd.f32 %v2063_v43, %v5846_v37  ;;  %v2152_v23 = vpop.f32.mrf.mxu1  ;;  %v3266_v47 = vsel %vm3258_vm8, 0.0, %v6146_v30  ;;  %v5357_v37 = vld [vmem:[#allocation7 + $0x84] sm:$0xf]  ;;  %v325_v43 = vld [vmem:[#allocation4 + $0x358] sm:$0xff] }
 0x1f6   :  { %7541 = vst [vmem:[#allocation101_spill] sm:$0xff] %v6194_v0  ;;  %v4652_v6 = vor.u32 %v5357_v37, %v4649_v10  ;;  %v3368_v41 = vmul.f32 0.5, %v3266_v47  ;;  %v4515_v37 = vld [vmem:[#allocation2 + $0x2e8] sm:$0xf]  ;;  %v330_v10 = vld [vmem:[#allocation4 + $0x37c] sm:$0xf] }
 0x1f7   :  { %v6201_v38 = vadd.f32 %v3248_v63, %v2239_v14  ;;  %v2153_v49 = vadd.f32 %v2152_v23, %v2064_v25  ;;  %2102 = vmatmul.bf16.gmra.mxu0 %v6192_v9  ;;  %v329_v25 = vld [vmem:[#allocation4 + $0x374] sm:$0xff]  ;;  %v326_v23 = vld [vmem:[#allocation4 + $0x360] sm:$0xf]  ;;  %341 = vst [vmem:[#allocation2 + $0x358] sm:$0xff] %v325_v43  ;;  %v4517_v47 = vld [vmem:[#allocation2 + $0x304] sm:$0xf0] }
 0x1f8   :  { %2191 = vmatmul.bf16.gmra.mxu1 %v6196_v7  ;;  %2397 = vmatpush.bf16.msra.mxu0 %v4652_v6  ;;  %345 = vst [vmem:[#allocation2 + $0x374] sm:$0xff] %v329_v25  ;;  %v5326_v6 = vld [vmem:[#allocation2 + $0x308] sm:$0xf0]  ;;  %v5413_v9 = vld [vmem:[#allocation7 + $0x244] sm:$0xf] }
 0x1f9   :  { %vm3264_vm12 = vcmp.ge.f32.partialorder %v6201_v38, 1.0  ;;  %4985 = vmatmul.msk.bf16.gmra.mxu2 %vm7435_vm1, %v6198_v53  ;;  %342 = vst.msk [vmem:[#allocation2 + $0x360] sm:$0xf] %vm102_vm0, %v326_v23  ;;  %v6237_v23 = vor.u32 %v5326_v6, %v4523_v56  ;;  %v5393_v56 = vld [vmem:[#allocation7 + $0x1a4] sm:$0xf] }
 0x1fa   :  { %2369 = vmatmul.bf16.gmra.mxu3 %v5830_v4  ;;  %vm6217_vm13 = vmpackc.low %vm3264_vm12, %vm3262_vm11  ;;  %346 = vst.msk [vmem:[#allocation2 + $0x37c] sm:$0xf] %vm102_vm0, %v330_v10 }
 0x1fb   :  { %v7545_v26 = vsel %vm6217_vm13, 4294967295, %v7544_v26  ;;  %7549 = vst [vmem:[#allocation107_spill] sm:$0xff] %v6237_v23 }
 0x1fc   :  { %7546 = vst [vmem:[#allocation104_spill] sm:$0xff] %v7545_v26  ;;  %v2241_v22 = vpop.f32.mrf.mxu2  ;;  %v2065_v30 = vpop.f32.mrf.mxu0 }
 0x1fd   :  { %v2242_v58 = vadd.f32 %v2241_v22, %v2153_v49  ;;  %v6221_v63 = vpop.f32.mrf.mxu3  ;;  %v2066_v4 = vadd.f32 %v2065_v30, %v5857_v1  ;;  %v2154_v14 = vpop.f32.mrf.mxu1  ;;  %v5322_v49 = vld [vmem:[#allocation2 + $0x2ec] sm:$0xf]  ;;  %v3268_v1 = vsel %vm3260_vm9, 0.0, %v6162_v52  ;;  %v5397_v22 = vld [vmem:[#allocation7 + $0x1c4] sm:$0xf] }
 0x1fe   :  { %7547 = vst [vmem:[#allocation105_spill] sm:$0xff] %v6221_v63  ;;  %v4812_v30 = vor.u32 %v5397_v22, %v4809_v50  ;;  %v6235_v26 = vor.u32 %v5322_v49, %v4517_v47  ;;  %v4873_v52 = vld [vmem:[#allocation7 + $0x248] sm:$0xf0]  ;;  %v5411_v49 = vld [vmem:[#allocation7 + $0x234] sm:$0xf] }
 0x1ff   :  { %v6224_v53 = vadd.f32 %v3368_v41, %v2242_v58  ;;  %v2155_v7 = vadd.f32 %v2154_v14, %v2066_v4  ;;  %v6231_v41 = vor.u32 %v5325_v51, %v4515_v37  ;;  %v3370_v14 = vmul.f32 0.5, %v3268_v1  ;;  %v5395_v37 = vld [vmem:[#allocation7 + $0x1b4] sm:$0xf]  ;;  %v4793_v1 = vld [vmem:[#allocation7 + $0x1a8] sm:$0xf0] }
 0x200   :  { %7548 = vst [vmem:[#allocation106_spill] sm:$0xff] %v6235_v26  ;;  %2571 = vmatpush.bf16.msra.mxu2 %v4812_v30  ;;  %v4876_v0 = vor.u32 %v5413_v9, %v4873_v52  ;;  %v3270_v9 = vsel %vm3262_vm11, 0.0, %v6185_v13  ;;  %v4796_v22 = vor.u32 %v5393_v56, %v4793_v1  ;;  %v4545_v56 = vld [vmem:[#allocation2 + $0x33c] sm:$0xf0]  ;;  %v5407_v1 = vld [vmem:[#allocation7 + $0x214] sm:$0xf] }
 0x201   :  { %vm3384_vm14 = vcmp.ge.f32.partialorder %v6224_v53, 1.0 }
 0x202   :  { %2660 = vmatpush.bf16.msra.mxu3 %v4876_v0  ;;  %v7550_v0 = vmov 0 }
 0x204   :  { %v2243_v58 = vpop.f32.mrf.mxu2  ;;  %v2068_v43 = vpop.f32.mrf.mxu0 }
 0x205   :  { %v2244_v4 = vadd.f32 %v2243_v58, %v2155_v7  ;;  %v6233_v25 = vpop.f32.mrf.mxu3  ;;  %v2069_v63 = vadd.f32 %v2068_v43, %v5864_v44  ;;  %v2157_v10 = vpop.f32.mrf.mxu1  ;;  %v4801_v7 = vld [vmem:[#allocation7 + $0x1b8] sm:$0xf0]  ;;  %v3372_v58 = vmul.f32 0.5, %v3270_v9 }
 0x206   :  { %v4804_v44 = vor.u32 %v5395_v37, %v4801_v7  ;;  %v5391_v37 = vld [vmem:[#allocation7 + $0x194] sm:$0xf]  ;;  %v4785_v7 = vld [vmem:[#allocation7 + $0x198] sm:$0xf0] }
 0x207   :  { %v6240_v48 = vadd.f32 %v3370_v14, %v2244_v4  ;;  %v2158_v51 = vadd.f32 %v2157_v10, %v2069_v63  ;;  %2107 = vmatmul.bf16.gmra.mxu0 %v6231_v41  ;;  %v4865_v63 = vld [vmem:[#allocation7 + $0x238] sm:$0xf0]  ;;  %v5409_v4 = vld [vmem:[#allocation7 + $0x224] sm:$0xf]  ;;  %v4857_v14 = vld [vmem:[#allocation7 + $0x228] sm:$0xf0]  ;;  %v4788_v9 = vor.u32 %v5391_v37, %v4785_v7 }
 0x208   :  { %2196 = vmatmul.bf16.gmra.mxu1 %v6235_v26  ;;  %2572 = vmatpush.bf16.msra.mxu2 %v4804_v44  ;;  %v4868_v47 = vor.u32 %v5411_v49, %v4865_v63  ;;  %v4860_v10 = vor.u32 %v5409_v4, %v4857_v14  ;;  %v4543_v49 = vld [vmem:[#allocation2 + $0x320] sm:$0xf]  ;;  %v5332_v63 = vld [vmem:[#allocation2 + $0x338] sm:$0xf0] }
 0x209   :  { %vm3386_vm15 = vcmp.ge.f32.partialorder %v6240_v48, 1.0  ;;  %4986 = vmatmul.msk.bf16.gmra.mxu2 %vm7435_vm1, %v6237_v23  ;;  %v6268_v14 = vor.u32 %v5332_v63, %v4543_v49 }
 0x20a   :  { %vm6255_vm0 = vmpackc.low %vm3386_vm15, %vm3384_vm14  ;;  %2374 = vmatmul.bf16.gmra.mxu3 %v5848_v36 }
 0x20b   :  { %v7551_v0 = vsel %vm6255_vm0, 4294967295, %v7550_v0  ;;  %2661 = vmatpush.bf16.msra.mxu3 %v4868_v47  ;;  %v4849_v47 = vld [vmem:[#allocation7 + $0x218] sm:$0xf0] }
 0x20c   :  { %7552 = vst [vmem:[#allocation108_spill] sm:$0xff] %v7551_v0  ;;  %v2246_v6 = vpop.f32.mrf.mxu2  ;;  %v2070_v13 = vpop.f32.mrf.mxu0  ;;  %2573 = vmatpush.bf16.msra.mxu2 %v4796_v22  ;;  %v5389_v22 = vld [vmem:[#allocation7 + $0x184] sm:$0xf]  ;;  %v4841_v0 = vld [vmem:[#allocation7 + $0x208] sm:$0xf0] }
 0x20d   :  { %v2247_v50 = vadd.f32 %v2246_v6, %v2158_v51  ;;  %v6260_v30 = vpop.f32.mrf.mxu3  ;;  %v2071_v43 = vadd.f32 %v2070_v13, %v5877_v39  ;;  %v2159_v52 = vpop.f32.mrf.mxu1  ;;  %v5329_v51 = vld [vmem:[#allocation2 + $0x324] sm:$0xf]  ;;  %v3272_v39 = vsel %vm3264_vm12, 0.0, %v6201_v38  ;;  %v4551_v6 = vld [vmem:[#allocation2 + $0x328] sm:$0xf] }
 0x20e   :  { %v5333_v13 = vld [vmem:[#allocation2 + $0x340] sm:$0xf0]  ;;  %v3374_v37 = vmul.f32 0.5, %v3272_v39  ;;  %v6272_v23 = vor.u32 %v5329_v51, %v4545_v56 }
 0x20f   :  { %v6263_v36 = vadd.f32 %v3372_v58, %v2247_v50  ;;  %v2160_v44 = vadd.f32 %v2159_v52, %v2071_v43  ;;  %2662 = vmatpush.bf16.msra.mxu3 %v4860_v10  ;;  %v4852_v50 = vor.u32 %v5407_v1, %v4849_v47  ;;  %v4777_v58 = vld [vmem:[#allocation7 + $0x188] sm:$0xf0]  ;;  %v6274_v26 = vor.u32 %v5333_v13, %v4551_v6  ;;  %v5405_v38 = vld [vmem:[#allocation7 + $0x204] sm:$0xf] }
 0x210   :  { %2574 = vmatpush.bf16.msra.mxu2 %v4788_v9  ;;  %v4780_v43 = vor.u32 %v5389_v22, %v4777_v58  ;;  %7553 = vst [vmem:[#allocation109_spill] sm:$0xff] %v6272_v23  ;;  %v4844_v49 = vor.u32 %v5405_v38, %v4841_v0  ;;  %v4961_v0 = vld [vmem:[#allocation7 + $0x2f8] sm:$0xf0]  ;;  %v5437_v39 = vld [vmem:[#allocation7 + $0x304] sm:$0xf] }
 0x211   :  { %7554 = vst [vmem:[#allocation110_spill] sm:$0xff] %v6274_v26  ;;  %vm3388_vm2 = vcmp.ge.f32.partialorder %v6263_v36, 1.0  ;;  %v4969_v6 = vld [vmem:[#allocation7 + $0x308] sm:$0xf0]  ;;  %v5339_v38 = vld [vmem:[#allocation2 + $0x370] sm:$0xf0] }
 0x213   :  { %2663 = vmatpush.bf16.msra.mxu3 %v4852_v50  ;;  %v4972_v50 = vor.u32 %v5437_v39, %v4969_v6 }
 0x214   :  { %v2248_v4 = vpop.f32.mrf.mxu2  ;;  %v2073_v7 = vpop.f32.mrf.mxu0  ;;  %2575 = vmatpush.bf16.msra.mxu2 %v4780_v43 }
 0x215   :  { %v2249_v52 = vadd.f32 %v2248_v4, %v2160_v44  ;;  %v6270_v10 = vpop.f32.mrf.mxu3  ;;  %v2074_v9 = vadd.f32 %v2073_v7, %v5884_v29  ;;  %v2162_v1 = vpop.f32.mrf.mxu1  ;;  %v3392_v29 = vsel %vm3384_vm14, 0.0, %v6224_v53  ;;  %v5435_v44 = vld [vmem:[#allocation7 + $0x2f4] sm:$0xf]  ;;  %2842 = vmatpush.bf16.msrb.mxu1 %v4972_v50  ;;  %v4571_v7 = vld [vmem:[#allocation2 + $0x358] sm:$0xf] }
 0x216   :  { %v4964_v56 = vor.u32 %v5435_v44, %v4961_v0  ;;  %v3494_v53 = vmul.f32 0.5, %v3392_v29  ;;  %v5340_v29 = vld [vmem:[#allocation2 + $0x378] sm:$0xf0]  ;;  %v6303_v0 = vor.u32 %v5339_v38, %v4571_v7 }
 0x217   :  { %v6277_v47 = vadd.f32 %v3374_v37, %v2249_v52  ;;  %v2163_v63 = vadd.f32 %v2162_v1, %v2074_v9  ;;  %2112 = vmatmul.bf16.gmra.mxu0 %v6268_v14  ;;  %2664 = vmatpush.bf16.msra.mxu3 %v4844_v49  ;;  %v5336_v9 = vld [vmem:[#allocation2 + $0x35c] sm:$0xf]  ;;  %v4573_v1 = vld [vmem:[#allocation2 + $0x374] sm:$0xf0]  ;;  %v3394_v49 = vsel %vm3386_vm15, 0.0, %v6240_v48  ;;  %v3396_v48 = vsel %vm3388_vm2, 0.0, %v6263_v36 }
 0x218   :  { %2201 = vmatmul.bf16.gmra.mxu1 %v6272_v23  ;;  %2746 = vmatpush.bf16.msrb.mxu0 %v4964_v56  ;;  %v3496_v39 = vmul.f32 0.5, %v3394_v49  ;;  %v3498_v7 = vmul.f32 0.5, %v3396_v48 }
 0x219   :  { %vm3390_vm3 = vcmp.ge.f32.partialorder %v6277_v47, 1.0  ;;  %4987 = vmatmul.msk.bf16.gmra.mxu2 %vm7435_vm1, %v6274_v26 }
 0x21a   :  { %2379 = vmatmul.bf16.gmra.mxu3 %v5868_v24  ;;  %vm6293_vm5 = vmpackc.low %vm3390_vm3, %vm3388_vm2  ;;  %v3398_v36 = vsel %vm3390_vm3, 0.0, %v6277_v47  ;;  %v5433_v47 = vld [vmem:[#allocation7 + $0x2e4] sm:$0xf] }
 0x21c   :  { %v2251_v13 = vpop.f32.mrf.mxu2  ;;  %v2075_v58 = vpop.f32.mrf.mxu0 }
 0x21d   :  { %v2252_v22 = vadd.f32 %v2251_v13, %v2163_v63  ;;  %v6297_v24 = vpop.f32.mrf.mxu3  ;;  %v2076_v4 = vadd.f32 %v2075_v58, %v5897_v42  ;;  %v2164_v43 = vpop.f32.mrf.mxu1  ;;  %v4579_v63 = vld [vmem:[#allocation2 + $0x360] sm:$0xf]  ;;  %v6307_v13 = vor.u32 %v5336_v9, %v4573_v1 }
 0x21e   :  { %v6309_v50 = vor.u32 %v5340_v29, %v4579_v63 }
 0x21f   :  { %v3502_v52 = vadd.f32 %v3494_v53, %v2252_v22  ;;  %v2165_v37 = vadd.f32 %v2164_v43, %v2076_v4  ;;  %7557 = vst [vmem:[#allocation111_spill] sm:$0xff] %v6307_v13 }
 0x220   :  { %7558 = vst [vmem:[#allocation112_spill] sm:$0xff] %v6309_v50 }
 0x221   :  { %vm3510_vm6 = vcmp.ge.f32.partialorder %v3502_v52, 1.0 }
 0x224   :  { %v2253_v44 = vpop.f32.mrf.mxu2  ;;  %v2078_v42 = vpop.f32.mrf.mxu0 }
 0x225   :  { %v2254_v56 = vadd.f32 %v2253_v44, %v2165_v37  ;;  %v6305_v6 = vpop.f32.mrf.mxu3  ;;  %v2079_v22 = vadd.f32 %v2078_v42, %v5904_v8  ;;  %v2167_v53 = vpop.f32.mrf.mxu1 }
 0x227   :  { %v3504_v58 = vadd.f32 %v3496_v39, %v2254_v56  ;;  %v2168_v4 = vadd.f32 %v2167_v53, %v2079_v22  ;;  %2117 = vmatmul.bf16.gmra.mxu0 %v6303_v0  ;;  %v3500_v39 = vmul.f32 0.5, %v3398_v36 }
 0x228   :  { %2206 = vmatmul.bf16.gmra.mxu1 %v6307_v13 }
 0x229   :  { %vm3512_vm8 = vcmp.ge.f32.partialorder %v3504_v58, 1.0  ;;  %4988 = vmatmul.msk.bf16.gmra.mxu2 %vm7435_vm1, %v6309_v50  ;;  %v6460_v50 = vld [vmem:[#allocation10 + $0x38] sm:$0xff] }
 0x22a   :  { %vm6321_vm9 = vmpackc.low %vm3512_vm8, %vm3510_vm6  ;;  %2384 = vmatmul.bf16.gmra.mxu3 %v5888_v62  ;;  %3172 = vmatpush.bf16.msrb.mxu2 %v6460_v50 }
 0x22c   :  { %v2256_v43 = vpop.f32.mrf.mxu2  ;;  %v2080_v38 = vpop.f32.mrf.mxu0 }
 0x22d   :  { %v2257_v37 = vadd.f32 %v2256_v43, %v2168_v4  ;;  %v6326_v9 = vpop.f32.mrf.mxu3  ;;  %v2081_v1 = vadd.f32 %v2080_v38, %v5915_v12  ;;  %v2169_v49 = vpop.f32.mrf.mxu1  ;;  %v3518_v12 = vsel %vm3510_vm6, 0.0, %v3502_v52  ;;  %v4953_v43 = vld [vmem:[#allocation7 + $0x2e8] sm:$0xf0] }
 0x22e   :  { %v3620_v38 = vmul.f32 0.5, %v3518_v12 }
 0x22f   :  { %v3506_v63 = vadd.f32 %v3498_v7, %v2257_v37  ;;  %v2170_v29 = vadd.f32 %v2169_v49, %v2081_v1  ;;  %v4956_v37 = vor.u32 %v5433_v47, %v4953_v43 }
 0x231   :  { %vm3514_vm11 = vcmp.ge.f32.partialorder %v3506_v63, 1.0  ;;  %2747 = vmatpush.bf16.msrb.mxu0 %v4956_v37 }
 0x234   :  { %v2258_v44 = vpop.f32.mrf.mxu2  ;;  %v2083_v42 = vpop.f32.mrf.mxu0 }
 0x235   :  { %v2259_v56 = vadd.f32 %v2258_v44, %v2170_v29  ;;  %v6332_v62 = vpop.f32.mrf.mxu3  ;;  %v2084_v22 = vadd.f32 %v2083_v42, %v5923_v21  ;;  %v2172_v53 = vpop.f32.mrf.mxu1  ;;  %v3520_v29 = vsel %vm3512_vm8, 0.0, %v3504_v58 }
 0x237   :  { %v3508_v4 = vadd.f32 %v3500_v39, %v2259_v56  ;;  %v2173_v48 = vadd.f32 %v2172_v53, %v2084_v22  ;;  %2398 = vmatmul.bf16.vlgmr.msra.gmra.mxu0 %v5664_v55  ;;  %v3622_v56 = vmul.f32 0.5, %v3520_v29 }
 0x238   :  { %2487 = vmatmul.bf16.vlgmr.msra.gmra.mxu1 %v5666_v60 }
 0x239   :  { %vm3516_vm12 = vcmp.ge.f32.partialorder %v3508_v4, 1.0  ;;  %2576 = vmatmul.bf16.vlgmr.msra.gmra.mxu2 %v5668_v61 }
 0x23a   :  { %2665 = vmatmul.bf16.vlgmr.msra.gmra.mxu3 %v5908_v27  ;;  %vm6342_vm14 = vmpackc.low %vm3516_vm12, %vm3514_vm11 }
 0x23c   :  { %v2261_v55 = vpop.f32.mrf.mxu2  ;;  %v2085_v1 = vpop.f32.mrf.mxu0 }
 0x23d   :  { %v2262_v7 = vadd.f32 %v2261_v55, %v2173_v48  ;;  %v6346_v60 = vpop.f32.mrf.mxu3  ;;  %v2086_v61 = vadd.f32 %v2085_v1, %v5934_v59  ;;  %v2174_v52 = vpop.f32.mrf.mxu1  ;;  %v3522_v59 = vsel %vm3514_vm11, 0.0, %v3506_v63  ;;  %v3524_v63 = vsel %vm3516_vm12, 0.0, %v3508_v4 }
 0x23e   :  { %v3624_v43 = vmul.f32 0.5, %v3522_v59 }
 0x23f   :  { %v3628_v27 = vadd.f32 %v3620_v38, %v2262_v7  ;;  %v2175_v49 = vadd.f32 %v2174_v52, %v2086_v61  ;;  %v3626_v61 = vmul.f32 0.5, %v3524_v63 }
 0x241   :  { %vm3636_vm15 = vcmp.ge.f32.partialorder %v3628_v27, 1.0 }
 0x242   :  { %v3644_v4 = vsel %vm3636_vm15, 0.0, %v3628_v27 }
 0x243   :  { %v3746_v59 = vmul.f32 0.5, %v3644_v4  ;;  %v7572_v4 = vld [vmem:[#allocation20_spill] sm:$0xff] }
 0x244   :  { %v2263_v36 = vpop.f32.mrf.mxu2  ;;  %v2088_v39 = vpop.f32.mrf.mxu0 }
 0x245   :  { %v2264_v44 = vadd.f32 %v2263_v36, %v2175_v49  ;;  %v6350_v42 = vpop.f32.mrf.mxu3  ;;  %v2089_v22 = vadd.f32 %v2088_v39, %v5942_v28  ;;  %v2177_v53 = vpop.f32.mrf.mxu1  ;;  %v5431_v39 = vld [vmem:[#allocation7 + $0x2d4] sm:$0xf] }
 0x247   :  { %v3630_v48 = vadd.f32 %v3622_v56, %v2264_v44  ;;  %v2178_v12 = vadd.f32 %v2177_v53, %v2089_v22  ;;  %2403 = vmatmul.bf16.gmra.mxu0 %v5676_v17  ;;  %v7566_v56 = vld [vmem:[#allocation61_spill] sm:$0xff]  ;;  %v4945_v22 = vld [vmem:[#allocation7 + $0x2d8] sm:$0xf0] }
 0x248   :  { %2492 = vmatmul.bf16.gmra.mxu1 %v5678_v18  ;;  %v4948_v53 = vor.u32 %v5431_v39, %v4945_v22  ;;  %v7575_v39 = vld [vmem:[#allocation64_spill] sm:$0xff] }
 0x249   :  { %vm3638_vm2 = vcmp.ge.f32.partialorder %v3630_v48, 1.0  ;;  %2581 = vmatmul.bf16.gmra.mxu2 %v5680_v19 }
 0x24a   :  { %vm6359_vm3 = vmpackc.low %vm3638_vm2, %vm3636_vm15  ;;  %2670 = vmatmul.bf16.gmra.mxu3 %v5927_v2  ;;  %2748 = vmatpush.bf16.msrb.mxu0 %v4948_v53 }
 0x24c   :  { %v2266_v28 = vpop.f32.mrf.mxu2  ;;  %v2090_v17 = vpop.f32.mrf.mxu0 }
 0x24d   :  { %v2267_v47 = vadd.f32 %v2266_v28, %v2178_v12  ;;  %v6364_v37 = vpop.f32.mrf.mxu3  ;;  %v2091_v18 = vadd.f32 %v2090_v17, %v5953_v57  ;;  %v2179_v55 = vpop.f32.mrf.mxu1  ;;  %v7565_v57 = vld [vmem:[#allocation17_spill] sm:$0xff] }
 0x24f   :  { %v3632_v19 = vadd.f32 %v3624_v43, %v2267_v47  ;;  %v2180_v7 = vadd.f32 %v2179_v55, %v2091_v18  ;;  %v3646_v18 = vsel %vm3638_vm2, 0.0, %v3630_v48 }
 0x250   :  { %v3748_v63 = vmul.f32 0.5, %v3646_v18 }
 0x251   :  { %vm3640_vm6 = vcmp.ge.f32.partialorder %v3632_v19, 1.0 }
 0x252   :  { %v3648_v48 = vsel %vm3640_vm6, 0.0, %v3632_v19 }
 0x254   :  { %v2268_v38 = vpop.f32.mrf.mxu2  ;;  %v2093_v52 = vpop.f32.mrf.mxu0 }
 0x255   :  { %v2269_v1 = vadd.f32 %v2268_v38, %v2180_v7  ;;  %v6368_v49 = vpop.f32.mrf.mxu3  ;;  %v2094_v2 = vadd.f32 %v2093_v52, %v5961_v31  ;;  %v2182_v29 = vpop.f32.mrf.mxu1 }
 0x257   :  { %v3634_v36 = vadd.f32 %v3626_v61, %v2269_v1  ;;  %v2183_v44 = vadd.f32 %v2182_v29, %v2094_v2  ;;  %2408 = vmatmul.bf16.gmra.mxu0 %v5688_v33  ;;  %v7569_v61 = vld [vmem:[#allocation67_spill] sm:$0xff] }
 0x258   :  { %2497 = vmatmul.bf16.gmra.mxu1 %v5690_v34 }
 0x259   :  { %vm3642_vm8 = vcmp.ge.f32.partialorder %v3634_v36, 1.0  ;;  %2586 = vmatmul.bf16.gmra.mxu2 %v7565_v57  ;;  %v7570_v57 = vld [vmem:[#allocation18_spill] sm:$0xff] }
 0x25a   :  { %2675 = vmatmul.bf16.gmra.mxu3 %v7566_v56  ;;  %vm6378_vm11 = vmpackc.low %vm3642_vm8, %vm3640_vm6  ;;  %v3650_v19 = vsel %vm3642_vm8, 0.0, %v3634_v36 }
 0x25c   :  { %v2271_v33 = vpop.f32.mrf.mxu2  ;;  %v2095_v28 = vpop.f32.mrf.mxu0 }
 0x25d   :  { %v2272_v12 = vadd.f32 %v2271_v33, %v2183_v44  ;;  %v6382_v34 = vpop.f32.mrf.mxu3  ;;  %v2096_v27 = vadd.f32 %v2095_v28, %v5972_v35  ;;  %v2184_v47 = vpop.f32.mrf.mxu1  ;;  %v7571_v35 = vld [vmem:[#allocation19_spill] sm:$0xff]  ;;  %v3750_v33 = vmul.f32 0.5, %v3648_v48  ;;  %v7580_v48 = vld [vmem:[#allocation68_spill] sm:$0xff] }
 0x25f   :  { %v3754_v43 = vadd.f32 %v3746_v59, %v2272_v12  ;;  %v2185_v17 = vadd.f32 %v2184_v47, %v2096_v27 }
 0x261   :  { %vm3762_vm12 = vcmp.ge.f32.partialorder %v3754_v43, 1.0 }
 0x262   :  { %v3770_v36 = vsel %vm3762_vm12, 0.0, %v3754_v43 }
 0x264   :  { %v2273_v55 = vpop.f32.mrf.mxu2  ;;  %v2098_v38 = vpop.f32.mrf.mxu0 }
 0x265   :  { %v2274_v7 = vadd.f32 %v2273_v55, %v2185_v17  ;;  %v6386_v1 = vpop.f32.mrf.mxu3  ;;  %v2099_v52 = vadd.f32 %v2098_v38, %v7569_v61  ;;  %v2187_v2 = vpop.f32.mrf.mxu1  ;;  %v7576_v61 = vld [vmem:[#allocation71_spill] sm:$0xff] }
 0x267   :  { %v3756_v29 = vadd.f32 %v3748_v63, %v2274_v7  ;;  %v2188_v44 = vadd.f32 %v2187_v2, %v2099_v52  ;;  %2413 = vmatmul.bf16.gmra.mxu0 %v7570_v57  ;;  %v3752_v7 = vmul.f32 0.5, %v3650_v19 }
 0x268   :  { %2502 = vmatmul.bf16.gmra.mxu1 %v7571_v35  ;;  %v7577_v35 = vld [vmem:[#allocation21_spill] sm:$0xff] }
 0x269   :  { %vm3764_vm15 = vcmp.ge.f32.partialorder %v3756_v29, 1.0  ;;  %2591 = vmatmul.bf16.gmra.mxu2 %v7572_v4  ;;  %v7579_v4 = vld [vmem:[#allocation23_spill] sm:$0xff] }
 0x26a   :  { %vm6395_vm2 = vmpackc.low %vm3764_vm15, %vm3762_vm12  ;;  %2680 = vmatmul.bf16.gmra.mxu3 %v7575_v39  ;;  %v5429_v39 = vld [vmem:[#allocation7 + $0x2c4] sm:$0xf] }
 0x26c   :  { %v2276_v22 = vpop.f32.mrf.mxu2  ;;  %v2100_v12 = vpop.f32.mrf.mxu0 }
 0x26d   :  { %v2277_v53 = vadd.f32 %v2276_v22, %v2188_v44  ;;  %v6400_v59 = vpop.f32.mrf.mxu3  ;;  %v2101_v28 = vadd.f32 %v2100_v12, %v5991_v54  ;;  %v2189_v27 = vpop.f32.mrf.mxu1  ;;  %v7578_v54 = vld [vmem:[#allocation22_spill] sm:$0xff]  ;;  %v4937_v22 = vld [vmem:[#allocation7 + $0x2c8] sm:$0xf0] }
 0x26f   :  { %v3758_v47 = vadd.f32 %v3750_v33, %v2277_v53  ;;  %v2190_v17 = vadd.f32 %v2189_v27, %v2101_v28  ;;  %v7581_v53 = vmov 0  ;;  %v4940_v33 = vor.u32 %v5429_v39, %v4937_v22  ;;  %v7585_v22 = vld [vmem:[#allocation24_spill] sm:$0xff] }
 0x270   :  { %v3872_v27 = vmul.f32 0.5, %v3770_v36 }
 0x271   :  { %vm3766_vm6 = vcmp.ge.f32.partialorder %v3758_v47, 1.0  ;;  %2749 = vmatpush.bf16.msrb.mxu0 %v4940_v33  ;;  %v7587_v33 = vld [vmem:[#allocation26_spill] sm:$0xff] }
 0x274   :  { %v2278_v18 = vpop.f32.mrf.mxu2  ;;  %v2103_v63 = vpop.f32.mrf.mxu0 }
 0x275   :  { %v2279_v55 = vadd.f32 %v2278_v18, %v2190_v17  ;;  %v6404_v38 = vpop.f32.mrf.mxu3  ;;  %v2104_v52 = vadd.f32 %v2103_v63, %v7576_v61  ;;  %v2192_v2 = vpop.f32.mrf.mxu1  ;;  %v3772_v63 = vsel %vm3764_vm15, 0.0, %v3756_v29  ;;  %v3774_v29 = vsel %vm3766_vm6, 0.0, %v3758_v47 }
 0x277   :  { %v3760_v44 = vadd.f32 %v3752_v7, %v2279_v55  ;;  %v2193_v57 = vadd.f32 %v2192_v2, %v2104_v52  ;;  %2418 = vmatmul.bf16.gmra.mxu0 %v7577_v35  ;;  %v3874_v2 = vmul.f32 0.5, %v3772_v63 }
 0x278   :  { %2507 = vmatmul.bf16.gmra.mxu1 %v7578_v54 }
 0x279   :  { %vm7436_vm1 = vcmp.ge.f32.partialorder %v3760_v44, 1.0  ;;  %2596 = vmatmul.bf16.gmra.mxu2 %v7579_v4  ;;  %v7584_v4 = vld [vmem:[#allocation75_spill] sm:$0xff] }
 0x27a   :  { %2685 = vmatmul.bf16.gmra.mxu3 %v7580_v48  ;;  %vm6414_vm8 = vmpackc.low %vm7436_vm1, %vm3766_vm6  ;;  %vm7592_vm6 = vcmp.ge.f32.partialorder %v3760_v44, 1.0 }
 0x27b   :  { %v7582_v53 = vsel %vm6414_vm8, 4294967295, %v7581_v53  ;;  %v3776_v47 = vsel %vm7592_vm6, 0.0, %v3760_v44  ;;  %v5427_v44 = vld [vmem:[#allocation7 + $0x2b4] sm:$0xf] }
 0x27c   :  { %7583 = vst [vmem:[#allocation17_spill] sm:$0xff] %v7582_v53  ;;  %v2281_v12 = vpop.f32.mrf.mxu2  ;;  %v2105_v17 = vpop.f32.mrf.mxu0 }
 0x27d   :  { %v2282_v28 = vadd.f32 %v2281_v12, %v2193_v57  ;;  %v6418_v19 = vpop.f32.mrf.mxu3  ;;  %v2106_v43 = vadd.f32 %v2105_v17, %v6010_v46  ;;  %v2194_v18 = vpop.f32.mrf.mxu1  ;;  %v7586_v46 = vld [vmem:[#allocation25_spill] sm:$0xff]  ;;  %v7588_v12 = vmov 0 }
 0x27f   :  { %v3880_v55 = vadd.f32 %v3872_v27, %v2282_v28  ;;  %v2195_v7 = vadd.f32 %v2194_v18, %v2106_v43  ;;  %v7591_v28 = vld [vmem:[#allocation72_spill] sm:$0xff]  ;;  %v3876_v43 = vmul.f32 0.5, %v3774_v29 }
 0x281   :  { %vm7438_vm12 = vcmp.ge.f32.partialorder %v3880_v55, 1.0  ;;  %vm7597_vm6 = vcmp.ge.f32.partialorder %v3880_v55, 1.0 }
 0x284   :  { %v2283_v61 = vpop.f32.mrf.mxu2  ;;  %v2108_v35 = vpop.f32.mrf.mxu0 }
 0x285   :  { %v2284_v52 = vadd.f32 %v2283_v61, %v2195_v7  ;;  %v6422_v54 = vpop.f32.mrf.mxu3  ;;  %v2109_v57 = vadd.f32 %v2108_v35, %v7584_v4  ;;  %v2197_v36 = vpop.f32.mrf.mxu1 }
 0x287   :  { %v3882_v48 = vadd.f32 %v3874_v2, %v2284_v52  ;;  %v2198_v39 = vadd.f32 %v2197_v36, %v2109_v57  ;;  %2423 = vmatmul.bf16.gmra.mxu0 %v7585_v22  ;;  %v3878_v57 = vmul.f32 0.5, %v3776_v47 }
 0x288   :  { %2512 = vmatmul.bf16.gmra.mxu1 %v7586_v46  ;;  %v7593_v46 = vld [vmem:[#allocation79_spill] sm:$0xff] }
 0x289   :  { %vm7437_vm1 = vcmp.ge.f32.partialorder %v3882_v48, 1.0  ;;  %2601 = vmatmul.bf16.gmra.mxu2 %v7587_v33 }
 0x28a   :  { %vm6431_vm15 = vmpackc.low %vm7437_vm1, %vm7438_vm12  ;;  %2690 = vmatmul.bf16.gmra.mxu3 %v7591_v28 }
 0x28b   :  { %v7589_v12 = vsel %vm6431_vm15, 4294967295, %v7588_v12 }
 0x28c   :  { %7590 = vst [vmem:[#allocation61_spill] sm:$0xff] %v7589_v12  ;;  %v2286_v27 = vpop.f32.mrf.mxu2  ;;  %v2110_v18 = vpop.f32.mrf.mxu0 }
 0x28d   :  { %v2287_v17 = vadd.f32 %v2286_v27, %v2198_v39  ;;  %v6436_v7 = vpop.f32.mrf.mxu3  ;;  %v2111_v63 = vadd.f32 %v2110_v18, %v6029_v32  ;;  %v2199_v61 = vpop.f32.mrf.mxu1  ;;  %v7594_v27 = vld [vmem:[#allocation27_spill] sm:$0xff]  ;;  %v7595_v32 = vld [vmem:[#allocation28_spill] sm:$0xff]  ;;  %v3896_v18 = vsel %vm7597_vm6, 0.0, %v3880_v55  ;;  %vm7602_vm6 = vcmp.ge.f32.partialorder %v3882_v48, 1.0 }
 0x28f   :  { %v3884_v52 = vadd.f32 %v3876_v43, %v2287_v17  ;;  %v2200_v2 = vadd.f32 %v2199_v61, %v2111_v63  ;;  %v7596_v17 = vld [vmem:[#allocation29_spill] sm:$0xff]  ;;  %v4929_v43 = vld [vmem:[#allocation7 + $0x2b8] sm:$0xf0]  ;;  %v7598_v63 = vld [vmem:[#allocation76_spill] sm:$0xff] }
 0x290   :  { %v4932_v61 = vor.u32 %v5427_v44, %v4929_v43 }
 0x291   :  { %vm3892_vm1 = vcmp.ge.f32.partialorder %v3884_v52, 1.0 }
 0x292   :  { %2750 = vmatpush.bf16.msrb.mxu0 %v4932_v61 }
 0x294   :  { %v2288_v35 = vpop.f32.mrf.mxu2  ;;  %v2113_v36 = vpop.f32.mrf.mxu0 }
 0x295   :  { %v2289_v4 = vadd.f32 %v2288_v35, %v2200_v2  ;;  %v6440_v22 = vpop.f32.mrf.mxu3  ;;  %v2114_v33 = vadd.f32 %v2113_v36, %v7593_v46  ;;  %v2202_v39 = vpop.f32.mrf.mxu1  ;;  %v7599_v2 = vmov 0 }
 0x297   :  { %v3886_v29 = vadd.f32 %v3878_v57, %v2289_v4  ;;  %v2203_v28 = vadd.f32 %v2202_v39, %v2114_v33  ;;  %2428 = vmatmul.bf16.gmra.mxu0 %v7594_v27  ;;  %v3998_v4 = vmul.f32 0.5, %v3896_v18  ;;  %v3898_v27 = vsel %vm7602_vm6, 0.0, %v3882_v48  ;;  %v7604_v48 = vld [vmem:[#allocation31_spill] sm:$0xff] }
 0x298   :  { %2517 = vmatmul.bf16.gmra.mxu1 %v7595_v32  ;;  %v4000_v44 = vmul.f32 0.5, %v3898_v27 }
 0x299   :  { %vm7440_vm12 = vcmp.ge.f32.partialorder %v3886_v29, 1.0  ;;  %2606 = vmatmul.bf16.gmra.mxu2 %v7596_v17 }
 0x29a   :  { %2695 = vmatmul.bf16.gmra.mxu3 %v7598_v63  ;;  %vm6450_vm15 = vmpackc.low %vm7440_vm12, %vm3892_vm1 }
 0x29b   :  { %v7600_v2 = vsel %vm6450_vm15, 4294967295, %v7599_v2 }
 0x29c   :  { %7601 = vst [vmem:[#allocation67_spill] sm:$0xff] %v7600_v2  ;;  %v2291_v47 = vpop.f32.mrf.mxu2  ;;  %v2115_v57 = vpop.f32.mrf.mxu0 }
 0x29d   :  { %v2292_v35 = vadd.f32 %v2291_v47, %v2203_v28  ;;  %v6454_v36 = vpop.f32.mrf.mxu3  ;;  %v2116_v46 = vadd.f32 %v2115_v57, %v6048_v16  ;;  %v2204_v33 = vpop.f32.mrf.mxu1  ;;  %v7603_v47 = vld [vmem:[#allocation30_spill] sm:$0xff]  ;;  %v3900_v57 = vsel %vm3892_vm1, 0.0, %v3884_v52  ;;  %vm7610_vm1 = vcmp.ge.f32.partialorder %v3886_v29, 1.0 }
 0x29e   :  { %v4002_v27 = vmul.f32 0.5, %v3900_v57 }
 0x29f   :  { %v4006_v55 = vadd.f32 %v3998_v4, %v2292_v35  ;;  %v2205_v39 = vadd.f32 %v2204_v33, %v2116_v46  ;;  %v6465_v35 = vld [vmem:[#allocation10 + $0x78] sm:$0xff]  ;;  %v7606_v46 = vmov 0 }
 0x2a0   :  { %v7605_v4 = vld [vmem:[#allocation32_spill] sm:$0xff]  ;;  %3191 = vmatpush.bf16.msrb.mxu3 %v6465_v35 }
 0x2a1   :  { %vm4014_vm6 = vcmp.ge.f32.partialorder %v4006_v55, 1.0 }
 0x2a4   :  { %v2293_v32 = vpop.f32.mrf.mxu2  ;;  %v2118_v43 = vpop.f32.mrf.mxu0 }
 0x2a5   :  { %v2294_v17 = vadd.f32 %v2293_v32, %v2205_v39  ;;  %v6458_v63 = vpop.f32.mrf.mxu3  ;;  %v2119_v28 = vadd.f32 %v2118_v43, %v6056_v20  ;;  %v2207_v18 = vpop.f32.mrf.mxu1  ;;  %v7609_v20 = vld [vmem:[#allocation80_spill] sm:$0xff] }
 0x2a7   :  { %v4008_v61 = vadd.f32 %v4000_v44, %v2294_v17  ;;  %v2208_v16 = vadd.f32 %v2207_v18, %v2119_v28  ;;  %2433 = vmatmul.bf16.gmra.mxu0 %v7603_v47  ;;  %v5469_v28 = vld [vmem:[#allocation9] sm:$0x3] }
 0x2a8   :  { %2522 = vmatmul.bf16.gmra.mxu1 %v7604_v48  ;;  %v6479_v52 = vperm.slane %v5469_v28, 1  ;;  %v7614_v28 = vmov 0 }
 0x2a9   :  { %vm4016_vm12 = vcmp.ge.f32.partialorder %v4008_v61, 1.0  ;;  %2611 = vmatmul.bf16.gmra.mxu2 %v7605_v4  ;;  %v3902_v61 = vsel %vm7610_vm1, 0.0, %v3886_v29  ;;  %v7613_v29 = vld [vmem:[#allocation35_spill] sm:$0xff] }
 0x2aa   :  { %vm6470_vm15 = vmpackc.low %vm4016_vm12, %vm4014_vm6  ;;  %2700 = vmatmul.bf16.gmra.mxu3 %v7609_v20  ;;  %v2311_v47 = vadd.f32 %v6076_v5, %v6479_v52  ;;  %v4921_v5 = vld [vmem:[#allocation7 + $0x2a8] sm:$0xf0] }
 0x2ab   :  { %v7607_v46 = vsel %vm6470_vm15, 4294967295, %v7606_v46 }
 0x2ac   :  { %7608 = vst [vmem:[#allocation18_spill] sm:$0xff] %v7607_v46  ;;  %v2296_v33 = vpop.f32.mrf.mxu2  ;;  %v2120_v32 = vpop.f32.mrf.mxu0 }
 0x2ad   :  { %v2297_v39 = vadd.f32 %v2296_v33, %v2208_v16  ;;  %v6476_v55 = vpop.f32.mrf.mxu3  ;;  %v2121_v17 = vadd.f32 %v2120_v32, %v6067_v3  ;;  %v2209_v44 = vpop.f32.mrf.mxu1  ;;  %v4004_v16 = vmul.f32 0.5, %v3902_v61 }
 0x2af   :  { %v4010_v43 = vadd.f32 %v4002_v27, %v2297_v39  ;;  %v2210_v18 = vadd.f32 %v2209_v44, %v2121_v17  ;;  %v7611_v39 = vld [vmem:[#allocation33_spill] sm:$0xff]  ;;  %v7612_v27 = vld [vmem:[#allocation34_spill] sm:$0xff]  ;;  %v5425_v17 = vld [vmem:[#allocation7 + $0x2a4] sm:$0xf] }
 0x2b0   :  { %v4924_v44 = vor.u32 %v5425_v17, %v4921_v5  ;;  %v6500_v17 = vld [vmem:[#allocation10 + $0x30] sm:$0xff] }
 0x2b1   :  { %vm4018_vm12 = vcmp.ge.f32.partialorder %v4010_v43, 1.0  ;;  %3173 = vmatpush.bf16.msrb.mxu2 %v6500_v17 }
 0x2b2   :  { %2751 = vmatpush.bf16.msrb.mxu0 %v4924_v44 }
 0x2b4   :  { %v2298_v48 = vpop.f32.mrf.mxu2  ;;  %v2399_v20 = vpop.f32.mrf.mxu0 }
 0x2b5   :  { %v2299_v4 = vadd.f32 %v2298_v48, %v2210_v18  ;;  %v6484_v57 = vpop.f32.mrf.mxu3  ;;  %v2400_v33 = vadd.f32 %v2399_v20, %v2311_v47  ;;  %v2488_v13 = vpop.f32.mrf.mxu1 }
 0x2b7   :  { %v4012_v3 = vadd.f32 %v4004_v16, %v2299_v4  ;;  %v2489_v32 = vadd.f32 %v2488_v13, %v2400_v33  ;;  %2438 = vmatmul.bf16.gmra.mxu0 %v7611_v39  ;;  %v2313_v13 = vadd.f32 %v6085_v40, %v6479_v52 }
 0x2b8   :  { %2527 = vmatmul.bf16.gmra.mxu1 %v7612_v27 }
 0x2b9   :  { %vm4020_vm6 = vcmp.ge.f32.partialorder %v4012_v3, 1.0  ;;  %2616 = vmatmul.bf16.gmra.mxu2 %v7613_v29 }
 0x2ba   :  { %2705 = vmatmul.bf16.gmra.mxu3 %v6060_v45  ;;  %vm6490_vm1 = vmpackc.low %vm4020_vm6, %vm4018_vm12  ;;  %v7617_v45 = vld [vmem:[#allocation89_spill] sm:$0xff]  ;;  %vm7654_vm12 = vcmask 130048  }
 0x2bb   :  { %v7615_v28 = vsel %vm6490_vm1, 4294967295, %v7614_v28  ;;  %v2316_v33 = vadd.f32 %v7617_v45, %v6479_v52 }
 0x2bc   :  { %7616 = vst [vmem:[#allocation19_spill] sm:$0xff] %v7615_v28  ;;  %v2577_v18 = vpop.f32.mrf.mxu2  ;;  %v2401_v61 = vpop.f32.mrf.mxu0 }
 0x2bd   :  { %v2578_v43 = vadd.f32 %v2577_v18, %v2489_v32  ;;  %v2666_v47 = vpop.f32.mrf.mxu3  ;;  %v2402_v48 = vadd.f32 %v2401_v61, %v2313_v13  ;;  %v2490_v4 = vpop.f32.mrf.mxu1  ;;  %v7618_v13 = vld [vmem:[#allocation36_spill] sm:$0xff]  ;;  %v6506_v18 = vld [vmem:[#allocation10 + $0x70] sm:$0xff]  ;;  %v7620_v61 = vld [vmem:[#allocation38_spill] sm:$0xff] }
 0x2be   :  { %3192 = vmatpush.bf16.msrb.mxu3 %v6506_v18 }
 0x2bf   :  { %v6496_v16 = vadd.f32 %v2666_v47, %v2578_v43  ;;  %v2491_v20 = vadd.f32 %v2490_v4, %v2402_v48  ;;  %v7619_v43 = vld [vmem:[#allocation37_spill] sm:$0xff]  ;;  %v7622_v48 = vld [vmem:[#allocation91_spill] sm:$0xff] }
 0x2c0   :  { %v7621_v47 = vld [vmem:[#allocation85_spill] sm:$0xff]  ;;  %v2318_v4 = vadd.f32 %v7622_v48, %v6479_v52 }
 0x2c4   :  { %v2579_v3 = vpop.f32.mrf.mxu2  ;;  %v2404_v27 = vpop.f32.mrf.mxu0 }
 0x2c5   :  { %v2580_v39 = vadd.f32 %v2579_v3, %v2491_v20  ;;  %v2668_v29 = vpop.f32.mrf.mxu3  ;;  %v2405_v40 = vadd.f32 %v2404_v27, %v2316_v33  ;;  %v2493_v5 = vpop.f32.mrf.mxu1 }
 0x2c7   :  { %v6502_v44 = vadd.f32 %v2668_v29, %v2580_v39  ;;  %v2494_v32 = vadd.f32 %v2493_v5, %v2405_v40  ;;  %2443 = vmatmul.bf16.gmra.mxu0 %v7618_v13  ;;  %v7623_v5 = vld [vmem:[#allocation95_spill] sm:$0xff] }
 0x2c8   :  { %2532 = vmatmul.bf16.gmra.mxu1 %v7619_v43  ;;  %v2321_v13 = vadd.f32 %v7623_v5, %v6479_v52 }
 0x2c9   :  { %2621 = vmatmul.bf16.gmra.mxu2 %v7620_v61 }
 0x2ca   :  { %2710 = vmatmul.bf16.gmra.mxu3 %v7621_v47 }
 0x2cc   :  { %v2582_v20 = vpop.f32.mrf.mxu2  ;;  %v2406_v33 = vpop.f32.mrf.mxu0 }
 0x2cd   :  { %v2583_v45 = vadd.f32 %v2582_v20, %v2494_v32  ;;  %v2671_v3 = vpop.f32.mrf.mxu3  ;;  %v2407_v39 = vadd.f32 %v2406_v33, %v2318_v4  ;;  %v2495_v27 = vpop.f32.mrf.mxu1  ;;  %v7624_v32 = vld [vmem:[#allocation39_spill] sm:$0xff]  ;;  %v7625_v20 = vld [vmem:[#allocation40_spill] sm:$0xff]  ;;  %v7626_v4 = vld [vmem:[#allocation41_spill] sm:$0xff] }
 0x2ce   :  { %v4913_v33 = vld [vmem:[#allocation7 + $0x298] sm:$0xf0] }
 0x2cf   :  { %v6514_v29 = vadd.f32 %v2671_v3, %v2583_v45  ;;  %v2496_v40 = vadd.f32 %v2495_v27, %v2407_v39  ;;  %v5423_v45 = vld [vmem:[#allocation7 + $0x294] sm:$0xf]  ;;  %v7627_v3 = vld [vmem:[#allocation90_spill] sm:$0xff]  ;;  %v2323_v27 = vadd.f32 %v6155_v15, %v6479_v52 }
 0x2d0   :  { %v4916_v39 = vor.u32 %v5423_v45, %v4913_v33  ;;  %v6530_v33 = vld [vmem:[#allocation10 + $0x28] sm:$0xff] }
 0x2d1   :  { %3174 = vmatpush.bf16.msrb.mxu2 %v6530_v33 }
 0x2d2   :  { %2752 = vmatpush.bf16.msrb.mxu0 %v4916_v39 }
 0x2d4   :  { %v2584_v43 = vpop.f32.mrf.mxu2  ;;  %v2409_v47 = vpop.f32.mrf.mxu0 }
 0x2d5   :  { %v2585_v61 = vadd.f32 %v2584_v43, %v2496_v40  ;;  %v2673_v28 = vpop.f32.mrf.mxu3  ;;  %v2410_v46 = vadd.f32 %v2409_v47, %v2321_v13  ;;  %v2498_v26 = vpop.f32.mrf.mxu1  ;;  %v2326_v47 = vadd.f32 %v6182_v11, %v6479_v52  ;;  %v7631_v11 = vld [vmem:[#allocation44_spill] sm:$0xff] }
 0x2d7   :  { %v6518_v23 = vadd.f32 %v2673_v28, %v2585_v61  ;;  %v2499_v48 = vadd.f32 %v2498_v26, %v2410_v46  ;;  %2448 = vmatmul.bf16.gmra.mxu0 %v7624_v32 }
 0x2d8   :  { %2537 = vmatmul.bf16.gmra.mxu1 %v7625_v20 }
 0x2d9   :  { %2626 = vmatmul.bf16.gmra.mxu2 %v7626_v4 }
 0x2da   :  { %2715 = vmatmul.bf16.gmra.mxu3 %v7627_v3 }
 0x2dc   :  { %v2587_v40 = vpop.f32.mrf.mxu2  ;;  %v2411_v28 = vpop.f32.mrf.mxu0 }
 0x2dd   :  { %v2588_v5 = vadd.f32 %v2587_v40, %v2499_v48  ;;  %v2676_v13 = vpop.f32.mrf.mxu3  ;;  %v2412_v26 = vadd.f32 %v2411_v28, %v2323_v27  ;;  %v2500_v46 = vpop.f32.mrf.mxu1  ;;  %v7629_v27 = vld [vmem:[#allocation42_spill] sm:$0xff]  ;;  %v7632_v28 = vld [vmem:[#allocation96_spill] sm:$0xff] }
 0x2de   :  { %v6536_v40 = vld [vmem:[#allocation10 + $0x68] sm:$0xff] }
 0x2df   :  { %v6526_v43 = vadd.f32 %v2676_v13, %v2588_v5  ;;  %v2501_v61 = vadd.f32 %v2500_v46, %v2412_v26  ;;  %v7630_v5 = vld [vmem:[#allocation43_spill] sm:$0xff]  ;;  %3193 = vmatpush.bf16.msrb.mxu3 %v6536_v40  ;;  %v7633_v13 = vld [vmem:[#allocation101_spill] sm:$0xff] }
 0x2e0   :  { %v2328_v26 = vadd.f32 %v7633_v13, %v6479_v52 }
 0x2e4   :  { %v2589_v32 = vpop.f32.mrf.mxu2  ;;  %v2414_v4 = vpop.f32.mrf.mxu0 }
 0x2e5   :  { %v2590_v20 = vadd.f32 %v2589_v32, %v2501_v61  ;;  %v2678_v45 = vpop.f32.mrf.mxu3  ;;  %v2415_v15 = vadd.f32 %v2414_v4, %v2326_v47  ;;  %v2503_v3 = vpop.f32.mrf.mxu1 }
 0x2e7   :  { %v6532_v39 = vadd.f32 %v2678_v45, %v2590_v20  ;;  %v2504_v48 = vadd.f32 %v2503_v3, %v2415_v15  ;;  %2453 = vmatmul.bf16.gmra.mxu0 %v7629_v27  ;;  %v7634_v3 = vld [vmem:[#allocation105_spill] sm:$0xff] }
 0x2e8   :  { %2542 = vmatmul.bf16.gmra.mxu1 %v7630_v5  ;;  %v2331_v27 = vadd.f32 %v7634_v3, %v6479_v52 }
 0x2e9   :  { %7628 = vst [vmem:[#allocation20_spill] sm:$0xff] %v6532_v39  ;;  %2631 = vmatmul.bf16.gmra.mxu2 %v7631_v11 }
 0x2ea   :  { %2720 = vmatmul.bf16.gmra.mxu3 %v7632_v28 }
 0x2ec   :  { %v2592_v46 = vpop.f32.mrf.mxu2  ;;  %v2416_v47 = vpop.f32.mrf.mxu0 }
 0x2ed   :  { %v2593_v61 = vadd.f32 %v2592_v46, %v2504_v48  ;;  %v2681_v32 = vpop.f32.mrf.mxu3  ;;  %v2417_v20 = vadd.f32 %v2416_v47, %v2328_v26  ;;  %v2505_v4 = vpop.f32.mrf.mxu1  ;;  %v7635_v48 = vld [vmem:[#allocation45_spill] sm:$0xff]  ;;  %v7636_v46 = vld [vmem:[#allocation46_spill] sm:$0xff]  ;;  %v7637_v26 = vld [vmem:[#allocation47_spill] sm:$0xff] }
 0x2ee   :  { %v4905_v47 = vld [vmem:[#allocation7 + $0x288] sm:$0xf0] }
 0x2ef   :  { %v6544_v45 = vadd.f32 %v2681_v32, %v2593_v61  ;;  %v2506_v15 = vadd.f32 %v2505_v4, %v2417_v20  ;;  %v5421_v61 = vld [vmem:[#allocation7 + $0x284] sm:$0xf]  ;;  %v7638_v32 = vld [vmem:[#allocation100_spill] sm:$0xff]  ;;  %v2333_v4 = vadd.f32 %v6233_v25, %v6479_v52 }
 0x2f0   :  { %v4908_v20 = vor.u32 %v5421_v61, %v4905_v47 }
 0x2f2   :  { %2753 = vmatpush.bf16.msrb.mxu0 %v4908_v20  ;;  %v7639_v20 = vld [vmem:[#allocation48_spill] sm:$0xff] }
 0x2f4   :  { %v2594_v5 = vpop.f32.mrf.mxu2  ;;  %v2419_v28 = vpop.f32.mrf.mxu0 }
 0x2f5   :  { %v2595_v11 = vadd.f32 %v2594_v5, %v2506_v15  ;;  %v2683_v2 = vpop.f32.mrf.mxu3  ;;  %v2420_v12 = vadd.f32 %v2419_v28, %v2331_v27  ;;  %v2508_v53 = vpop.f32.mrf.mxu1  ;;  %v2336_v28 = vadd.f32 %v6260_v30, %v6479_v52  ;;  %v7640_v30 = vld [vmem:[#allocation49_spill] sm:$0xff] }
 0x2f7   :  { %v6548_v39 = vadd.f32 %v2683_v2, %v2595_v11  ;;  %v2509_v13 = vadd.f32 %v2508_v53, %v2420_v12  ;;  %2458 = vmatmul.bf16.gmra.mxu0 %v7635_v48 }
 0x2f8   :  { %2547 = vmatmul.bf16.gmra.mxu1 %v7636_v46  ;;  %v6560_v46 = vld [vmem:[#allocation10 + $0x20] sm:$0xff] }
 0x2f9   :  { %2636 = vmatmul.bf16.gmra.mxu2 %v7637_v26 }
 0x2fa   :  { %2725 = vmatmul.bf16.gmra.mxu3 %v7638_v32  ;;  %3175 = vmatpush.bf16.msrb.mxu2 %v6560_v46 }
 0x2fc   :  { %v2597_v15 = vpop.f32.mrf.mxu2  ;;  %v2421_v2 = vpop.f32.mrf.mxu0 }
 0x2fd   :  { %v2598_v3 = vadd.f32 %v2597_v15, %v2509_v13  ;;  %v2686_v27 = vpop.f32.mrf.mxu3  ;;  %v2422_v53 = vadd.f32 %v2421_v2, %v2333_v4  ;;  %v2510_v12 = vpop.f32.mrf.mxu1  ;;  %v6568_v4 = vld [vmem:[#allocation10 + $0x60] sm:$0xff]  ;;  %v6570_v15 = vld [vmem:[#allocation10 + $0x18] sm:$0xff]  ;;  %v2338_v2 = vadd.f32 %v6270_v10, %v6479_v52  ;;  %v2341_v10 = vadd.f32 %v6297_v24, %v6479_v52 }
 0x2fe   :  { %3176 = vmatpush.bf16.msrb.mxu2 %v6570_v15  ;;  %3194 = vmatpush.bf16.msrb.mxu3 %v6568_v4  ;;  %v7646_v24 = vld [vmem:[#allocation53_spill] sm:$0xff] }
 0x2ff   :  { %v6556_v5 = vadd.f32 %v2686_v27, %v2598_v3  ;;  %v2511_v11 = vadd.f32 %v2510_v12, %v2422_v53  ;;  %v7641_v3 = vld [vmem:[#allocation50_spill] sm:$0xff]  ;;  %v6579_v53 = vld [vmem:[#allocation10 + $0x10] sm:$0xff] }
 0x302   :  { %3177 = vmatpush.bf16.msrb.mxu2 %v6579_v53 }
 0x304   :  { %v2599_v48 = vpop.f32.mrf.mxu2  ;;  %v2424_v61 = vpop.f32.mrf.mxu0 }
 0x305   :  { %v6562_v26 = vadd.f32 %v2599_v48, %v2511_v11  ;;  %v6564_v25 = vpop.f32.mrf.mxu3  ;;  %v2425_v47 = vadd.f32 %v2424_v61, %v2336_v28  ;;  %v2513_v13 = vpop.f32.mrf.mxu1 }
 0x307   :  { %v2514_v32 = vadd.f32 %v2513_v13, %v2425_v47  ;;  %2463 = vmatmul.bf16.gmra.mxu0 %v7639_v20  ;;  %v6584_v13 = vld [vmem:[#allocation10 + $0x8] sm:$0xff] }
 0x308   :  { %2552 = vmatmul.bf16.gmra.mxu1 %v7640_v30  ;;  %3178 = vmatpush.bf16.msrb.mxu2 %v6584_v13  ;;  %v6589_v30 = vld [vmem:[#allocation10] sm:$0xff] }
 0x309   :  { %2641 = vmatmul.bf16.gmra.mxu2 %v7641_v3 }
 0x30a   :  { %2730 = vmatmul.bf16.gmra.mxu3 %v6231_v41 }
 0x30c   :  { %v2602_v27 = vpop.f32.mrf.mxu2  ;;  %v2426_v11 = vpop.f32.mrf.mxu0  ;;  %3179 = vmatpush.bf16.msrb.mxu2 %v6589_v30 }
 0x30d   :  { %v2603_v12 = vadd.f32 %v2602_v27, %v2514_v32  ;;  %v2691_v28 = vpop.f32.mrf.mxu3  ;;  %v2427_v48 = vadd.f32 %v2426_v11, %v2338_v2  ;;  %v2515_v61 = vpop.f32.mrf.mxu1 }
 0x30f   :  { %v6582_v47 = vadd.f32 %v2691_v28, %v2603_v12  ;;  %v2516_v41 = vadd.f32 %v2515_v61, %v2427_v48  ;;  %v7644_v28 = vld [vmem:[#allocation51_spill] sm:$0xff]  ;;  %v7645_v48 = vld [vmem:[#allocation52_spill] sm:$0xff]  ;;  %v2343_v61 = vadd.f32 %v6305_v6, %v6479_v52 }
 0x310   :  { %3294 = vmatpush.bf16.msra.mxu2 %v6460_v50 }
 0x314   :  { %v2604_v20 = vpop.f32.mrf.mxu2  ;;  %v2429_v3 = vpop.f32.mrf.mxu0  ;;  %3295 = vmatpush.bf16.msra.mxu2 %v6500_v17 }
 0x315   :  { %v6591_v32 = vadd.f32 %v2604_v20, %v2516_v41  ;;  %v6593_v2 = vpop.f32.mrf.mxu3  ;;  %v2430_v27 = vadd.f32 %v2429_v3, %v2341_v10  ;;  %v2518_v11 = vpop.f32.mrf.mxu1 }
 0x316   :  { %7643 = vst [vmem:[#allocation71_spill] sm:$0xff] %v6593_v2 }
 0x317   :  { %7642 = vst [vmem:[#allocation64_spill] sm:$0xff] %v6591_v32  ;;  %v2519_v12 = vadd.f32 %v2518_v11, %v2430_v27  ;;  %2468 = vmatmul.bf16.gmra.mxu0 %v7644_v28 }
 0x318   :  { %2557 = vmatmul.bf16.gmra.mxu1 %v7645_v48  ;;  %3296 = vmatpush.bf16.msra.mxu2 %v6530_v33 }
 0x319   :  { %2646 = vmatmul.bf16.gmra.mxu2 %v7646_v24 }
 0x31a   :  { %2735 = vmatmul.bf16.gmra.mxu3 %v6268_v14  ;;  %v2346_v14 = vadd.f32 %v6326_v9, %v6479_v52  ;;  %v2348_v9 = vadd.f32 %v6332_v62, %v6479_v52 }
 0x31c   :  { %v2607_v41 = vpop.f32.mrf.mxu2  ;;  %v2431_v20 = vpop.f32.mrf.mxu0  ;;  %3297 = vmatpush.bf16.msra.mxu2 %v6560_v46 }
 0x31d   :  { %v2608_v10 = vadd.f32 %v2607_v41, %v2519_v12  ;;  %v2696_v3 = vpop.f32.mrf.mxu3  ;;  %v2432_v2 = vadd.f32 %v2431_v20, %v2343_v61  ;;  %v2520_v32 = vpop.f32.mrf.mxu1  ;;  %v6616_v20 = vld [vmem:[#allocation10 + $0x58] sm:$0xff] }
 0x31e   :  { %3195 = vmatpush.bf16.msrb.mxu3 %v6616_v20 }
 0x31f   :  { %v6604_v27 = vadd.f32 %v2696_v3, %v2608_v10  ;;  %v2521_v11 = vadd.f32 %v2520_v32, %v2432_v2  ;;  %v7648_v10 = vld [vmem:[#allocation54_spill] sm:$0xff]  ;;  %v7649_v32 = vld [vmem:[#allocation55_spill] sm:$0xff]  ;;  %v7650_v2 = vld [vmem:[#allocation56_spill] sm:$0xff] }
 0x320   :  { %3298 = vmatpush.bf16.msra.mxu2 %v6570_v15 }
 0x324   :  { %v2609_v28 = vpop.f32.mrf.mxu2  ;;  %v2434_v6 = vpop.f32.mrf.mxu0  ;;  %3299 = vmatpush.bf16.msra.mxu2 %v6579_v53 }
 0x325   :  { %v6610_v48 = vadd.f32 %v2609_v28, %v2521_v11  ;;  %v6612_v24 = vpop.f32.mrf.mxu3  ;;  %v2435_v12 = vadd.f32 %v2434_v6, %v2346_v14  ;;  %v2523_v41 = vpop.f32.mrf.mxu1 }
 0x326   :  { %7647 = vst [vmem:[#allocation21_spill] sm:$0xff] %v6612_v24 }
 0x327   :  { %v2524_v61 = vadd.f32 %v2523_v41, %v2435_v12  ;;  %2473 = vmatmul.bf16.gmra.mxu0 %v7648_v10 }
 0x328   :  { %2562 = vmatmul.bf16.gmra.mxu1 %v7649_v32  ;;  %3300 = vmatpush.bf16.msra.mxu2 %v6584_v13 }
 0x329   :  { %2651 = vmatmul.bf16.gmra.mxu2 %v7650_v2 }
 0x32a   :  { %2740 = vmatmul.bf16.gmra.mxu3 %v6303_v0  ;;  %v2351_v0 = vadd.f32 %v6346_v60, %v6479_v52  ;;  %v2353_v60 = vadd.f32 %v6350_v42, %v6479_v52 }
 0x32c   :  { %v2612_v3 = vpop.f32.mrf.mxu2  ;;  %v2436_v14 = vpop.f32.mrf.mxu0  ;;  %3301 = vmatpush.bf16.msra.mxu2 %v6589_v30 }
 0x32d   :  { %v2613_v11 = vadd.f32 %v2612_v3, %v2524_v61  ;;  %v2701_v28 = vpop.f32.mrf.mxu3  ;;  %v2437_v6 = vadd.f32 %v2436_v14, %v2348_v9  ;;  %v2525_v12 = vpop.f32.mrf.mxu1  ;;  %v7652_v14 = vld [vmem:[#allocation57_spill] sm:$0xff] }
 0x32f   :  { %v6625_v41 = vadd.f32 %v2701_v28, %v2613_v11  ;;  %v2526_v10 = vadd.f32 %v2525_v12, %v2437_v6  ;;  %v7653_v11 = vld [vmem:[#allocation58_spill] sm:$0xff]  ;;  %v7449_v28 = vmov 1.0|1.0  }
 0x334   :  { %v2614_v32 = vpop.f32.mrf.mxu2  ;;  %v2439_v62 = vpop.f32.mrf.mxu0 }
 0x335   :  { %v6631_v2 = vadd.f32 %v2614_v32, %v2526_v10  ;;  %v6633_v24 = vpop.f32.mrf.mxu3  ;;  %v2440_v61 = vadd.f32 %v2439_v62, %v2351_v0  ;;  %v2528_v3 = vpop.f32.mrf.mxu1 }
 0x336   :  { %7651 = vst [vmem:[#allocation22_spill] sm:$0xff] %v6633_v24 }
 0x337   :  { %v2529_v9 = vadd.f32 %v2528_v3, %v2440_v61  ;;  %2754 = vmatmul.bf16.vlgmr.msrb.gmra.mxu0 %v7652_v14 }
 0x338   :  { %4989 = vmatmul.msk.bf16.vlgmr.msrb.gmra.mxu1 %vm7654_vm12, %v7653_v11  ;;  %v2356_v11 = vadd.f32 %v6364_v37, %v6479_v52  ;;  %v2361_v37 = vadd.f32 %v6382_v34, %v6479_v52  ;;  %v2363_v34 = vadd.f32 %v6386_v1, %v6479_v52 }
 0x339   :  { %5078 = vmatmul.msk.bf16.vlgmr.msrb.gmra.mxu2 %vm6098_vm4, %v7449_v28  ;;  %vm7661_vm4 = vmmov %vm7654_vm12 }
 0x33a   :  { %3420 = vmatpush.bf16.msrb.mxu2 %v6460_v50 }
 0x33c   :  { %v2617_v12 = vpop.f32.mrf.mxu2  ;;  %v2441_v0 = vpop.f32.mrf.mxu0 }
 0x33d   :  { %v2618_v10 = vadd.f32 %v2617_v12, %v2529_v9  ;;  %v2706_v32 = vpop.f32.mrf.mxu3  ;;  %v2442_v62 = vadd.f32 %v2441_v0, %v2353_v60  ;;  %v2530_v61 = vpop.f32.mrf.mxu1  ;;  %v7659_v0 = vld [vmem:[#allocation59_spill] sm:$0xff] }
 0x33e   :  { %3421 = vmatpush.bf16.msrb.mxu2 %v6500_v17 }
 0x33f   :  { %v6645_v3 = vadd.f32 %v2706_v32, %v2618_v10  ;;  %v2531_v14 = vadd.f32 %v2530_v61, %v2442_v62  ;;  %v6656_v10 = vld [vmem:[#allocation10 + $0x50] sm:$0xff]  ;;  %v7660_v32 = vld [vmem:[#allocation60_spill] sm:$0xff]  ;;  %v7662_v62 = vmov 1.0|1.0   ;;  %v2358_v61 = vadd.f32 %v6368_v49, %v6479_v52 }
 0x340   :  { %3196 = vmatpush.bf16.msrb.mxu3 %v6656_v10 }
 0x341   :  { %7656 = vst [vmem:[#allocation23_spill] sm:$0xff] %v6645_v3 }
 0x342   :  { %3422 = vmatpush.bf16.msrb.mxu2 %v6530_v33 }
 0x344   :  { %v2619_v6 = vpop.f32.mrf.mxu2  ;;  %v2444_v42 = vpop.f32.mrf.mxu0 }
 0x345   :  { %v6650_v28 = vadd.f32 %v2619_v6, %v2531_v14  ;;  %v6652_v24 = vpop.f32.mrf.mxu3  ;;  %v2445_v9 = vadd.f32 %v2444_v42, %v2356_v11  ;;  %v2533_v12 = vpop.f32.mrf.mxu1 }
 0x346   :  { %7658 = vst [vmem:[#allocation75_spill] sm:$0xff] %v6652_v24  ;;  %3423 = vmatpush.bf16.msrb.mxu2 %v6560_v46 }
 0x347   :  { %7657 = vst [vmem:[#allocation68_spill] sm:$0xff] %v6650_v28  ;;  %v2534_v60 = vadd.f32 %v2533_v12, %v2445_v9  ;;  %2759 = vmatmul.bf16.gmra.mxu0 %v7659_v0 }
 0x348   :  { %4990 = vmatmul.msk.bf16.gmra.mxu1 %vm7661_vm4, %v7660_v32 }
 0x349   :  { %5080 = vmatmul.msk.bf16.gmra.mxu2 %vm6132_vm7, %v7662_v62  ;;  %vm7667_vm7 = vmmov %vm7661_vm4 }
 0x34a   :  { %3424 = vmatpush.bf16.msrb.mxu2 %v6570_v15 }
 0x34c   :  { %v2622_v14 = vpop.f32.mrf.mxu2  ;;  %v2446_v6 = vpop.f32.mrf.mxu0 }
 0x34d   :  { %v2623_v11 = vadd.f32 %v2622_v14, %v2534_v60  ;;  %v2711_v42 = vpop.f32.mrf.mxu3  ;;  %v2447_v9 = vadd.f32 %v2446_v6, %v2358_v61  ;;  %v2535_v12 = vpop.f32.mrf.mxu1  ;;  %v7665_v6 = vld [vmem:[#allocation62_spill] sm:$0xff] }
 0x34e   :  { %3425 = vmatpush.bf16.msrb.mxu2 %v6579_v53 }
 0x34f   :  { %v6668_v0 = vadd.f32 %v2711_v42, %v2623_v11  ;;  %v2536_v32 = vadd.f32 %v2535_v12, %v2447_v9  ;;  %v7666_v11 = vld [vmem:[#allocation63_spill] sm:$0xff] }
 0x352   :  { %3426 = vmatpush.bf16.msrb.mxu2 %v6584_v13 }
 0x354   :  { %v2624_v24 = vpop.f32.mrf.mxu2  ;;  %v2449_v49 = vpop.f32.mrf.mxu0 }
 0x355   :  { %v6673_v28 = vadd.f32 %v2624_v24, %v2536_v32  ;;  %v6675_v3 = vpop.f32.mrf.mxu3  ;;  %v2450_v60 = vadd.f32 %v2449_v49, %v2361_v37  ;;  %v2538_v14 = vpop.f32.mrf.mxu1 }
 0x356   :  { %7664 = vst [vmem:[#allocation24_spill] sm:$0xff] %v6675_v3  ;;  %3427 = vmatpush.bf16.msrb.mxu2 %v6589_v30 }
 0x357   :  { %v2539_v61 = vadd.f32 %v2538_v14, %v2450_v60  ;;  %2764 = vmatmul.bf16.gmra.mxu0 %v7665_v6  ;;  %v2366_v6 = vadd.f32 %v6400_v59, %v6479_v52 }
 0x358   :  { %4991 = vmatmul.msk.bf16.gmra.mxu1 %vm7667_vm7, %v7666_v11 }
 0x359   :  { %5098 = vmatmul.msk.bf16.vlgmr.msra.gmra.mxu2 %vm6177_vm10, %v7662_v62  ;;  %vm7673_vm10 = vmmov %vm7661_vm4 }
 0x35a   :  { %3546 = vmatpush.bf16.msra.mxu2 %v6460_v50 }
 0x35c   :  { %v2627_v24 = vpop.f32.mrf.mxu2  ;;  %v2451_v12 = vpop.f32.mrf.mxu0 }
 0x35d   :  { %v2628_v9 = vadd.f32 %v2627_v24, %v2539_v61  ;;  %v2716_v32 = vpop.f32.mrf.mxu3  ;;  %v2452_v37 = vadd.f32 %v2451_v12, %v2363_v34  ;;  %v2540_v49 = vpop.f32.mrf.mxu1  ;;  %v7671_v12 = vld [vmem:[#allocation65_spill] sm:$0xff] }
 0x35e   :  { %3547 = vmatpush.bf16.msra.mxu2 %v6500_v17 }
 0x35f   :  { %v6688_v60 = vadd.f32 %v2716_v32, %v2628_v9  ;;  %v2541_v14 = vadd.f32 %v2540_v49, %v2452_v37  ;;  %v6699_v9 = vld [vmem:[#allocation10 + $0x48] sm:$0xff]  ;;  %v2368_v37 = vadd.f32 %v6404_v38, %v6479_v52 }
 0x360   :  { %v7672_v32 = vld [vmem:[#allocation66_spill] sm:$0xff]  ;;  %3197 = vmatpush.bf16.msrb.mxu3 %v6699_v9 }
 0x362   :  { %3548 = vmatpush.bf16.msra.mxu2 %v6530_v33 }
 0x364   :  { %v2629_v11 = vpop.f32.mrf.mxu2  ;;  %v2454_v1 = vpop.f32.mrf.mxu0 }
 0x365   :  { %v6693_v42 = vadd.f32 %v2629_v11, %v2541_v14  ;;  %v6695_v3 = vpop.f32.mrf.mxu3  ;;  %v2455_v61 = vadd.f32 %v2454_v1, %v2366_v6  ;;  %v2543_v24 = vpop.f32.mrf.mxu1 }
 0x366   :  { %7670 = vst [vmem:[#allocation26_spill] sm:$0xff] %v6695_v3  ;;  %3549 = vmatpush.bf16.msra.mxu2 %v6560_v46 }
 0x367   :  { %7669 = vst [vmem:[#allocation25_spill] sm:$0xff] %v6693_v42  ;;  %v2544_v34 = vadd.f32 %v2543_v24, %v2455_v61  ;;  %2769 = vmatmul.bf16.gmra.mxu0 %v7671_v12 }
 0x368   :  { %4992 = vmatmul.msk.bf16.gmra.mxu1 %vm7673_vm10, %v7672_v32  ;;  %v2371_v32 = vadd.f32 %v6418_v19, %v6479_v52  ;;  %v2373_v19 = vadd.f32 %v6422_v54, %v6479_v52 }
 0x369   :  { %5100 = vmatmul.msk.bf16.gmra.mxu2 %vm6217_vm13, %v7662_v62  ;;  %vm7678_vm13 = vmmov %vm7661_vm4 }
 0x36a   :  { %3550 = vmatpush.bf16.msra.mxu2 %v6570_v15 }
 0x36c   :  { %v2632_v49 = vpop.f32.mrf.mxu2  ;;  %v2456_v6 = vpop.f32.mrf.mxu0 }
 0x36d   :  { %v2633_v14 = vadd.f32 %v2632_v49, %v2544_v34  ;;  %v2721_v11 = vpop.f32.mrf.mxu3  ;;  %v2457_v1 = vadd.f32 %v2456_v6, %v2368_v37  ;;  %v2545_v61 = vpop.f32.mrf.mxu1  ;;  %v7676_v6 = vld [vmem:[#allocation69_spill] sm:$0xff] }
 0x36e   :  { %3551 = vmatpush.bf16.msra.mxu2 %v6579_v53 }
 0x36f   :  { %v6711_v24 = vadd.f32 %v2721_v11, %v2633_v14  ;;  %v2546_v12 = vadd.f32 %v2545_v61, %v2457_v1  ;;  %v7677_v14 = vld [vmem:[#allocation70_spill] sm:$0xff] }
 0x372   :  { %3552 = vmatpush.bf16.msra.mxu2 %v6584_v13 }
 0x374   :  { %v2634_v59 = vpop.f32.mrf.mxu2  ;;  %v2459_v38 = vpop.f32.mrf.mxu0 }
 0x375   :  { %v6716_v3 = vadd.f32 %v2634_v59, %v2546_v12  ;;  %v6718_v42 = vpop.f32.mrf.mxu3  ;;  %v2460_v34 = vadd.f32 %v2459_v38, %v2371_v32  ;;  %v2548_v49 = vpop.f32.mrf.mxu1 }
 0x376   :  { %7675 = vst [vmem:[#allocation72_spill] sm:$0xff] %v6718_v42  ;;  %3553 = vmatpush.bf16.msra.mxu2 %v6589_v30 }
 0x377   :  { %v2549_v37 = vadd.f32 %v2548_v49, %v2460_v34  ;;  %2774 = vmatmul.bf16.gmra.mxu0 %v7676_v6  ;;  %v2376_v6 = vadd.f32 %v6436_v7, %v6479_v52  ;;  %v2378_v7 = vadd.f32 %v6440_v22, %v6479_v52  ;;  %v2381_v22 = vadd.f32 %v6454_v36, %v6479_v52 }
 0x378   :  { %4993 = vmatmul.msk.bf16.gmra.mxu1 %vm7678_vm13, %v7677_v14  ;;  %v2383_v36 = vadd.f32 %v6458_v63, %v6479_v52  ;;  %v2386_v63 = vadd.f32 %v6476_v55, %v6479_v52  ;;  %v2388_v55 = vadd.f32 %v6484_v57, %v6479_v52  ;;  %v7690_v52 = vld [vmem:[#allocation83_spill] sm:$0xff]  ;;  %v7691_v57 = vld [vmem:[#allocation84_spill] sm:$0xff] }
 0x379   :  { %5118 = vmatmul.msk.bf16.vlgmr.msrb.gmra.mxu2 %vm6255_vm0, %v7662_v62  ;;  %vm7682_vm0 = vmmov %vm7661_vm4 }
 0x37a   :  { %3672 = vmatpush.bf16.msrb.mxu2 %v6460_v50  ;;  %vm7698_vm13 = vmmov %vm7682_vm0 }
 0x37c   :  { %v2637_v1 = vpop.f32.mrf.mxu2  ;;  %v2461_v12 = vpop.f32.mrf.mxu0 }
 0x37d   :  { %v2638_v61 = vadd.f32 %v2637_v1, %v2549_v37  ;;  %v2726_v32 = vpop.f32.mrf.mxu3  ;;  %v2462_v59 = vadd.f32 %v2461_v12, %v2373_v19  ;;  %v2550_v38 = vpop.f32.mrf.mxu1  ;;  %v7680_v12 = vld [vmem:[#allocation73_spill] sm:$0xff] }
 0x37e   :  { %3673 = vmatpush.bf16.msrb.mxu2 %v6500_v17 }
 0x37f   :  { %v6731_v34 = vadd.f32 %v2726_v32, %v2638_v61  ;;  %v2551_v49 = vadd.f32 %v2550_v38, %v2462_v59  ;;  %v6742_v61 = vld [vmem:[#allocation10 + $0x40] sm:$0xff]  ;;  %v7681_v32 = vld [vmem:[#allocation74_spill] sm:$0xff] }
 0x380   :  { %3198 = vmatpush.bf16.msrb.mxu3 %v6742_v61 }
 0x382   :  { %3674 = vmatpush.bf16.msrb.mxu2 %v6530_v33 }
 0x384   :  { %v2639_v14 = vpop.f32.mrf.mxu2  ;;  %v2464_v54 = vpop.f32.mrf.mxu0  ;;  %3313 = vmatpush.bf16.msra.mxu3 %v6465_v35 }
 0x385   :  { %v6736_v11 = vadd.f32 %v2639_v14, %v2551_v49  ;;  %v6738_v42 = vpop.f32.mrf.mxu3  ;;  %v2465_v37 = vadd.f32 %v2464_v54, %v2376_v6  ;;  %v2553_v1 = vpop.f32.mrf.mxu1 }
 0x386   :  { %3675 = vmatpush.bf16.msrb.mxu2 %v6560_v46 }
 0x387   :  { %v2554_v19 = vadd.f32 %v2553_v1, %v2465_v37  ;;  %2779 = vmatmul.bf16.gmra.mxu0 %v7680_v12 }
 0x388   :  { %4994 = vmatmul.msk.bf16.gmra.mxu1 %vm7682_vm0, %v7681_v32  ;;  %3314 = vmatpush.bf16.msra.mxu3 %v6506_v18 }
 0x389   :  { %5120 = vmatmul.msk.bf16.gmra.mxu2 %vm6293_vm5, %v7662_v62  ;;  %vm7685_vm5 = vmmov %vm7682_vm0 }
 0x38a   :  { %3676 = vmatpush.bf16.msrb.mxu2 %v6570_v15 }
 0x38c   :  { %v2642_v59 = vpop.f32.mrf.mxu2  ;;  %v2466_v49 = vpop.f32.mrf.mxu0  ;;  %3315 = vmatpush.bf16.msra.mxu3 %v6536_v40 }
 0x38d   :  { %v2643_v38 = vadd.f32 %v2642_v59, %v2554_v19  ;;  %v2731_v6 = vpop.f32.mrf.mxu3  ;;  %v2467_v14 = vadd.f32 %v2466_v49, %v2378_v7  ;;  %v2555_v54 = vpop.f32.mrf.mxu1  ;;  %v7683_v49 = vld [vmem:[#allocation77_spill] sm:$0xff] }
 0x38e   :  { %3677 = vmatpush.bf16.msrb.mxu2 %v6579_v53 }
 0x38f   :  { %v6755_v37 = vadd.f32 %v2731_v6, %v2643_v38  ;;  %v2556_v51 = vadd.f32 %v2555_v54, %v2467_v14  ;;  %v7684_v6 = vld [vmem:[#allocation78_spill] sm:$0xff] }
 0x390   :  { %3316 = vmatpush.bf16.msra.mxu3 %v6568_v4 }
 0x392   :  { %3678 = vmatpush.bf16.msrb.mxu2 %v6584_v13 }
 0x394   :  { %v2644_v1 = vpop.f32.mrf.mxu2  ;;  %v2469_v12 = vpop.f32.mrf.mxu0  ;;  %3317 = vmatpush.bf16.msra.mxu3 %v6616_v20 }
 0x395   :  { %v6762_v19 = vadd.f32 %v2644_v1, %v2556_v51  ;;  %v6764_v32 = vpop.f32.mrf.mxu3  ;;  %v2470_v7 = vadd.f32 %v2469_v12, %v2381_v22  ;;  %v2558_v59 = vpop.f32.mrf.mxu1 }
 0x396   :  { %3679 = vmatpush.bf16.msrb.mxu2 %v6589_v30 }
 0x397   :  { %v2559_v38 = vadd.f32 %v2558_v59, %v2470_v7  ;;  %2784 = vmatmul.bf16.gmra.mxu0 %v7683_v49 }
 0x398   :  { %4995 = vmatmul.msk.bf16.gmra.mxu1 %vm7685_vm5, %v7684_v6  ;;  %3318 = vmatpush.bf16.msra.mxu3 %v6656_v10 }
 0x399   :  { %5138 = vmatmul.msk.bf16.vlgmr.msra.gmra.mxu2 %vm6321_vm9, %v7662_v62  ;;  %vm7689_vm9 = vmmov %vm7682_vm0 }
 0x39a   :  { %3798 = vmatpush.bf16.msra.mxu2 %v6460_v50 }
 0x39c   :  { %v2647_v14 = vpop.f32.mrf.mxu2  ;;  %v2471_v51 = vpop.f32.mrf.mxu0  ;;  %3319 = vmatpush.bf16.msra.mxu3 %v6699_v9 }
 0x39d   :  { %v2648_v54 = vadd.f32 %v2647_v14, %v2559_v38  ;;  %v2736_v22 = vpop.f32.mrf.mxu3  ;;  %v2472_v1 = vadd.f32 %v2471_v51, %v2383_v36  ;;  %v2560_v12 = vpop.f32.mrf.mxu1  ;;  %v7687_v51 = vld [vmem:[#allocation81_spill] sm:$0xff] }
 0x39e   :  { %3799 = vmatpush.bf16.msra.mxu2 %v6500_v17 }
 0x39f   :  { %v6779_v7 = vadd.f32 %v2736_v22, %v2648_v54  ;;  %v2561_v8 = vadd.f32 %v2560_v12, %v2472_v1  ;;  %v7688_v22 = vld [vmem:[#allocation82_spill] sm:$0xff] }
 0x3a0   :  { %3320 = vmatpush.bf16.msra.mxu3 %v6742_v61 }
 0x3a2   :  { %3800 = vmatpush.bf16.msra.mxu2 %v6530_v33 }
 0x3a4   :  { %v2649_v59 = vpop.f32.mrf.mxu2  ;;  %v2474_v49 = vpop.f32.mrf.mxu0 }
 0x3a5   :  { %v6786_v38 = vadd.f32 %v2649_v59, %v2561_v8  ;;  %v6788_v6 = vpop.f32.mrf.mxu3  ;;  %v2475_v36 = vadd.f32 %v2474_v49, %v2386_v63  ;;  %v2563_v14 = vpop.f32.mrf.mxu1 }
 0x3a6   :  { %7686 = vst [vmem:[#allocation79_spill] sm:$0xff] %v6788_v6  ;;  %3801 = vmatpush.bf16.msra.mxu2 %v6560_v46 }
 0x3a7   :  { %v2564_v54 = vadd.f32 %v2563_v14, %v2475_v36  ;;  %2789 = vmatmul.bf16.gmra.mxu0 %v7687_v51 }
 0x3a8   :  { %4996 = vmatmul.msk.bf16.gmra.mxu1 %vm7689_vm9, %v7688_v22 }
 0x3a9   :  { %5140 = vmatmul.msk.bf16.gmra.mxu2 %vm6342_vm14, %v7662_v62  ;;  %vm7692_vm14 = vmmov %vm7682_vm0 }
 0x3aa   :  { %3802 = vmatpush.bf16.msra.mxu2 %v6570_v15 }
 0x3ac   :  { %v2652_v1 = vpop.f32.mrf.mxu2  ;;  %v2476_v8 = vpop.f32.mrf.mxu0 }
 0x3ad   :  { %v2653_v12 = vadd.f32 %v2652_v1, %v2564_v54  ;;  %v2741_v63 = vpop.f32.mrf.mxu3  ;;  %v2477_v59 = vadd.f32 %v2476_v8, %v2388_v55  ;;  %v2565_v49 = vpop.f32.mrf.mxu1 }
 0x3ae   :  { %3803 = vmatpush.bf16.msra.mxu2 %v6579_v53 }
 0x3af   :  { %v6802_v36 = vadd.f32 %v2741_v63, %v2653_v12  ;;  %v2566_v14 = vadd.f32 %v2565_v49, %v2477_v59 }
 0x3b2   :  { %3804 = vmatpush.bf16.msra.mxu2 %v6584_v13 }
 0x3b4   :  { %v2654_v21 = vpop.f32.mrf.mxu2  ;;  %v2755_v22 = vpop.f32.mrf.mxu0 }
 0x3b5   :  { %v6805_v51 = vadd.f32 %v2654_v21, %v2566_v14  ;;  %v2844_v6 = vpop.f32.mrf.mxu1  ;;  %v2756_v54 = vadd.f32 %v2755_v22, %v6496_v16 }
 0x3b6   :  { %3805 = vmatpush.bf16.msra.mxu2 %v6589_v30 }
 0x3b7   :  { %2794 = vmatmul.bf16.gmra.mxu0 %v7690_v52  ;;  %v2845_v1 = vadd.f32 %v2844_v6, %v2756_v54  ;;  %v7694_v6 = vld [vmem:[#allocation87_spill] sm:$0xff] }
 0x3b8   :  { %4997 = vmatmul.msk.bf16.gmra.mxu1 %vm7692_vm14, %v7691_v57 }
 0x3b9   :  { %5158 = vmatmul.msk.bf16.vlgmr.msrb.gmra.mxu2 %vm6359_vm3, %v7662_v62  ;;  %vm3038_vm6 = vcmp.ge.f32.partialorder %v2845_v1, 1.0  ;;  %vm7695_vm3 = vmmov %vm7682_vm0 }
 0x3ba   :  { %3924 = vmatpush.bf16.msrb.mxu2 %v6460_v50  ;;  %v3046_v31 = vsel %vm3038_vm6, 0.0, %v2845_v1  ;;  %vm7702_vm9 = vmmov %vm7695_vm3 }
 0x3bb   :  { %v3243_v57 = vmul.f32 0.5, %v3046_v31 }
 0x3bc   :  { %v2757_v55 = vpop.f32.mrf.mxu0 }
 0x3bd   :  { %v2758_v12 = vadd.f32 %v2757_v55, %v6502_v44  ;;  %v2846_v8 = vpop.f32.mrf.mxu1  ;;  %v7693_v44 = vld [vmem:[#allocation86_spill] sm:$0xff]  ;;  %v7696_v55 = vld [vmem:[#allocation92_spill] sm:$0xff] }
 0x3be   :  { %3925 = vmatpush.bf16.msrb.mxu2 %v6500_v17 }
 0x3bf   :  { %v2847_v63 = vadd.f32 %v2846_v8, %v2758_v12  ;;  %v7697_v12 = vld [vmem:[#allocation93_spill] sm:$0xff] }
 0x3c1   :  { %vm3040_vm12 = vcmp.ge.f32.partialorder %v2847_v63, 1.0 }
 0x3c2   :  { %3926 = vmatpush.bf16.msrb.mxu2 %v6530_v33  ;;  %vm5081_vm4 = vmpackc.low %vm3040_vm12, %vm3038_vm6 }
 0x3c3   :  { %5082 = vmatmul.msk.bf16.vlgmr.msrb.gmra.mxu3 %vm5081_vm4, %v7662_v62 }
 0x3c4   :  { %v2760_v58 = vpop.f32.mrf.mxu0  ;;  %3439 = vmatpush.bf16.msrb.mxu3 %v6465_v35 }
 0x3c5   :  { %v2849_v16 = vpop.f32.mrf.mxu1  ;;  %v2761_v59 = vadd.f32 %v2760_v58, %v6514_v29  ;;  %v7699_v58 = vld [vmem:[#allocation20_spill] sm:$0xff] }
 0x3c6   :  { %3927 = vmatpush.bf16.msrb.mxu2 %v6560_v46 }
 0x3c7   :  { %2799 = vmatmul.bf16.gmra.mxu0 %v7693_v44  ;;  %v2850_v35 = vadd.f32 %v2849_v16, %v2761_v59 }
 0x3c8   :  { %4998 = vmatmul.msk.bf16.gmra.mxu1 %vm7695_vm3, %v7694_v6  ;;  %3440 = vmatpush.bf16.msrb.mxu3 %v6506_v18 }
 0x3c9   :  { %5160 = vmatmul.msk.bf16.gmra.mxu2 %vm6378_vm11, %v7662_v62  ;;  %vm3042_vm7 = vcmp.ge.f32.partialorder %v2850_v35, 1.0 }
 0x3ca   :  { %3928 = vmatpush.bf16.msrb.mxu2 %v6570_v15  ;;  %v3050_v56 = vsel %vm3042_vm7, 0.0, %v2850_v35  ;;  %v7701_v35 = vld [vmem:[#allocation98_spill] sm:$0xff] }
 0x3cc   :  { %v2762_v49 = vpop.f32.mrf.mxu0  ;;  %3441 = vmatpush.bf16.msrb.mxu3 %v6536_v40 }
 0x3cd   :  { %v2763_v14 = vadd.f32 %v2762_v49, %v6518_v23  ;;  %v2851_v21 = vpop.f32.mrf.mxu1 }
 0x3ce   :  { %3929 = vmatpush.bf16.msrb.mxu2 %v6579_v53 }
 0x3cf   :  { %v2852_v22 = vadd.f32 %v2851_v21, %v2763_v14  ;;  %v3247_v21 = vmul.f32 0.5, %v3050_v56 }
 0x3d0   :  { %3442 = vmatpush.bf16.msrb.mxu3 %v6568_v4 }
 0x3d1   :  { %vm3044_vm10 = vcmp.ge.f32.partialorder %v2852_v22, 1.0 }
 0x3d2   :  { %3930 = vmatpush.bf16.msrb.mxu2 %v6584_v13  ;;  %vm5083_vm11 = vmpackc.low %vm3044_vm10, %vm3042_vm7 }
 0x3d3   :  { %5084 = vmatmul.msk.bf16.gmra.mxu3 %vm5083_vm11, %v7662_v62  ;;  %vm7711_vm11 = vmmov %vm7702_vm9 }
 0x3d4   :  { %v2765_v23 = vpop.f32.mrf.mxu0  ;;  %3443 = vmatpush.bf16.msrb.mxu3 %v6616_v20 }
 0x3d5   :  { %v2766_v29 = vadd.f32 %v2765_v23, %v6526_v43  ;;  %v2854_v52 = vpop.f32.mrf.mxu1  ;;  %v3048_v43 = vsel %vm3040_vm12, 0.0, %v2847_v63  ;;  %v7700_v23 = vld [vmem:[#allocation97_spill] sm:$0xff]  ;;  %vm7706_vm12 = vmmov %vm7695_vm3 }
 0x3d6   :  { %3931 = vmatpush.bf16.msrb.mxu2 %v6589_v30  ;;  %v3245_v6 = vmul.f32 0.5, %v3048_v43 }
 0x3d7   :  { %v2855_v54 = vadd.f32 %v2854_v52, %v2766_v29  ;;  %2804 = vmatmul.bf16.gmra.mxu0 %v7696_v55  ;;  %v3052_v52 = vsel %vm3044_vm10, 0.0, %v2852_v22 }
 0x3d8   :  { %4999 = vmatmul.msk.bf16.gmra.mxu1 %vm7698_vm13, %v7697_v12  ;;  %3444 = vmatpush.bf16.msrb.mxu3 %v6656_v10  ;;  %v3249_v12 = vmul.f32 0.5, %v3052_v52  ;;  %v7709_v52 = vld [vmem:[#allocation106_spill] sm:$0xff] }
 0x3d9   :  { %5178 = vmatmul.msk.bf16.vlgmr.msra.gmra.mxu2 %vm6395_vm2, %v7662_v62  ;;  %v3251_v1 = vadd.f32 %v3243_v57, %v2855_v54 }
 0x3da   :  { %4042 = vmatpush.bf16.msra.mxu2 %v6460_v50  ;;  %v6859_v50 = vpop.f32.mrf.mxu2 }
 0x3db   :  { %vm3259_vm2 = vcmp.ge.f32.partialorder %v3251_v1, 1.0 }
 0x3dc   :  { %v2767_v8 = vpop.f32.mrf.mxu0  ;;  %3445 = vmatpush.bf16.msrb.mxu3 %v6699_v9 }
 0x3dd   :  { %v2768_v16 = vadd.f32 %v2767_v8, %v7699_v58  ;;  %v2856_v44 = vpop.f32.mrf.mxu1 }
 0x3de   :  { %4043 = vmatpush.bf16.msra.mxu2 %v6500_v17 }
 0x3df   :  { %v2857_v59 = vadd.f32 %v2856_v44, %v2768_v16  ;;  %v7704_v16 = vld [vmem:[#allocation102_spill] sm:$0xff]  ;;  %v7707_v44 = vld [vmem:[#allocation61_spill] sm:$0xff] }
 0x3e0   :  { %3446 = vmatpush.bf16.msrb.mxu3 %v6742_v61  ;;  %vm7708_vm4 = vnez %v7707_v44 }
 0x3e1   :  { %v3253_v49 = vadd.f32 %v3245_v6, %v2857_v59 }
 0x3e2   :  { %4044 = vmatpush.bf16.msra.mxu2 %v6530_v33  ;;  %v6867_v33 = vld [vmem:[#allocation10 + $0x78] sm:$0xff] }
 0x3e3   :  { %vm3261_vm0 = vcmp.ge.f32.partialorder %v3253_v49, 1.0 }
 0x3e4   :  { %vm5101_vm5 = vmpackc.low %vm3261_vm0, %vm3259_vm2  ;;  %v2770_v63 = vpop.f32.mrf.mxu0  ;;  %v3269_v59 = vsel %vm3261_vm0, 0.0, %v3253_v49 }
 0x3e5   :  { %v2771_v17 = vadd.f32 %v2770_v63, %v6544_v45  ;;  %v2859_v14 = vpop.f32.mrf.mxu1  ;;  %5102 = vmatmul.msk.bf16.vlgmr.msra.gmra.mxu3 %vm5101_vm5, %v7662_v62 }
 0x3e6   :  { %4045 = vmatpush.bf16.msra.mxu2 %v6560_v46  ;;  %3565 = vmatpush.bf16.msra.mxu3 %v6867_v33  ;;  %v6878_v46 = vpop.f32.mrf.mxu2 }
 0x3e7   :  { %v2860_v31 = vadd.f32 %v2859_v14, %v2771_v17  ;;  %2809 = vmatmul.bf16.gmra.mxu0 %v7700_v23  ;;  %v3371_v14 = vmul.f32 0.5, %v3269_v59 }
 0x3e8   :  { %5000 = vmatmul.msk.bf16.gmra.mxu1 %vm7702_vm9, %v7701_v35 }
 0x3e9   :  { %5180 = vmatmul.msk.bf16.gmra.mxu2 %vm6414_vm8, %v7662_v62  ;;  %v3255_v45 = vadd.f32 %v3247_v21, %v2860_v31 }
 0x3ea   :  { %4046 = vmatpush.bf16.msra.mxu2 %v6570_v15  ;;  %3566 = vmatpush.bf16.msra.mxu3 %v6506_v18  ;;  %v3267_v18 = vsel %vm3259_vm2, 0.0, %v3251_v1  ;;  %v7705_v1 = vld [vmem:[#allocation103_spill] sm:$0xff] }
 0x3eb   :  { %vm3263_vm8 = vcmp.ge.f32.partialorder %v3255_v45, 1.0  ;;  %v3369_v58 = vmul.f32 0.5, %v3267_v18 }
 0x3ec   :  { %v2772_v57 = vpop.f32.mrf.mxu0  ;;  %v3271_v23 = vsel %vm3263_vm8, 0.0, %v3255_v45  ;;  %v7712_v45 = vld [vmem:[#allocation67_spill] sm:$0xff] }
 0x3ed   :  { %v2773_v54 = vadd.f32 %v2772_v57, %v6548_v39  ;;  %v2861_v55 = vpop.f32.mrf.mxu1  ;;  %v3373_v29 = vmul.f32 0.5, %v3271_v23  ;;  %v7710_v57 = vld [vmem:[#allocation107_spill] sm:$0xff]  ;;  %vm7713_vm13 = vnez %v7712_v45 }
 0x3ee   :  { %4047 = vmatpush.bf16.msra.mxu2 %v6579_v53  ;;  %3567 = vmatpush.bf16.msra.mxu3 %v6536_v40  ;;  %v6892_v22 = vpop.f32.mrf.mxu2 }
 0x3ef   :  { %v2862_v43 = vadd.f32 %v2861_v55, %v2773_v54 }
 0x3f1   :  { %v3257_v8 = vadd.f32 %v3249_v12, %v2862_v43  ;;  %v7714_v12 = vld [vmem:[#allocation64_spill] sm:$0xff]  ;;  %v7715_v43 = vld [vmem:[#allocation71_spill] sm:$0xff] }
 0x3f2   :  { %4048 = vmatpush.bf16.msra.mxu2 %v6584_v13  ;;  %3568 = vmatpush.bf16.msra.mxu3 %v6568_v4  ;;  %v2694_v18 = vadd.f32 %v7715_v43, %v7714_v12 }
 0x3f3   :  { %vm3265_vm14 = vcmp.ge.f32.partialorder %v3257_v8, 1.0 }
 0x3f4   :  { %v2775_v15 = vpop.f32.mrf.mxu0  ;;  %vm5103_vm6 = vmpackc.low %vm3265_vm14, %vm3263_vm8 }
 0x3f5   :  { %v2776_v39 = vadd.f32 %v2775_v15, %v6556_v5  ;;  %v2864_v53 = vpop.f32.mrf.mxu1  ;;  %5104 = vmatmul.msk.bf16.gmra.mxu3 %vm5103_vm6, %v7662_v62  ;;  %vm7722_vm6 = vmmov %vm7702_vm9 }
 0x3f6   :  { %4049 = vmatpush.bf16.msra.mxu2 %v6589_v30  ;;  %3569 = vmatpush.bf16.msra.mxu3 %v6616_v20  ;;  %v2689_v30 = vadd.f32 %v6564_v25, %v6562_v26  ;;  %v6906_v21 = vpop.f32.mrf.mxu2 }
 0x3f7   :  { %v2865_v13 = vadd.f32 %v2864_v53, %v2776_v39  ;;  %2814 = vmatmul.bf16.gmra.mxu0 %v7704_v16  ;;  %v3273_v39 = vsel %vm3265_vm14, 0.0, %v3257_v8 }
 0x3f8   :  { %5001 = vmatmul.msk.bf16.gmra.mxu1 %vm7706_vm12, %v7705_v1  ;;  %v3375_v16 = vmul.f32 0.5, %v3273_v39  ;;  %v7720_v39 = vld [vmem:[#allocation111_spill] sm:$0xff] }
 0x3f9   :  { %5198 = vmatmul.msk.bf16.vlgmr.msrb.gmra.mxu2 %vm7708_vm4, %v7662_v62  ;;  %v3377_v5 = vadd.f32 %v3369_v58, %v2865_v13 }
 0x3fa   :  { %3570 = vmatpush.bf16.msra.mxu3 %v6656_v10 }
 0x3fb   :  { %vm3385_vm3 = vcmp.ge.f32.partialorder %v3377_v5, 1.0 }
 0x3fc   :  { %v2777_v6 = vpop.f32.mrf.mxu0 }
 0x3fd   :  { %v2778_v56 = vadd.f32 %v2777_v6, %v2689_v30  ;;  %v2866_v63 = vpop.f32.mrf.mxu1  ;;  %v3393_v30 = vsel %vm3385_vm3, 0.0, %v3377_v5 }
 0x3fe   :  { %3571 = vmatpush.bf16.msra.mxu3 %v6699_v9  ;;  %v6921_v55 = vpop.f32.mrf.mxu2 }
 0x3ff   :  { %v2867_v17 = vadd.f32 %v2866_v63, %v2778_v56  ;;  %v3495_v56 = vmul.f32 0.5, %v3393_v30  ;;  %v7716_v63 = vld [vmem:[#allocation109_spill] sm:$0xff] }
 0x401   :  { %v3379_v31 = vadd.f32 %v3371_v14, %v2867_v17  ;;  %v7717_v17 = vld [vmem:[#allocation110_spill] sm:$0xff] }
 0x402   :  { %3572 = vmatpush.bf16.msra.mxu3 %v6742_v61 }
 0x403   :  { %vm3387_vm7 = vcmp.ge.f32.partialorder %v3379_v31, 1.0 }
 0x404   :  { %vm5121_vm10 = vmpackc.low %vm3387_vm7, %vm3385_vm3  ;;  %v2780_v26 = vpop.f32.mrf.mxu0 }
 0x405   :  { %v2781_v25 = vadd.f32 %v2780_v26, %v6582_v47  ;;  %v2869_v49 = vpop.f32.mrf.mxu1  ;;  %5122 = vmatmul.msk.bf16.vlgmr.msrb.gmra.mxu3 %vm5121_vm10, %v7662_v62  ;;  %v6923_v47 = vld [vmem:[#allocation10 + $0x70] sm:$0xff]  ;;  %v3395_v26 = vsel %vm3387_vm7, 0.0, %v3379_v31 }
 0x406   :  { %3691 = vmatpush.bf16.msrb.mxu3 %v6867_v33  ;;  %v6931_v44 = vpop.f32.mrf.mxu2 }
 0x407   :  { %v2870_v35 = vadd.f32 %v2869_v49, %v2781_v25  ;;  %2819 = vmatmul.bf16.gmra.mxu0 %v7709_v52 }
 0x408   :  { %5002 = vmatmul.msk.bf16.gmra.mxu1 %vm7711_vm11, %v7710_v57  ;;  %v3497_v57 = vmul.f32 0.5, %v3395_v26 }
 0x409   :  { %5200 = vmatmul.msk.bf16.gmra.mxu2 %vm7713_vm13, %v7662_v62  ;;  %v3381_v54 = vadd.f32 %v3373_v29, %v2870_v35 }
 0x40a   :  { %3692 = vmatpush.bf16.msrb.mxu3 %v6923_v47 }
 0x40b   :  { %vm3389_vm2 = vcmp.ge.f32.partialorder %v3381_v54, 1.0 }
 0x40c   :  { %v2782_v15 = vpop.f32.mrf.mxu0  ;;  %v3397_v12 = vsel %vm3389_vm2, 0.0, %v3381_v54 }
 0x40d   :  { %v2783_v53 = vadd.f32 %v2782_v15, %v2694_v18  ;;  %v2871_v13 = vpop.f32.mrf.mxu1  ;;  %v3499_v15 = vmul.f32 0.5, %v3397_v12 }
 0x40e   :  { %3693 = vmatpush.bf16.msrb.mxu3 %v6536_v40  ;;  %v6949_v29 = vpop.f32.mrf.mxu2 }
 0x40f   :  { %v2872_v58 = vadd.f32 %v2871_v13, %v2783_v53  ;;  %v7721_v13 = vld [vmem:[#allocation112_spill] sm:$0xff] }
 0x411   :  { %v3383_v1 = vadd.f32 %v3375_v16, %v2872_v58 }
 0x412   :  { %3694 = vmatpush.bf16.msrb.mxu3 %v6568_v4 }
 0x413   :  { %vm3391_vm0 = vcmp.ge.f32.partialorder %v3383_v1, 1.0 }
 0x414   :  { %v2785_v6 = vpop.f32.mrf.mxu0  ;;  %vm5123_vm5 = vmpackc.low %vm3391_vm0, %vm3389_vm2  ;;  %v3399_v30 = vsel %vm3391_vm0, 0.0, %v3383_v1 }
 0x415   :  { %v2786_v8 = vadd.f32 %v2785_v6, %v6604_v27  ;;  %v2874_v59 = vpop.f32.mrf.mxu1  ;;  %5124 = vmatmul.msk.bf16.gmra.mxu3 %vm5123_vm5, %v7662_v62  ;;  %v7719_v27 = vld [vmem:[#allocation21_spill] sm:$0xff] }
 0x416   :  { %3695 = vmatpush.bf16.msrb.mxu3 %v6616_v20  ;;  %v2699_v23 = vadd.f32 %v7719_v27, %v6610_v48  ;;  %v6960_v53 = vpop.f32.mrf.mxu2 }
 0x417   :  { %v2875_v40 = vadd.f32 %v2874_v59, %v2786_v8  ;;  %2824 = vmatmul.bf16.gmra.mxu0 %v7716_v63  ;;  %v3501_v63 = vmul.f32 0.5, %v3399_v30 }
 0x418   :  { %5003 = vmatmul.msk.bf16.gmra.mxu1 %vm7702_vm9, %v7717_v17 }
 0x419   :  { %5218 = vmatmul.msk.bf16.vlgmr.msra.gmra.mxu2 %vm6470_vm15, %v7662_v62  ;;  %v3503_v14 = vadd.f32 %v3495_v56, %v2875_v40  ;;  %v6971_v40 = vld [vmem:[#allocation10 + $0x68] sm:$0xff] }
 0x41a   :  { %3696 = vmatpush.bf16.msrb.mxu3 %v6656_v10 }
 0x41b   :  { %vm3511_vm15 = vcmp.ge.f32.partialorder %v3503_v14, 1.0 }
 0x41c   :  { %v2787_v25 = vpop.f32.mrf.mxu0  ;;  %v3519_v5 = vsel %vm3511_vm15, 0.0, %v3503_v14 }
 0x41d   :  { %v2788_v49 = vadd.f32 %v2787_v25, %v2699_v23  ;;  %v2876_v35 = vpop.f32.mrf.mxu1  ;;  %v3621_v25 = vmul.f32 0.5, %v3519_v5 }
 0x41e   :  { %3697 = vmatpush.bf16.msrb.mxu3 %v6699_v9 }
 0x41f   :  { %v2877_v52 = vadd.f32 %v2876_v35, %v2788_v49  ;;  %v7727_v35 = vld [vmem:[#allocation75_spill] sm:$0xff] }
 0x421   :  { %v3505_v45 = vadd.f32 %v3497_v57, %v2877_v52 }
 0x422   :  { %3698 = vmatpush.bf16.msrb.mxu3 %v6742_v61 }
 0x423   :  { %vm3513_vm8 = vcmp.ge.f32.partialorder %v3505_v45, 1.0 }
 0x424   :  { %vm5141_vm14 = vmpackc.low %vm3513_vm8, %vm3511_vm15  ;;  %v2790_v48 = vpop.f32.mrf.mxu0  ;;  %v3521_v14 = vsel %vm3513_vm8, 0.0, %v3505_v45 }
 0x425   :  { %v2791_v31 = vadd.f32 %v2790_v48, %v6625_v41  ;;  %v2879_v43 = vpop.f32.mrf.mxu1  ;;  %5142 = vmatmul.msk.bf16.vlgmr.msra.gmra.mxu3 %vm5141_vm14, %v7662_v62  ;;  %v7724_v41 = vld [vmem:[#allocation22_spill] sm:$0xff] }
 0x426   :  { %3817 = vmatpush.bf16.msra.mxu3 %v6867_v33  ;;  %v2704_v16 = vadd.f32 %v7724_v41, %v6631_v2  ;;  %v7725_v2 = vld [vmem:[#allocation23_spill] sm:$0xff] }
 0x427   :  { %v2880_v18 = vadd.f32 %v2879_v43, %v2791_v31  ;;  %2829 = vmatmul.bf16.gmra.mxu0 %v7720_v39  ;;  %v6985_v31 = vpop.f32.mrf.mxu3 }
 0x428   :  { %5004 = vmatmul.msk.bf16.gmra.mxu1 %vm7722_vm6, %v7721_v13 }
 0x429   :  { %5220 = vmatmul.msk.bf16.gmra.mxu2 %vm6490_vm1, %v7662_v62  ;;  %v3507_v58 = vadd.f32 %v3499_v15, %v2880_v18  ;;  %v3623_v18 = vmul.f32 0.5, %v3521_v14  ;;  %v6991_v15 = vld [vmem:[%s7350_s4] ss:$0 sm:$0xff]  ;;  %s5616_s4 = smov [#allocation12]  }
 0x42a   :  { %3818 = vmatpush.bf16.msra.mxu3 %v6923_v47  ;;  %v3182_v54 = vadd.f32 %v6991_v15, %v6859_v50  ;;  %s4116_s17 = sshll.u32 %s5616_s4, 4  ;;  %s4117_s17 = int_to_ptr.vmem [resolvable:$true] %s4116_s17 }
 0x42b   :  { %vm3515_vm1 = vcmp.ge.f32.partialorder %v3507_v58, 1.0 }
 0x42c   :  { %v2792_v6 = vpop.f32.mrf.mxu0  ;;  %v3523_v45 = vsel %vm3515_vm1, 0.0, %v3507_v58 }
 0x42d   :  { %v2793_v8 = vadd.f32 %v2792_v6, %v2704_v16  ;;  %v2881_v59 = vpop.f32.mrf.mxu1 }
 0x42e   :  { %3819 = vmatpush.bf16.msra.mxu3 %v6971_v40 }
 0x42f   :  { %v2882_v56 = vadd.f32 %v2881_v59, %v2793_v8  ;;  %v3625_v8 = vmul.f32 0.5, %v3523_v45  ;;  %v7729_v45 = vld [vmem:[#allocation25_spill] sm:$0xff] }
 0x431   :  { %v3509_v17 = vadd.f32 %v3501_v63, %v2882_v56  ;;  %v7728_v56 = vld [vmem:[#allocation24_spill] sm:$0xff] }
 0x432   :  { %3820 = vmatpush.bf16.msra.mxu3 %v6568_v4  ;;  %v7726_v4 = vld [vmem:[#allocation68_spill] sm:$0xff]  ;;  %v2714_v63 = vadd.f32 %v7728_v56, %v6673_v28 }
 0x433   :  { %vm3517_vm12 = vcmp.ge.f32.partialorder %v3509_v17, 1.0  ;;  %v2709_v52 = vadd.f32 %v7727_v35, %v7726_v4  ;;  %v7013_v35 = vld [vmem:[#allocation10 + $0x60] sm:$0xff] }
 0x434   :  { %v2795_v27 = vpop.f32.mrf.mxu0  ;;  %vm5143_vm4 = vmpackc.low %vm3517_vm12, %vm3515_vm1  ;;  %v3525_v50 = vsel %vm3517_vm12, 0.0, %v3509_v17 }
 0x435   :  { %v2796_v1 = vadd.f32 %v2795_v27, %v7725_v2  ;;  %v2884_v23 = vpop.f32.mrf.mxu1  ;;  %5144 = vmatmul.msk.bf16.gmra.mxu3 %vm5143_vm4, %v7662_v62 }
 0x436   :  { %3821 = vmatpush.bf16.msra.mxu3 %v6616_v20 }
 0x437   :  { %v2885_v26 = vadd.f32 %v2884_v23, %v2796_v1 }
 0x439   :  { %v3629_v49 = vadd.f32 %v3621_v25, %v2885_v26  ;;  %v3627_v26 = vmul.f32 0.5, %v3525_v50 }
 0x43a   :  { %3822 = vmatpush.bf16.msra.mxu3 %v6656_v10 }
 0x43b   :  { %vm3637_vm3 = vcmp.ge.f32.partialorder %v3629_v49, 1.0 }
 0x43c   :  { %v2797_v57 = vpop.f32.mrf.mxu0  ;;  %v3645_v28 = vsel %vm3637_vm3, 0.0, %v3629_v49 }
 0x43d   :  { %v2798_v12 = vadd.f32 %v2797_v57, %v2709_v52  ;;  %v2886_v48 = vpop.f32.mrf.mxu1  ;;  %v7023_v57 = vpop.f32.mrf.mxu2 }
 0x43e   :  { %3823 = vmatpush.bf16.msra.mxu3 %v6699_v9 }
 0x43f   :  { %v2887_v43 = vadd.f32 %v2886_v48, %v2798_v12 }
 0x441   :  { %v3631_v39 = vadd.f32 %v3623_v18, %v2887_v43  ;;  %v3747_v43 = vmul.f32 0.5, %v3645_v28 }
 0x442   :  { %3824 = vmatpush.bf16.msra.mxu3 %v6742_v61 }
 0x443   :  { %vm3639_vm7 = vcmp.ge.f32.partialorder %v3631_v39, 1.0 }
 0x444   :  { %vm5161_vm10 = vmpackc.low %vm3639_vm7, %vm3637_vm3  ;;  %v2800_v13 = vpop.f32.mrf.mxu0 }
 0x445   :  { %v2801_v41 = vadd.f32 %v2800_v13, %v6668_v0  ;;  %v2889_v16 = vpop.f32.mrf.mxu1  ;;  %5162 = vmatmul.msk.bf16.vlgmr.msrb.gmra.mxu3 %vm5161_vm10, %v7662_v62  ;;  %v3184_v0 = vadd.f32 %v6991_v15, %v6878_v46  ;;  %v3187_v46 = vadd.f32 %v6991_v15, %v6892_v22  ;;  %v7730_v22 = vld [vmem:[#allocation26_spill] sm:$0xff] }
 0x446   :  { %v3200_v30 = vpop.f32.mrf.mxu3  ;;  %3943 = vmatpush.bf16.msrb.mxu3 %v6867_v33  ;;  %v2719_v13 = vadd.f32 %v7730_v22, %v7729_v45 }
 0x447   :  { %v2890_v6 = vadd.f32 %v2889_v16, %v2801_v41  ;;  %v7002_v59 = vadd.f32 %v3200_v30, %v3182_v54  ;;  %v3189_v41 = vadd.f32 %v6991_v15, %v6906_v21 }
 0x449   :  { %v3633_v58 = vadd.f32 %v3625_v8, %v2890_v6  ;;  %vm3214_vm0 = vcmp.ge.f32.partialorder %v7002_v59, 1.0 }
 0x44a   :  { %3944 = vmatpush.bf16.msrb.mxu3 %v6923_v47 }
 0x44b   :  { %vm3641_vm11 = vcmp.ge.f32.partialorder %v3633_v58, 1.0 }
 0x44c   :  { %v2802_v5 = vpop.f32.mrf.mxu0  ;;  %v3649_v21 = vsel %vm3641_vm11, 0.0, %v3633_v58  ;;  %v3304_v58 = vadd.f32 %v6991_v15, %v6921_v55 }
 0x44d   :  { %v2803_v27 = vadd.f32 %v2802_v5, %v2714_v63  ;;  %v2891_v2 = vpop.f32.mrf.mxu1  ;;  %v7039_v63 = vpop.f32.mrf.mxu2 }
 0x44e   :  { %v3202_v1 = vpop.f32.mrf.mxu3  ;;  %3945 = vmatpush.bf16.msrb.mxu3 %v6971_v40 }
 0x44f   :  { %v2892_v23 = vadd.f32 %v2891_v2, %v2803_v27  ;;  %v7011_v25 = vadd.f32 %v3202_v1, %v3184_v0  ;;  %v3218_v0 = vsel %vm3214_vm0, 0.0, %v7002_v59  ;;  %v3751_v2 = vmul.f32 0.5, %v3649_v21  ;;  %v5474_v21 = vld [vmem:[#allocation10 + $0x58] sm:$0xff] }
 0x451   :  { %v3635_v4 = vadd.f32 %v3627_v26, %v2892_v23  ;;  %v3332_v23 = vmul.f32 0.5, %v3218_v0  ;;  %vm3215_vm8 = vcmp.ge.f32.partialorder %v7011_v25, 1.0 }
 0x452   :  { %3946 = vmatpush.bf16.msrb.mxu3 %v7013_v35 }
 0x453   :  { %vm3643_vm13 = vcmp.ge.f32.partialorder %v3635_v4, 1.0 }
 0x454   :  { %v2805_v17 = vpop.f32.mrf.mxu0  ;;  %vm5163_vm2 = vmpackc.low %vm3643_vm13, %vm3641_vm11  ;;  %v3651_v55 = vsel %vm3643_vm13, 0.0, %v3635_v4  ;;  %v3306_v4 = vadd.f32 %v6991_v15, %v6931_v44 }
 0x455   :  { %v2806_v52 = vadd.f32 %v2805_v17, %v6688_v60  ;;  %v2894_v14 = vpop.f32.mrf.mxu1  ;;  %5164 = vmatmul.msk.bf16.gmra.mxu3 %vm5163_vm2, %v7662_v62  ;;  %v3647_v60 = vsel %vm3639_vm7, 0.0, %v3631_v39  ;;  %v7731_v17 = vld [vmem:[#allocation72_spill] sm:$0xff] }
 0x456   :  { %v3205_v12 = vpop.f32.mrf.mxu3  ;;  %3947 = vmatpush.bf16.msrb.mxu3 %v6616_v20  ;;  %v3749_v8 = vmul.f32 0.5, %v3647_v60 }
 0x457   :  { %v2895_v48 = vadd.f32 %v2894_v14, %v2806_v52  ;;  %v7026_v49 = vadd.f32 %v3205_v12, %v3187_v46  ;;  %v2724_v46 = vadd.f32 %v7731_v17, %v6716_v3  ;;  %v3219_v3 = vsel %vm3215_vm8, 0.0, %v7011_v25 }
 0x458   :  { %v3333_v59 = vmul.f32 0.5, %v3219_v3 }
 0x459   :  { %v7028_v18 = vadd.f32 %v3747_v43, %v2895_v48  ;;  %v5615_v48 = vmov 0.0   ;;  %vm3216_vm6 = vcmp.ge.f32.partialorder %v7026_v49, 1.0 }
 0x45a   :  { %3948 = vmatpush.bf16.msrb.mxu3 %v6656_v10  ;;  %v5085_v43 = vsel %vm3214_vm0, 1.0, %v5615_v48 }
 0x45b   :  { %vm3763_vm5 = vcmp.ge.f32.partialorder %v7028_v18, 1.0 }
 0x45c   :  { %v2807_v54 = vpop.f32.mrf.mxu0 }
 0x45d   :  { %v2808_v16 = vadd.f32 %v2807_v54, %v2719_v13  ;;  %v2896_v30 = vpop.f32.mrf.mxu1  ;;  %v3753_v13 = vmul.f32 0.5, %v3651_v55 }
 0x45e   :  { %v3207_v20 = vpop.f32.mrf.mxu3  ;;  %3949 = vmatpush.bf16.msrb.mxu3 %v6699_v9 }
 0x45f   :  { %v2897_v6 = vadd.f32 %v2896_v30, %v2808_v16  ;;  %v7037_v56 = vadd.f32 %v3207_v20, %v3189_v41  ;;  %v3771_v16 = vsel %vm3763_vm5, 0.0, %v7028_v18  ;;  %v3220_v18 = vsel %vm3216_vm6, 0.0, %v7026_v49 }
 0x460   :  { %v3334_v25 = vmul.f32 0.5, %v3220_v18 }
 0x461   :  { %v7041_v10 = vadd.f32 %v3749_v8, %v2897_v6  ;;  %v5086_v6 = vsel %vm3215_vm8, 1.0, %v5615_v48  ;;  %vm3217_vm7 = vcmp.ge.f32.partialorder %v7037_v56, 1.0 }
 0x462   :  { %3950 = vmatpush.bf16.msrb.mxu3 %v6742_v61 }
 0x463   :  { %vm3765_vm9 = vcmp.ge.f32.partialorder %v7041_v10, 1.0 }
 0x464   :  { %vm5181_vm15 = vmpackc.low %vm3765_vm9, %vm3763_vm5  ;;  %v2810_v39 = vpop.f32.mrf.mxu0 }
 0x465   :  { %v2811_v50 = vadd.f32 %v2810_v39, %v6711_v24  ;;  %v2899_v5 = vpop.f32.mrf.mxu1  ;;  %5182 = vmatmul.msk.bf16.vlgmr.msra.gmra.mxu3 %vm5181_vm15, %v7662_v62  ;;  %v7062_v24 = vpop.f32.mrf.mxu2 }
 0x466   :  { %4061 = vmatpush.bf16.msra.mxu3 %v6867_v33 }
 0x467   :  { %v2900_v27 = vadd.f32 %v2899_v5, %v2811_v50  ;;  %v3873_v50 = vmul.f32 0.5, %v3771_v16 }
 0x468   :  { %v3322_v1 = vpop.f32.mrf.mxu3 }
 0x469   :  { %v7060_v26 = vadd.f32 %v3751_v2, %v2900_v27  ;;  %v3323_v28 = vadd.f32 %v3322_v1, %v3304_v58  ;;  %v5475_v2 = vld [vmem:[#allocation10 + $0x50] sm:$0xff]  ;;  %v2729_v1 = vadd.f32 %v6738_v42, %v6736_v11  ;;  %v3221_v42 = vsel %vm3217_vm7, 0.0, %v7037_v56 }
 0x46a   :  { %4062 = vmatpush.bf16.msra.mxu3 %v6923_v47  ;;  %v3335_v49 = vmul.f32 0.5, %v3221_v42  ;;  %v3435_v42 = vadd.f32 %v6991_v15, %v7062_v24 }
 0x46b   :  { %v7068_v33 = vadd.f32 %v3332_v23, %v3323_v28  ;;  %vm3767_vm1 = vcmp.ge.f32.partialorder %v7060_v26, 1.0 }
 0x46c   :  { %v2812_v52 = vpop.f32.mrf.mxu0 }
 0x46d   :  { %vm3340_vm14 = vcmp.ge.f32.partialorder %v7068_v33, 1.0  ;;  %v2813_v14 = vadd.f32 %v2812_v52, %v2724_v46  ;;  %v2901_v12 = vpop.f32.mrf.mxu1  ;;  %v7094_v44 = vpop.f32.mrf.mxu2  ;;  %v5087_v52 = vsel %vm3216_vm6, 1.0, %v5615_v48 }
 0x46e   :  { %v5105_v47 = vsel %vm3340_vm14, 1.0, %v5615_v48  ;;  %4063 = vmatpush.bf16.msra.mxu3 %v6971_v40 }
 0x46f   :  { %v7084_v45 = vadd.f32 %v5105_v47, %v5085_v43  ;;  %v2902_v22 = vadd.f32 %v2901_v12, %v2813_v14 }
 0x470   :  { %v3324_v60 = vpop.f32.mrf.mxu3 }
 0x471   :  { %v7086_v54 = vadd.f32 %v3753_v13, %v2902_v22  ;;  %v3325_v41 = vadd.f32 %v3324_v60, %v3306_v4 }
 0x472   :  { %4064 = vmatpush.bf16.msra.mxu3 %v7013_v35 }
 0x473   :  { %vm3769_vm12 = vcmp.ge.f32.partialorder %v7086_v54, 1.0  ;;  %v7092_v40 = vadd.f32 %v3333_v59, %v3325_v41 }
 0x474   :  { %v2815_v30 = vpop.f32.mrf.mxu0  ;;  %vm5183_vm4 = vmpackc.low %vm3769_vm12, %vm3767_vm1 }
 0x475   :  { %v2816_v35 = vadd.f32 %v2815_v30, %v6731_v34  ;;  %v2904_v20 = vpop.f32.mrf.mxu1  ;;  %5184 = vmatmul.msk.bf16.gmra.mxu3 %vm5183_vm4, %v7662_v62  ;;  %vm3341_vm3 = vcmp.ge.f32.partialorder %v7092_v40, 1.0  ;;  %v3309_v34 = vadd.f32 %v6991_v15, %v6949_v29  ;;  %v3773_v29 = vsel %vm3765_vm9, 0.0, %v7041_v10  ;;  %v7130_v55 = vpop.f32.mrf.mxu2 }
 0x476   :  { %v5106_v8 = vsel %vm3341_vm3, 1.0, %v5615_v48  ;;  %4065 = vmatpush.bf16.msra.mxu3 %v5474_v21  ;;  %v3311_v10 = vadd.f32 %v6991_v15, %v6960_v53  ;;  %v3875_v43 = vmul.f32 0.5, %v3773_v29  ;;  %v3777_v21 = vsel %vm3769_vm12, 0.0, %v7086_v54 }
 0x477   :  { %v2905_v39 = vadd.f32 %v2904_v20, %v2816_v35  ;;  %v7117_v5 = vadd.f32 %v5106_v8, %v5086_v6 }
 0x478   :  { %v3327_v0 = vpop.f32.mrf.mxu3 }
 0x479   :  { %v7119_v58 = vadd.f32 %v3873_v50, %v2905_v39  ;;  %v3328_v27 = vadd.f32 %v3327_v0, %v3309_v34  ;;  %v3345_v0 = vsel %vm3341_vm3, 0.0, %v7092_v40 }
 0x47a   :  { %4066 = vmatpush.bf16.msra.mxu3 %v5475_v2  ;;  %v3459_v29 = vmul.f32 0.5, %v3345_v0 }
 0x47b   :  { %v7124_v23 = vadd.f32 %v3334_v25, %v3328_v27  ;;  %vm3889_vm11 = vcmp.ge.f32.partialorder %v7119_v58, 1.0  ;;  %v3879_v25 = vmul.f32 0.5, %v3777_v21 }
 0x47c   :  { %v2817_v28 = vpop.f32.mrf.mxu0 }
 0x47d   :  { %vm3342_vm10 = vcmp.ge.f32.partialorder %v7124_v23, 1.0  ;;  %v2818_v17 = vadd.f32 %v2817_v28, %v2729_v1  ;;  %v2906_v46 = vpop.f32.mrf.mxu1  ;;  %v7176_v35 = vpop.f32.mrf.mxu2 }
 0x47e   :  { %v5107_v11 = vsel %vm3342_vm10, 1.0, %v5615_v48  ;;  %4067 = vmatpush.bf16.msra.mxu3 %v6699_v9  ;;  %v3775_v9 = vsel %vm3767_vm1, 0.0, %v7060_v26  ;;  %v3344_v26 = vsel %vm3340_vm14, 0.0, %v7068_v33  ;;  %v2734_v33 = vadd.f32 %v6764_v32, %v6762_v19 }
 0x47f   :  { %v7144_v14 = vadd.f32 %v5107_v11, %v5087_v52  ;;  %v2907_v12 = vadd.f32 %v2906_v46, %v2818_v17  ;;  %v3877_v16 = vmul.f32 0.5, %v3775_v9  ;;  %v3458_v18 = vmul.f32 0.5, %v3344_v26 }
 0x480   :  { %v3329_v3 = vpop.f32.mrf.mxu3  ;;  %v3432_v19 = vadd.f32 %v6991_v15, %v7039_v63  ;;  %v3897_v63 = vsel %vm3889_vm11, 0.0, %v7119_v58  ;;  %v3346_v52 = vsel %vm3342_vm10, 0.0, %v7124_v23 }
 0x481   :  { %v7146_v47 = vadd.f32 %v3875_v43, %v2907_v12  ;;  %v3330_v4 = vadd.f32 %v3329_v3, %v3311_v10  ;;  %v3999_v12 = vmul.f32 0.5, %v3897_v63 }
 0x482   :  { %4068 = vmatpush.bf16.msra.mxu3 %v6742_v61  ;;  %v5088_v61 = vsel %vm3217_vm7, 1.0, %v5615_v48 }
 0x483   :  { %vm3891_vm13 = vcmp.ge.f32.partialorder %v7146_v47, 1.0  ;;  %v7151_v22 = vadd.f32 %v3335_v49, %v3330_v4  ;;  %v3460_v49 = vmul.f32 0.5, %v3346_v52  ;;  %v7732_v4 = vld [vmem:[#allocation79_spill] sm:$0xff] }
 0x484   :  { %vm5201_vm2 = vmpackc.low %vm3891_vm13, %vm3889_vm11  ;;  %v2820_v53 = vpop.f32.mrf.mxu0  ;;  %v2739_v9 = vadd.f32 %v7732_v4, %v6786_v38  ;;  %v3437_v38 = vadd.f32 %v6991_v15, %v7094_v44 }
 0x485   :  { %v2821_v13 = vadd.f32 %v2820_v53, %v6755_v37  ;;  %v2909_v60 = vpop.f32.mrf.mxu1  ;;  %5202 = vmatmul.msk.bf16.vlgmr.msrb.gmra.mxu3 %vm5201_vm2, %v7662_v62  ;;  %vm3343_vm0 = vcmp.ge.f32.partialorder %v7151_v22, 1.0  ;;  %v3430_v37 = vadd.f32 %v6991_v15, %v7023_v57  ;;  %v7199_v28 = vpop.f32.mrf.mxu2 }
 0x486   :  { %v5108_v59 = vsel %vm3343_vm0, 1.0, %v5615_v48  ;;  %v3347_v26 = vsel %vm3343_vm0, 0.0, %v7151_v22 }
 0x487   :  { %v2910_v41 = vadd.f32 %v2909_v60, %v2821_v13  ;;  %v7174_v30 = vadd.f32 %v5108_v59, %v5088_v61  ;;  %v3899_v13 = vsel %vm3891_vm13, 0.0, %v7146_v47 }
 0x488   :  { %v3448_v20 = vpop.f32.mrf.mxu3 }
 0x489   :  { %v3885_v56 = vadd.f32 %v3877_v16, %v2910_v41  ;;  %v3449_v6 = vadd.f32 %v3448_v20, %v3430_v37  ;;  %v4001_v41 = vmul.f32 0.5, %v3899_v13 }
 0x48b   :  { %v7180_v8 = vadd.f32 %v3458_v18, %v3449_v6  ;;  %vm3893_vm9 = vcmp.ge.f32.partialorder %v3885_v56, 1.0  ;;  %v3461_v6 = vmul.f32 0.5, %v3347_v26 }
 0x48c   :  { %v2822_v57 = vpop.f32.mrf.mxu0 }
 0x48d   :  { %vm3466_vm5 = vcmp.ge.f32.partialorder %v7180_v8, 1.0  ;;  %v2823_v34 = vadd.f32 %v2822_v57, %v2734_v33  ;;  %v2911_v39 = vpop.f32.mrf.mxu1  ;;  %v7226_v53 = vpop.f32.mrf.mxu2  ;;  %v3901_v33 = vsel %vm3893_vm9, 0.0, %v3885_v56 }
 0x48e   :  { %v5125_v50 = vsel %vm3466_vm5, 1.0, %v5615_v48  ;;  %v3470_v57 = vsel %vm3466_vm5, 0.0, %v7180_v8  ;;  %v4003_v0 = vmul.f32 0.5, %v3901_v33 }
 0x48f   :  { %v7195_v32 = vadd.f32 %v5125_v50, %v7084_v45  ;;  %v2912_v54 = vadd.f32 %v2911_v39, %v2823_v34  ;;  %v3556_v39 = vadd.f32 %v6991_v15, %v7130_v55 }
 0x490   :  { %v3450_v27 = vpop.f32.mrf.mxu3 }
 0x491   :  { %v7197_v2 = vadd.f32 %v3879_v25, %v2912_v54  ;;  %v3451_v1 = vadd.f32 %v3450_v27, %v3432_v19  ;;  %v3584_v25 = vmul.f32 0.5, %v3470_v57  ;;  %v2744_v27 = vadd.f32 %v6985_v31, %v6805_v51 }
 0x493   :  { %vm3895_vm15 = vcmp.ge.f32.partialorder %v7197_v2, 1.0  ;;  %v7202_v17 = vadd.f32 %v3459_v29, %v3451_v1 }
 0x494   :  { %v2825_v45 = vpop.f32.mrf.mxu0  ;;  %vm5203_vm8 = vmpackc.low %vm3895_vm15, %vm3893_vm9  ;;  %v3903_v8 = vsel %vm3895_vm15, 0.0, %v7197_v2 }
 0x495   :  { %vm3467_vm14 = vcmp.ge.f32.partialorder %v7202_v17, 1.0  ;;  %v2826_v40 = vadd.f32 %v2825_v45, %v6779_v7  ;;  %v2914_v46 = vpop.f32.mrf.mxu1  ;;  %5204 = vmatmul.msk.bf16.gmra.mxu3 %vm5203_vm8, %v7662_v62 }
 0x496   :  { %v5126_v58 = vsel %vm3467_vm14, 1.0, %v5615_v48  ;;  %v3471_v55 = vsel %vm3467_vm14, 0.0, %v7202_v17 }
 0x497   :  { %v7222_v11 = vadd.f32 %v5126_v58, %v7117_v5  ;;  %v2915_v10 = vadd.f32 %v2914_v46, %v2826_v40  ;;  %v3558_v40 = vadd.f32 %v6991_v15, %v7176_v35  ;;  %v4005_v46 = vmul.f32 0.5, %v3903_v8 }
 0x498   :  { %v3453_v7 = vpop.f32.mrf.mxu3 }
 0x499   :  { %v4007_v43 = vadd.f32 %v3999_v12, %v2915_v10  ;;  %v3454_v3 = vadd.f32 %v3453_v7, %v3435_v42  ;;  %v3585_v10 = vmul.f32 0.5, %v3471_v55 }
 0x49b   :  { %v3464_v23 = vadd.f32 %v3460_v49, %v3454_v3  ;;  %vm4015_vm1 = vcmp.ge.f32.partialorder %v4007_v43, 1.0 }
 0x49c   :  { %v2827_v24 = vpop.f32.mrf.mxu0 }
 0x49d   :  { %vm3468_vm6 = vcmp.ge.f32.partialorder %v3464_v23, 1.0  ;;  %v2828_v5 = vadd.f32 %v2827_v24, %v2739_v9  ;;  %v2916_v60 = vpop.f32.mrf.mxu1 }
 0x49e   :  { %v5127_v61 = vsel %vm3468_vm6, 1.0, %v5615_v48  ;;  %v3472_v17 = vsel %vm3468_vm6, 0.0, %v3464_v23  ;;  %v3563_v23 = vadd.f32 %v6991_v15, %v7226_v53 }
 0x49f   :  { %v7239_v59 = vadd.f32 %v5127_v61, %v7144_v14  ;;  %v2917_v37 = vadd.f32 %v2916_v60, %v2828_v5  ;;  %v3681_v14 = vpop.f32.mrf.mxu2  ;;  %v3586_v49 = vmul.f32 0.5, %v3472_v17 }
 0x4a0   :  { %v3455_v47 = vpop.f32.mrf.mxu3 }
 0x4a1   :  { %v4009_v16 = vadd.f32 %v4001_v41, %v2917_v37  ;;  %v3456_v20 = vadd.f32 %v3455_v47, %v3437_v38  ;;  %v3682_v37 = vadd.f32 %v6991_v15, %v3681_v14 }
 0x4a3   :  { %vm4017_vm12 = vcmp.ge.f32.partialorder %v4009_v16, 1.0  ;;  %v3465_v18 = vadd.f32 %v3461_v6, %v3456_v20 }
 0x4a4   :  { %vm5221_vm4 = vmpackc.low %vm4017_vm12, %vm4015_vm1  ;;  %v2830_v21 = vpop.f32.mrf.mxu0 }
 0x4a5   :  { %vm3469_vm3 = vcmp.ge.f32.partialorder %v3465_v18, 1.0  ;;  %v2831_v22 = vadd.f32 %v2830_v21, %v6802_v36  ;;  %v2919_v44 = vpop.f32.mrf.mxu1  ;;  %5222 = vmatmul.msk.bf16.vlgmr.msra.gmra.mxu3 %vm5221_vm4, %v7662_v62 }
 0x4a6   :  { %v5128_v34 = vsel %vm3469_vm3, 1.0, %v5615_v48  ;;  %v3473_v13 = vsel %vm3469_vm3, 0.0, %v3465_v18 }
 0x4a7   :  { %v3485_v56 = vadd.f32 %v5128_v34, %v7174_v30  ;;  %v2920_v50 = vadd.f32 %v2919_v44, %v2831_v22  ;;  %v3683_v52 = vpop.f32.mrf.mxu2  ;;  %v3587_v60 = vmul.f32 0.5, %v3473_v13 }
 0x4a8   :  { %v3574_v19 = vpop.f32.mrf.mxu3  ;;  %v3684_v33 = vadd.f32 %v6991_v15, %v3683_v52 }
 0x4a9   :  { %v4011_v36 = vadd.f32 %v4003_v0, %v2920_v50  ;;  %v3575_v54 = vadd.f32 %v3574_v19, %v3556_v39 }
 0x4ab   :  { %v3588_v1 = vadd.f32 %v3584_v25, %v3575_v54  ;;  %vm4019_vm10 = vcmp.ge.f32.partialorder %v4011_v36, 1.0 }
 0x4ac   :  { %v2832_v29 = vpop.f32.mrf.mxu0 }
 0x4ad   :  { %vm3592_vm7 = vcmp.ge.f32.partialorder %v3588_v1, 1.0  ;;  %v2833_v63 = vadd.f32 %v2832_v29, %v2744_v27  ;;  %v2921_v45 = vpop.f32.mrf.mxu1 }
 0x4ae   :  { %v5145_v30 = vsel %vm3592_vm7, 1.0, %v5615_v48  ;;  %v3596_v26 = vsel %vm3592_vm7, 0.0, %v3588_v1 }
 0x4af   :  { %v3608_v51 = vadd.f32 %v5145_v30, %v7195_v32  ;;  %v2922_v31 = vadd.f32 %v2921_v45, %v2833_v63  ;;  %v3561_v32 = vadd.f32 %v6991_v15, %v7199_v28  ;;  %v3686_v4 = vpop.f32.mrf.mxu2  ;;  %v3710_v20 = vmul.f32 0.5, %v3596_v26 }
 0x4b0   :  { %v3576_v2 = vpop.f32.mrf.mxu3 }
 0x4b1   :  { %v4013_v58 = vadd.f32 %v4005_v46, %v2922_v31  ;;  %v3577_v42 = vadd.f32 %v3576_v2, %v3558_v40 }
 0x4b3   :  { %vm4021_vm11 = vcmp.ge.f32.partialorder %v4013_v58, 1.0  ;;  %v3589_v12 = vadd.f32 %v3585_v10, %v3577_v42 }
 0x4b4   :  { %vm5223_vm13 = vmpackc.low %vm4021_vm11, %vm4019_vm10 }
 0x4b5   :  { %vm3593_vm2 = vcmp.ge.f32.partialorder %v3589_v12, 1.0  ;;  %5224 = vmatmul.msk.bf16.gmra.mxu3 %vm5223_vm13, %v7662_v62 }
 0x4b6   :  { %v5146_v35 = vsel %vm3593_vm2, 1.0, %v5615_v48  ;;  %v3597_v6 = vsel %vm3593_vm2, 0.0, %v3589_v12 }
 0x4b7   :  { %v3609_v7 = vadd.f32 %v5146_v35, %v7222_v11  ;;  %v3688_v61 = vpop.f32.mrf.mxu2  ;;  %v3711_v57 = vmul.f32 0.5, %v3597_v6 }
 0x4b8   :  { %v3579_v43 = vpop.f32.mrf.mxu3  ;;  %v3689_v8 = vadd.f32 %v6991_v15, %v3688_v61 }
 0x4b9   :  { %v3580_v3 = vadd.f32 %v3579_v43, %v3561_v32 }
 0x4bb   :  { %v3590_v9 = vadd.f32 %v3586_v49, %v3580_v3 }
 0x4bd   :  { %vm3594_vm0 = vcmp.ge.f32.partialorder %v3590_v9, 1.0 }
 0x4be   :  { %v5147_v62 = vsel %vm3594_vm0, 1.0, %v5615_v48  ;;  %v3598_v14 = vsel %vm3594_vm0, 0.0, %v3590_v9 }
 0x4bf   :  { %v3610_v24 = vadd.f32 %v5147_v62, %v7239_v59  ;;  %v3807_v59 = vpop.f32.mrf.mxu2  ;;  %v3712_v54 = vmul.f32 0.5, %v3598_v14 }
 0x4c0   :  { %v3581_v5 = vpop.f32.mrf.mxu3  ;;  %v3808_v46 = vadd.f32 %v6991_v15, %v3807_v59 }
 0x4c1   :  { %v3582_v28 = vadd.f32 %v3581_v5, %v3563_v23 }
 0x4c3   :  { %v3591_v11 = vadd.f32 %v3587_v60, %v3582_v28 }
 0x4c5   :  { %vm3595_vm5 = vcmp.ge.f32.partialorder %v3591_v11, 1.0 }
 0x4c6   :  { %v5148_v38 = vsel %vm3595_vm5, 1.0, %v5615_v48  ;;  %v3599_v27 = vsel %vm3595_vm5, 0.0, %v3591_v11 }
 0x4c7   :  { %v3611_v41 = vadd.f32 %v5148_v38, %v3485_v56  ;;  %v3687_v56 = vadd.f32 %v6991_v15, %v3686_v4  ;;  %v3809_v0 = vpop.f32.mrf.mxu2  ;;  %v3713_v30 = vmul.f32 0.5, %v3599_v27 }
 0x4c8   :  { %v3700_v47 = vpop.f32.mrf.mxu3  ;;  %v3810_v32 = vadd.f32 %v6991_v15, %v3809_v0 }
 0x4c9   :  { %v3701_v16 = vadd.f32 %v3700_v47, %v3682_v37 }
 0x4cb   :  { %v3714_v53 = vadd.f32 %v3710_v20, %v3701_v16 }
 0x4cd   :  { %vm3718_vm9 = vcmp.ge.f32.partialorder %v3714_v53, 1.0 }
 0x4ce   :  { %v5165_v18 = vsel %vm3718_vm9, 1.0, %v5615_v48 }
 0x4cf   :  { %v3734_v21 = vadd.f32 %v5165_v18, %v3608_v51  ;;  %v3812_v45 = vpop.f32.mrf.mxu2  ;;  %v3722_v51 = vsel %vm3718_vm9, 0.0, %v3714_v53 }
 0x4d0   :  { %v3702_v22 = vpop.f32.mrf.mxu3  ;;  %v3836_v42 = vmul.f32 0.5, %v3722_v51  ;;  %v3813_v23 = vadd.f32 %v6991_v15, %v3812_v45 }
 0x4d1   :  { %v3703_v44 = vadd.f32 %v3702_v22, %v3684_v33 }
 0x4d3   :  { %v3715_v34 = vadd.f32 %v3711_v57, %v3703_v44 }
 0x4d5   :  { %vm3719_vm15 = vcmp.ge.f32.partialorder %v3715_v34, 1.0 }
 0x4d6   :  { %v5166_v39 = vsel %vm3719_vm15, 1.0, %v5615_v48  ;;  %v3723_v17 = vsel %vm3719_vm15, 0.0, %v3715_v34 }
 0x4d7   :  { %v3735_v50 = vadd.f32 %v5166_v39, %v3609_v7  ;;  %v3814_v12 = vpop.f32.mrf.mxu2  ;;  %v3837_v49 = vmul.f32 0.5, %v3723_v17 }
 0x4d8   :  { %v3705_v19 = vpop.f32.mrf.mxu3  ;;  %v3815_v38 = vadd.f32 %v6991_v15, %v3814_v12 }
 0x4d9   :  { %v3706_v36 = vadd.f32 %v3705_v19, %v3687_v56 }
 0x4db   :  { %v3716_v25 = vadd.f32 %v3712_v54, %v3706_v36 }
 0x4dd   :  { %vm3720_vm8 = vcmp.ge.f32.partialorder %v3716_v25, 1.0 }
 0x4de   :  { %v5167_v1 = vsel %vm3720_vm8, 1.0, %v5615_v48  ;;  %v3724_v13 = vsel %vm3720_vm8, 0.0, %v3716_v25 }
 0x4df   :  { %v3736_v29 = vadd.f32 %v5167_v1, %v3610_v24  ;;  %v3933_v9 = vpop.f32.mrf.mxu2  ;;  %v3838_v60 = vmul.f32 0.5, %v3724_v13 }
 0x4e0   :  { %v3707_v63 = vpop.f32.mrf.mxu3  ;;  %v3934_v18 = vadd.f32 %v6991_v15, %v3933_v9 }
 0x4e1   :  { %v3708_v55 = vadd.f32 %v3707_v63, %v3689_v8 }
 0x4e3   :  { %v3717_v40 = vadd.f32 %v3713_v30, %v3708_v55 }
 0x4e5   :  { %vm3721_vm14 = vcmp.ge.f32.partialorder %v3717_v40, 1.0 }
 0x4e6   :  { %v5168_v31 = vsel %vm3721_vm14, 1.0, %v5615_v48  ;;  %v3725_v61 = vsel %vm3721_vm14, 0.0, %v3717_v40 }
 0x4e7   :  { %v3737_v52 = vadd.f32 %v5168_v31, %v3611_v41  ;;  %v3935_v41 = vpop.f32.mrf.mxu2  ;;  %v3839_v20 = vmul.f32 0.5, %v3725_v61 }
 0x4e8   :  { %v3826_v2 = vpop.f32.mrf.mxu3  ;;  %v3936_v56 = vadd.f32 %v6991_v15, %v3935_v41 }
 0x4e9   :  { %v3827_v58 = vadd.f32 %v3826_v2, %v3808_v46 }
 0x4eb   :  { %v3840_v10 = vadd.f32 %v3836_v42, %v3827_v58 }
 0x4ed   :  { %vm3844_vm6 = vcmp.ge.f32.partialorder %v3840_v10, 1.0 }
 0x4ee   :  { %v5185_v35 = vsel %vm3844_vm6, 1.0, %v5615_v48  ;;  %v3848_v59 = vsel %vm3844_vm6, 0.0, %v3840_v10 }
 0x4ef   :  { %v3860_v7 = vadd.f32 %v5185_v35, %v3734_v21  ;;  %v3962_v44 = vmul.f32 0.5, %v3848_v59  ;;  %v3938_v57 = vpop.f32.mrf.mxu2 }
 0x4f0   :  { %v3828_v43 = vpop.f32.mrf.mxu3  ;;  %v3939_v8 = vadd.f32 %v6991_v15, %v3938_v57 }
 0x4f1   :  { %v3829_v3 = vadd.f32 %v3828_v43, %v3810_v32 }
 0x4f3   :  { %v3841_v4 = vadd.f32 %v3837_v49, %v3829_v3 }
 0x4f5   :  { %vm3845_vm1 = vcmp.ge.f32.partialorder %v3841_v4, 1.0 }
 0x4f6   :  { %v5186_v62 = vsel %vm3845_vm1, 1.0, %v5615_v48  ;;  %v3849_v14 = vsel %vm3845_vm1, 0.0, %v3841_v4 }
 0x4f7   :  { %v3861_v24 = vadd.f32 %v5186_v62, %v3735_v50  ;;  %v3963_v36 = vmul.f32 0.5, %v3849_v14  ;;  %v3940_v25 = vpop.f32.mrf.mxu2 }
 0x4f8   :  { %v3831_v5 = vpop.f32.mrf.mxu3  ;;  %v3941_v46 = vadd.f32 %v6991_v15, %v3940_v25 }
 0x4f9   :  { %v3832_v28 = vadd.f32 %v3831_v5, %v3813_v23 }
 0x4fb   :  { %v3842_v11 = vadd.f32 %v3838_v60, %v3832_v28 }
 0x4fd   :  { %vm3846_vm12 = vcmp.ge.f32.partialorder %v3842_v11, 1.0 }
 0x4fe   :  { %v5187_v26 = vsel %vm3846_vm12, 1.0, %v5615_v48  ;;  %v3850_v27 = vsel %vm3846_vm12, 0.0, %v3842_v11 }
 0x4ff   :  { %v3862_v37 = vadd.f32 %v5187_v26, %v3736_v29  ;;  %v3964_v30 = vmul.f32 0.5, %v3850_v27  ;;  %v4051_v40 = vpop.f32.mrf.mxu2 }
 0x500   :  { %v3833_v47 = vpop.f32.mrf.mxu3  ;;  %v4052_v35 = vadd.f32 %v6991_v15, %v4051_v40 }
 0x501   :  { %v3834_v16 = vadd.f32 %v3833_v47, %v3815_v38 }
 0x503   :  { %v3843_v53 = vadd.f32 %v3839_v20, %v3834_v16 }
 0x505   :  { %vm3847_vm4 = vcmp.ge.f32.partialorder %v3843_v53, 1.0 }
 0x506   :  { %v5188_v6 = vsel %vm3847_vm4, 1.0, %v5615_v48  ;;  %v3851_v51 = vsel %vm3847_vm4, 0.0, %v3843_v53 }
 0x507   :  { %v3863_v33 = vadd.f32 %v5188_v6, %v3737_v52  ;;  %v3965_v42 = vmul.f32 0.5, %v3851_v51 }
 0x508   :  { %v3952_v21 = vpop.f32.mrf.mxu3 }
 0x509   :  { %v3953_v22 = vadd.f32 %v3952_v21, %v3934_v18 }
 0x50b   :  { %v3966_v34 = vadd.f32 %v3962_v44, %v3953_v22 }
 0x50d   :  { %vm3970_vm3 = vcmp.ge.f32.partialorder %v3966_v34, 1.0 }
 0x50e   :  { %v5205_v39 = vsel %vm3970_vm3, 1.0, %v5615_v48  ;;  %v3974_v12 = vsel %vm3970_vm3, 0.0, %v3966_v34 }
 0x50f   :  { %v3986_v50 = vadd.f32 %v5205_v39, %v3860_v7  ;;  %v4053_v7 = vpop.f32.mrf.mxu2  ;;  %v4080_v49 = vmul.f32 0.5, %v3974_v12 }
 0x510   :  { %v3954_v0 = vpop.f32.mrf.mxu3  ;;  %v4054_v62 = vadd.f32 %v6991_v15, %v4053_v7 }
 0x511   :  { %v3955_v19 = vadd.f32 %v3954_v0, %v3936_v56 }
 0x513   :  { %v3967_v54 = vadd.f32 %v3963_v36, %v3955_v19 }
 0x515   :  { %vm3971_vm7 = vcmp.ge.f32.partialorder %v3967_v54, 1.0 }
 0x516   :  { %v5206_v1 = vsel %vm3971_vm7, 1.0, %v5615_v48  ;;  %v3975_v9 = vsel %vm3971_vm7, 0.0, %v3967_v54 }
 0x517   :  { %v3987_v29 = vadd.f32 %v5206_v1, %v3861_v24  ;;  %v4081_v60 = vmul.f32 0.5, %v3975_v9  ;;  %v4056_v11 = vpop.f32.mrf.mxu2 }
 0x518   :  { %v3957_v63 = vpop.f32.mrf.mxu3 }
 0x519   :  { %v3958_v55 = vadd.f32 %v3957_v63, %v3939_v8 }
 0x51b   :  { %v3968_v45 = vadd.f32 %v3964_v30, %v3958_v55 }
 0x51d   :  { %vm3972_vm10 = vcmp.ge.f32.partialorder %v3968_v45, 1.0 }
 0x51e   :  { %v5207_v31 = vsel %vm3972_vm10, 1.0, %v5615_v48  ;;  %v3976_v26 = vsel %vm3972_vm10, 0.0, %v3968_v45 }
 0x51f   :  { %v3988_v52 = vadd.f32 %v5207_v31, %v3862_v37  ;;  %v4057_v37 = vadd.f32 %v6991_v15, %v4056_v11  ;;  %v4082_v53 = vmul.f32 0.5, %v3976_v26  ;;  %v4058_v6 = vpop.f32.mrf.mxu2 }
 0x520   :  { %v3959_v2 = vpop.f32.mrf.mxu3  ;;  %v4059_v21 = vadd.f32 %v6991_v15, %v4058_v6 }
 0x521   :  { %v3960_v58 = vadd.f32 %v3959_v2, %v3941_v46 }
 0x523   :  { %v3969_v10 = vadd.f32 %v3965_v42, %v3960_v58 }
 0x525   :  { %vm3973_vm11 = vcmp.ge.f32.partialorder %v3969_v10, 1.0 }
 0x526   :  { %v5208_v17 = vsel %vm3973_vm11, 1.0, %v5615_v48  ;;  %v3977_v18 = vsel %vm3973_vm11, 0.0, %v3969_v10 }
 0x527   :  { %v3989_v32 = vadd.f32 %v5208_v17, %v3863_v33  ;;  %v4083_v14 = vmul.f32 0.5, %v3977_v18 }
 0x528   :  { %v4070_v43 = vpop.f32.mrf.mxu3 }
 0x529   :  { %v4071_v3 = vadd.f32 %v4070_v43, %v4052_v35 }
 0x52b   :  { %v4084_v4 = vadd.f32 %v4080_v49, %v4071_v3 }
 0x52d   :  { %vm4088_vm13 = vcmp.ge.f32.partialorder %v4084_v4, 1.0 }
 0x52e   :  { %v5225_v13 = vsel %vm4088_vm13, 1.0, %v5615_v48 }
 0x52f   :  { %v4100_v23 = vadd.f32 %v5225_v13, %v3986_v50 }
 0x530   :  { %v4072_v24 = vpop.f32.mrf.mxu3 }
 0x531   :  { %v4104_v5 = vmul.f32 0.125, %v4100_v23  ;;  %v4073_v28 = vadd.f32 %v4072_v24, %v4054_v62 }
 0x533   :  { %4108 = vst [vmem:[#allocation12] sm:$0xff] %v4104_v5  ;;  %v4085_v61 = vadd.f32 %v4081_v60, %v4073_v28 }
 0x535   :  { %vm4089_vm2 = vcmp.ge.f32.partialorder %v4085_v61, 1.0 }
 0x536   :  { %v5226_v38 = vsel %vm4089_vm2, 1.0, %v5615_v48 }
 0x537   :  { %v4101_v41 = vadd.f32 %v5226_v38, %v3987_v29 }
 0x538   :  { %v4075_v47 = vpop.f32.mrf.mxu3 }
 0x539   :  { %v4105_v16 = vmul.f32 0.125, %v4101_v41  ;;  %v4076_v20 = vadd.f32 %v4075_v47, %v4057_v37 }
 0x53b   :  { %4109 = vst [vmem:[#allocation12 + $0x8] sm:$0xff] %v4105_v16  ;;  %v4086_v59 = vadd.f32 %v4082_v53, %v4076_v20 }
 0x53d   :  { %vm4090_vm0 = vcmp.ge.f32.partialorder %v4086_v59, 1.0 }
 0x53e   :  { %v5227_v33 = vsel %vm4090_vm0, 1.0, %v5615_v48 }
 0x53f   :  { %v4102_v22 = vadd.f32 %v5227_v33, %v3988_v52 }
 0x540   :  { %v4077_v44 = vpop.f32.mrf.mxu3 }
 0x541   :  { %v4106_v57 = vmul.f32 0.125, %v4102_v22  ;;  %v4078_v34 = vadd.f32 %v4077_v44, %v4059_v21 }
 0x543   :  { %4110 = vst [vmem:[#allocation12 + $0x10] sm:$0xff] %v4106_v57  ;;  %v4087_v39 = vadd.f32 %v4083_v14, %v4078_v34 }
 0x545   :  { %vm4091_vm5 = vcmp.ge.f32.partialorder %v4087_v39, 1.0 }
 0x546   :  { %v5228_v56 = vsel %vm4091_vm5, 1.0, %v5615_v48 }
 0x547   :  { %v4103_v50 = vadd.f32 %v5228_v56, %v3989_v32 }
 0x549   :  { %v4107_v0 = vmul.f32 0.125, %v4103_v50 }
 0x54b   :  { %4111 = vst [vmem:[#allocation12 + $0x18] sm:$0xff] %v4107_v0 }
 0x54c   :  { %4124 = dma.vmem_to_hbm [thread:$0]  %s4117_s17, 512, %s4119_s20, [#allocation6], %s5605_s26, %s5605_s26, %s5606_s27  }
 0x54d   :  { %5602 = dma.done.wait [#allocation6], 512  }
 0x54e   :  { %5603 = vsyncadd [#allocation6], 4294966784 }
 0x54f   :  { %4129 = vsyncpa [#allocation5], 1 }
 0x550   :  { %4130 = vsyncpa [#allocation8], 1 }
 0x551   :  { %4131 = vsyncpa [#allocation11], 1 }
 0x552   :  { %4132 = vsyncpa [#allocation6], 1 }

</bundles_post_ra>
